<compile_context>
chip_gen: v5e
topology: v5e:2x2
jax: 0.10.0
libtpu: 0.0.40
codegen_flags: <defaults>
</compile_context>

<pallas_src>
import math
import functools

import numpy as np
import jax
import jax.numpy as jnp
from jax.experimental import pallas as pl
from jax.experimental.pallas import tpu as pltpu

NUM_HEADS = 8


# -------------------- numpy position helpers (verbatim semantics) ----------
def extract_position_embedding(position_mat, feat_dim, wave_length=10000):
    num_rois, nongt_dim, _ = position_mat.shape
    feat_range = np.arange(0, feat_dim / 4)
    dim_mat = np.power(np.full((1,), wave_length), 4.0 / feat_dim * feat_range)
    dim_mat = np.reshape(dim_mat, (1, 1, 1, -1))
    position_mat = np.expand_dims(100.0 * position_mat, axis=3)
    div_mat = np.divide(position_mat, dim_mat)
    sin_mat = np.sin(div_mat)
    cos_mat = np.cos(div_mat)
    embedding = np.concatenate((sin_mat, cos_mat), axis=3)
    embedding = np.reshape(embedding, (num_rois, nongt_dim, feat_dim))
    return embedding


def extract_position_matrix(bbox, nongt_dim):
    start, end = np.split(bbox, 2, axis=1)
    center = 0.5 * (start + end)
    length = (end - start).astype('float32')
    length = np.maximum(length, 0.1)
    delta_center = np.divide(center - np.transpose(center), length)
    delta_length = np.divide(np.transpose(length), length)
    delta_length = np.log(delta_length)
    delta_center = np.expand_dims(delta_center, 2)
    delta_length = np.expand_dims(delta_length, 2)
    position_matrix = np.concatenate((delta_center, delta_length), axis=2)
    return position_matrix


# -------------------- glue: clip gathering / event expansion ---------------
def get_clip_level_feats_np(feats, vid_idx, featstamps):
    max_att_len = max(s[1] - s[0] + 1 for s in featstamps)
    F = feats.shape[-1]
    n = len(featstamps)
    clip_mask = np.zeros((n, max_att_len), np.float32)
    clip_feats = np.zeros((n, max_att_len, F), np.float32)
    for i, soi in enumerate(featstamps):
        v_idx = vid_idx[i]
        selected = feats[v_idx][soi[0]:soi[1] + 1].reshape(-1, F)
        clip_feats[i, :len(selected), :] = selected
        clip_mask[i, :len(selected)] = 1.0
    return clip_feats, clip_mask


def build_expansion(vid_idx, event_seq_idx, timestamps, vid_time_len):
    event_num = sum(e.shape[0] * e.shape[1] for e in event_seq_idx)
    event_idx_all = []
    mask = np.zeros((event_num, event_num), np.float32)
    ts_expand, dur_expand = [], []
    total = 0
    vid_idx = np.asarray(vid_idx)
    for i in range(len(event_seq_idx)):
        vid_start = int((vid_idx < i).sum())
        for j in range(event_seq_idx[i].shape[0]):
            eidx = vid_start + event_seq_idx[i][j]
            n = len(eidx)
            event_idx_all.extend(int(ii) for ii in eidx)
            mask[total:total + n, total:total + n] = 1.0
            ts_expand.extend([timestamps[int(ii)] for ii in eidx])
            dur_expand.extend([float(vid_time_len[i]) for _ in eidx])
            total += n
    return np.array(event_idx_all), mask, ts_expand, dur_expand


def build_pos_binary(ts_expand, dur_expand):
    n = len(ts_expand)
    pb = np.zeros((n, 100), np.float32)
    for i in range(n):
        s, e = ts_expand[i]
        d = dur_expand[i]
        si = min(int(s / d * 99), 99)
        ei = min(int(e / d * 99), 99)
        pb[i, si:ei + 1] = 1.0
    return pb


# -------------------- fused Pallas kernel -----------------------------------
def _tsrm_kernel(pooled_ref, wpre_ref, bpre_ref, wqkv_ref, bqkv_ref,
                 maskb_ref, peT_ref, wp1T_ref, bp1_ref, wp2T_ref, bp2_ref,
                 out_ref, *, group):
    H = wpre_ref.shape[1]
    HG = group                      # num_heads * indiv_head_group
    dg = H // HG                    # per-(head,group) feature dim
    tq, N = maskb_ref.shape         # query tile rows, padded event count
    row0 = pl.multiple_of(pl.program_id(0) * tq, 8)

    wpre = wpre_ref[...]
    bpre = bpre_ref[...]
    W = wqkv_ref[...]
    B = bqkv_ref[...]

    # pre_map + K/V over all rows (tiny vs the N^2-scaled pos-MLP work; it is
    # recomputed per grid step so the query axis stays safely "parallel").
    ef = jnp.maximum(jnp.dot(pooled_ref[...], wpre,
                             preferred_element_type=jnp.float32) + bpre, 0.0)  # (N,H)
    kv = jnp.dot(ef, W[:, H:], preferred_element_type=jnp.float32) + B[:, H:]  # (N,2H)
    k = jnp.swapaxes(kv[:, :H].reshape(N, HG, dg), 0, 1)                        # (HG,N,dg)
    v = jnp.swapaxes(kv[:, H:].reshape(N, HG, dg), 0, 1)                        # (HG,N,dg)

    # Q for this query-row tile (1/sqrt(dg) already folded into W/B Q columns)
    ef_t = jnp.maximum(jnp.dot(pooled_ref[pl.ds(row0, tq), :], wpre,
                               preferred_element_type=jnp.float32) + bpre, 0.0)  # (tq,H)
    qq = jnp.dot(ef_t, W[:, :H], preferred_element_type=jnp.float32) + B[:, :H]  # (tq,H)
    q = jnp.swapaxes(qq.reshape(tq, HG, dg), 0, 1)                               # (HG,tq,dg)

    # position-pair MLP, pre-transposed: lane-dense (group, tq*N) output,
    # bf16 MXU inputs with f32 accumulation, f32 tanh.
    h1 = jnp.tanh(jnp.dot(wp1T_ref[...], peT_ref[...],
                          preferred_element_type=jnp.float32) + bp1_ref[...])    # (H, tq*N)
    ps = (jnp.dot(wp2T_ref[...], h1.astype(jnp.bfloat16),
                  preferred_element_type=jnp.float32) + bp2_ref[...])            # (group, tq*N)
    pos_sim = ps.reshape(HG, tq, N)

    # attention: one batched similarity over all 16 (head, group) pairs with
    # the block-diagonal event mask fused in as an additive log-mask, followed
    # by a single softmax pass (EUP reciprocal instead of a divide).
    sim = jnp.einsum('hnd,hmd->hnm', q, k, preferred_element_type=jnp.float32)   # (HG,tq,N)
    sim = sim + pos_sim + maskb_ref[...].astype(jnp.float32)[None, :, :]
    p = jnp.exp(sim - jnp.max(sim, axis=-1, keepdims=True))
    sm = p * pl.reciprocal(jnp.sum(p, axis=-1, keepdims=True), approx=True)

    # batched context aggregation, one relayout to (tq, H)
    ctx = jnp.einsum('hnm,hmd->hnd', sm, v, preferred_element_type=jnp.float32)  # (HG,tq,dg)
    ctx = jnp.swapaxes(ctx, 0, 1).reshape(tq, H)

    # lane-dense (tq, 2H) output tile: [relu(ctx), event_feats]
    out_ref[...] = jnp.concatenate([jnp.maximum(ctx, 0.0), ef_t], axis=1)


# -------------------- parameter init ----------------------------------------
def init_params(key, feature_dim, hidden_dim, group):
    D = hidden_dim // NUM_HEADS
    ks = jax.random.split(key, 6)

    def lin(k, fin, fout, scale=0.05):
        kw, kb = jax.random.split(k)
        w = (jax.random.normal(kw, (fin, fout)) * scale).astype(jnp.float32)
        b = (jax.random.normal(kb, (fout,)) * scale).astype(jnp.float32)
        return w, b

    wpre, bpre = lin(ks[0], feature_dim, hidden_dim)

    def heads(k):
        kws = jax.random.split(k, NUM_HEADS)
        ws, bs = zip(*(lin(kk, D, D) for kk in kws))
        return jnp.stack(ws), jnp.stack(bs)

    wq, bq = heads(ks[1])
    wk, bk = heads(ks[2])
    wv, bv = heads(ks[3])
    wp1, bp1 = lin(ks[4], hidden_dim, hidden_dim)
    wp2, bp2 = lin(ks[5], hidden_dim, group)

    return dict(wpre=wpre, bpre=bpre[None, :],
                wq=wq, bq=bq, wk=wk, bk=bk, wv=wv, bv=bv,
                wp1=wp1, bp1=bp1[None, :], wp2=wp2, bp2=bp2[None, :])


def fuse_qkv_block_diag(params, hidden_dim, group):
    """Block-diagonal (H, 3H) weight + (1, 3H) bias; 1/sqrt(dg) folded into Q."""
    H = hidden_dim
    D = H // NUM_HEADS
    dg = D // (group // NUM_HEADS)
    scale = 1.0 / math.sqrt(dg)
    wq, wk, wv = (np.asarray(params[n]) for n in ('wq', 'wk', 'wv'))
    bq, bk, bv = (np.asarray(params[n]) for n in ('bq', 'bk', 'bv'))
    wqkv = np.zeros((H, 3 * H), np.float32)
    bqkv = np.zeros((1, 3 * H), np.float32)
    for h in range(NUM_HEADS):
        r = slice(h * D, (h + 1) * D)
        wqkv[r, h * D:(h + 1) * D] = wq[h] * scale
        wqkv[r, H + h * D:H + (h + 1) * D] = wk[h]
        wqkv[r, 2 * H + h * D:2 * H + (h + 1) * D] = wv[h]
        bqkv[0, h * D:(h + 1) * D] = bq[h] * scale
        bqkv[0, H + h * D:H + (h + 1) * D] = bk[h]
        bqkv[0, 2 * H + h * D:2 * H + (h + 1) * D] = bv[h]
    return wqkv, bqkv


# -------------------- host-side preprocessing --------------------------------
def preprocess(feats, vid_idx, featstamps, event_seq_idx, timestamps,
               vid_time_len, hidden_dim):
    clip_feats, clip_mask = get_clip_level_feats_np(feats, vid_idx, featstamps)
    event_idx_all, mask, ts_exp, dur_exp = build_expansion(
        vid_idx, event_seq_idx, timestamps, vid_time_len)
    # masked mean pooling on host (ragged clip data already lives in numpy)
    pooled_all = ((clip_feats * clip_mask[:, :, None]).sum(1)
                  / (clip_mask.sum(1, keepdims=True) + 1e-5)).astype(np.float32)
    pooled_e = pooled_all[event_idx_all]
    N = mask.shape[0]
    pos_matrix = extract_position_matrix(np.array(ts_exp, np.float32), N)
    pos_emb = extract_position_embedding(pos_matrix, hidden_dim).astype(np.float32)
    posbin = build_pos_binary(ts_exp, dur_exp)
    return pooled_e, mask, pos_emb, posbin, clip_feats, clip_mask


def _pick_tq(n_pad, hidden_dim):
    # keep per-tile (H, tq*n_pad) pos-MLP intermediates around <= 8 MiB f32
    budget_cols = max(8 * n_pad, (8 * 1024 * 1024) // (4 * hidden_dim))
    for cand in (256, 128, 64, 32, 16, 8):
        if n_pad % cand == 0 and cand * n_pad <= budget_cols:
            return cand
    return 8


# -------------------- forward wrapper ----------------------------------------
def tsrm_forward(params, feats, vid_idx, featstamps, event_seq_idx,
                 timestamps, vid_time_len, hidden_dim, group, tq=None):
    (pooled_e, mask, pos_emb, posbin,
     clip_feats, clip_mask) = preprocess(feats, vid_idx, featstamps,
                                         event_seq_idx, timestamps,
                                         vid_time_len, hidden_dim)
    N = mask.shape[0]
    H = hidden_dim
    F = pooled_e.shape[1]

    # pad the event dim to a multiple of 16 so every tile is (8,128)-legal
    N_pad = -(-N // 16) * 16
    if tq is None:
        tq = _pick_tq(N_pad, H)
    assert tq % 8 == 0 and N_pad % tq == 0

    pooled_p = np.zeros((N_pad, F), np.float32)
    pooled_p[:N] = pooled_e
    mask_p = np.zeros((N_pad, N_pad), np.float32)
    mask_p[:N, :N] = mask
    mask_bias = (mask_p - 1.0) * 1e9                       # additive log-mask
    pe_p = np.zeros((N_pad, N_pad, H), np.float32)
    pe_p[:N, :N] = pos_emb
    peT = np.ascontiguousarray(pe_p.reshape(N_pad * N_pad, H).T)   # (H, N*N)

    wqkv, bqkv = fuse_qkv_block_diag(params, H, group)
    wp1T = np.ascontiguousarray(np.asarray(params['wp1']).T)       # (H, H)
    wp2T = np.ascontiguousarray(np.asarray(params['wp2']).T)       # (group, H)
    bp1c = np.asarray(params['bp1']).reshape(H, 1)
    bp2c = np.asarray(params['bp2']).reshape(group, 1)

    grid = (N_pad // tq,)
    out_pad = pl.pallas_call(
        functools.partial(_tsrm_kernel, group=group),
        out_shape=jax.ShapeDtypeStruct((N_pad, 2 * H), jnp.float32),
        grid=grid,
        in_specs=[
            pl.BlockSpec((N_pad, F), lambda i: (0, 0)),            # pooled (resident)
            pl.BlockSpec((F, H), lambda i: (0, 0)),                # wpre
            pl.BlockSpec((1, H), lambda i: (0, 0)),                # bpre
            pl.BlockSpec((H, 3 * H), lambda i: (0, 0)),            # wqkv (scale folded)
            pl.BlockSpec((1, 3 * H), lambda i: (0, 0)),            # bqkv
            pl.BlockSpec((tq, N_pad), lambda i: (i, 0)),           # mask log-bias tile
            pl.BlockSpec((H, tq * N_pad), lambda i: (0, i)),       # pos_emb^T tile
            pl.BlockSpec((H, H), lambda i: (0, 0)),                # wp1^T
            pl.BlockSpec((H, 1), lambda i: (0, 0)),                # bp1 column
            pl.BlockSpec((group, H), lambda i: (0, 0)),            # wp2^T
            pl.BlockSpec((group, 1), lambda i: (0, 0)),            # bp2 column
        ],
        out_specs=pl.BlockSpec((tq, 2 * H), lambda i: (i, 0)),
        compiler_params=pltpu.CompilerParams(
            dimension_semantics=("parallel",),
            vmem_limit_bytes=48 * 1024 * 1024),
    )(jnp.asarray(pooled_p),
      params['wpre'], params['bpre'],
      jnp.asarray(wqkv), jnp.asarray(bqkv),
      jnp.asarray(mask_bias).astype(jnp.bfloat16),
      jnp.asarray(peT).astype(jnp.bfloat16),
      jnp.asarray(wp1T).astype(jnp.bfloat16),
      jnp.asarray(bp1c),
      jnp.asarray(wp2T).astype(jnp.bfloat16),
      jnp.asarray(bp2c))

    # drop padded rows; posbin is a host-built binary constant -> concat outside
    event_ctx = jnp.concatenate([out_pad[:N], jnp.asarray(posbin)], axis=1)
    return event_ctx, jnp.asarray(clip_feats), jnp.asarray(clip_mask)


# -------------------- pure numpy reference (spec-faithful) ------------------
def ref_forward(params, pooled, mask, pos_emb, posbin, hidden_dim, group):
    p = {k: np.asarray(v) for k, v in params.items()}
    N = mask.shape[0]
    D = hidden_dim // NUM_HEADS
    G = group // NUM_HEADS
    dg = D // G
    ef = np.maximum(pooled @ p['wpre'] + p['bpre'], 0.0)
    pe_flat = pos_emb.reshape(-1, hidden_dim)
    pos_sim = (np.tanh(pe_flat @ p['wp1'] + p['bp1']) @ p['wp2'] + p['bp2']
               ).reshape(N, N, group).transpose(2, 0, 1)
    pieces = []
    for h in range(NUM_HEADS):
        x = ef[:, h * D:(h + 1) * D]
        q = x @ p['wq'][h] + p['bq'][h]
        k = x @ p['wk'][h] + p['bk'][h]
        v = x @ p['wv'][h] + p['bv'][h]
        for g in range(G):
            qg = q[:, g * dg:(g + 1) * dg]
            kg = k[:, g * dg:(g + 1) * dg]
            vg = v[:, g * dg:(g + 1) * dg]
            sim = qg @ kg.T / math.sqrt(dg) + pos_sim[h * G + g]
            sim = np.exp(sim - sim.max(axis=1, keepdims=True))
            sim = sim / sim.sum(axis=1, keepdims=True)
            sm = sim * mask
            sm = sm / (1e-5 + sm.sum(axis=1, keepdims=True))
            pieces.append(sm @ vg)
    ctx = np.concatenate(pieces, axis=1)
    return np.concatenate([np.maximum(ctx, 0.0), ef, posbin], axis=1)


def _check(params, feats, vid_idx, featstamps, event_seq_idx, timestamps,
           vid_time_len, hidden_dim, group, tq=None):
    event_ctx, _, _ = tsrm_forward(params, feats, vid_idx, featstamps,
                                   event_seq_idx, timestamps, vid_time_len,
                                   hidden_dim, group, tq=tq)
    jax.block_until_ready(event_ctx)
    pooled_e, mask, pos_emb, posbin, _, _ = preprocess(
        feats, vid_idx, featstamps, event_seq_idx, timestamps, vid_time_len,
        hidden_dim)
    ref = ref_forward(params, pooled_e, mask, pos_emb, posbin,
                      hidden_dim, group)
    np.testing.assert_allclose(np.asarray(event_ctx), ref, atol=2e-3, rtol=2e-3)


# -------------------- main ----------------------------------------------------
if __name__ == "__main__":
    feature_dim, hidden_dim, group = 32, 64, 16   # group_num=16 -> indiv_head_group=2

    key = jax.random.PRNGKey(0)
    kf1, kf2, kp = jax.random.split(key, 3)
    params = init_params(kp, feature_dim, hidden_dim, group)

    # ---- test 1: original demo (5 events -> single query tile) ----
    feats1 = np.asarray(jax.random.normal(kf1, (2, 12, feature_dim),
                                          dtype=jnp.float32))
    vid_idx1 = np.array([0, 0, 0, 1, 1])
    featstamps1 = [(0, 3), (2, 6), (5, 9), (1, 4), (6, 11)]
    event_seq_idx1 = [np.array([[0, 1, 2]]), np.array([[0, 1]])]
    timestamps1 = [(0.0, 10.0), (5.0, 20.0), (15.0, 30.0), (2.0, 8.0), (10.0, 25.0)]
    vid_time_len1 = np.array([30.0, 25.0], np.float32)
    _check(params, feats1, vid_idx1, featstamps1, event_seq_idx1, timestamps1,
           vid_time_len1, hidden_dim, group)

    # ---- test 2: 10 events, tq forced to 8 -> exercises grid=2 (parallel axis) ----
    feats2 = np.asarray(jax.random.normal(kf2, (3, 14, feature_dim),
                                          dtype=jnp.float32))
    vid_idx2 = np.array([0, 0, 0, 0, 1, 1, 1, 2, 2, 2])
    featstamps2 = [(0, 3), (2, 6), (5, 9), (8, 12), (1, 4), (6, 10), (9, 13),
                   (0, 5), (4, 9), (7, 13)]
    event_seq_idx2 = [np.array([[0, 1, 2, 3]]), np.array([[0, 1, 2]]),
                      np.array([[0, 1, 2]])]
    timestamps2 = [(0.0, 10.0), (5.0, 20.0), (15.0, 30.0), (22.0, 35.0),
                   (2.0, 8.0), (10.0, 20.0), (18.0, 25.0),
                   (0.0, 12.0), (8.0, 20.0), (15.0, 32.0)]
    vid_time_len2 = np.array([35.0, 25.0, 32.0], np.float32)
    _check(params, feats2, vid_idx2, featstamps2, event_seq_idx2, timestamps2,
           vid_time_len2, hidden_dim, group, tq=8)

    print("KERNEL_OK")
</pallas_src>

<mosaic_0001>
module attributes {stable_mosaic.version = 11 : i64} {
  func.func @_tsrm_kernel(%arg0: i32, %arg1: memref<16x32xf32, #tpu.memory_space<vmem>>, %arg2: memref<32x64xf32, #tpu.memory_space<vmem>>, %arg3: memref<1x64xf32, #tpu.memory_space<vmem>>, %arg4: memref<64x192xf32, #tpu.memory_space<vmem>>, %arg5: memref<1x192xf32, #tpu.memory_space<vmem>>, %arg6: memref<16x16xbf16, #tpu.memory_space<vmem>>, %arg7: memref<64x256xbf16, #tpu.memory_space<vmem>>, %arg8: memref<64x64xbf16, #tpu.memory_space<vmem>>, %arg9: memref<64x1xf32, #tpu.memory_space<vmem>>, %arg10: memref<16x64xbf16, #tpu.memory_space<vmem>>, %arg11: memref<16x1xf32, #tpu.memory_space<vmem>>, %arg12: memref<16x128xf32, #tpu.memory_space<vmem>>) attributes {dimension_semantics = [#tpu.dimension_semantics<parallel>], iteration_bounds = array<i64: 1>, scalar_prefetch = 0 : i64, scratch_operands = 0 : i64, tpu.core_type = #tpu.core_type<tc>, window_params = [{pipeline_mode = #tpu.pipeline_mode<synchronous>, transform_indices = @transform_0, window_bounds = array<i64: 16, 32>}, {pipeline_mode = #tpu.pipeline_mode<synchronous>, transform_indices = @transform_1, window_bounds = array<i64: 32, 64>}, {pipeline_mode = #tpu.pipeline_mode<synchronous>, transform_indices = @transform_2, window_bounds = array<i64: 1, 64>}, {pipeline_mode = #tpu.pipeline_mode<synchronous>, transform_indices = @transform_3, window_bounds = array<i64: 64, 192>}, {pipeline_mode = #tpu.pipeline_mode<synchronous>, transform_indices = @transform_4, window_bounds = array<i64: 1, 192>}, {transform_indices = @transform_5, window_bounds = array<i64: 16, 16>}, {transform_indices = @transform_6, window_bounds = array<i64: 64, 256>}, {pipeline_mode = #tpu.pipeline_mode<synchronous>, transform_indices = @transform_7, window_bounds = array<i64: 64, 64>}, {pipeline_mode = #tpu.pipeline_mode<synchronous>, transform_indices = @transform_8, window_bounds = array<i64: 64, 1>}, {pipeline_mode = #tpu.pipeline_mode<synchronous>, transform_indices = @transform_9, window_bounds = array<i64: 16, 64>}, {pipeline_mode = #tpu.pipeline_mode<synchronous>, transform_indices = @transform_10, window_bounds = array<i64: 16, 1>}, {transform_indices = @transform_11, window_bounds = array<i64: 16, 128>}]} {
    %c16_i32 = arith.constant 16 : i32
    %0 = arith.muli %arg0, %c16_i32 : i32
    %1 = tpu.assume_multiple %0, 8 : i32
    %c0 = arith.constant 0 : index
    %c0_0 = arith.constant 0 : index
    %2 = vector.load %arg2[%c0, %c0_0] : memref<32x64xf32, #tpu.memory_space<vmem>>, vector<32x64xf32>
    %c0_1 = arith.constant 0 : index
    %c0_2 = arith.constant 0 : index
    %3 = vector.load %arg3[%c0_1, %c0_2] : memref<1x64xf32, #tpu.memory_space<vmem>>, vector<1x64xf32>
    %c0_3 = arith.constant 0 : index
    %c0_4 = arith.constant 0 : index
    %4 = vector.load %arg4[%c0_3, %c0_4] : memref<64x192xf32, #tpu.memory_space<vmem>>, vector<64x192xf32>
    %c0_5 = arith.constant 0 : index
    %c0_6 = arith.constant 0 : index
    %5 = vector.load %arg5[%c0_5, %c0_6] : memref<1x192xf32, #tpu.memory_space<vmem>>, vector<1x192xf32>
    %c0_7 = arith.constant 0 : index
    %c0_8 = arith.constant 0 : index
    %6 = vector.load %arg1[%c0_7, %c0_8] : memref<16x32xf32, #tpu.memory_space<vmem>>, vector<16x32xf32>
    %cst = arith.constant dense<0.000000e+00> : vector<16x64xf32>
    %7 = tpu.matmul %6, %2, %cst {dimension_numbers = #tpu.dot_dimension_numbers<[1], [0], [0], [1], [0, 0, 1, 1], [], []>} : vector<16x32xf32>, vector<32x64xf32>, vector<16x64xf32> -> vector<16x64xf32>
    %8 = vector.broadcast %3 : vector<1x64xf32> to vector<16x64xf32>
    %9 = arith.addf %7, %8 : vector<16x64xf32>
    %cst_9 = arith.constant 0.000000e+00 : f32
    %10 = vector.broadcast %cst_9 : f32 to vector<16x64xf32>
    %11 = arith.maximumf %9, %10 : vector<16x64xf32>
    %12 = vector.extract_strided_slice %4 {offsets = [0, 64], sizes = [64, 128], strides = [1, 1]} : vector<64x192xf32> to vector<64x128xf32>
    %cst_10 = arith.constant dense<0.000000e+00> : vector<16x128xf32>
    %13 = tpu.matmul %11, %12, %cst_10 {dimension_numbers = #tpu.dot_dimension_numbers<[1], [0], [0], [1], [0, 0, 1, 1], [], []>} : vector<16x64xf32>, vector<64x128xf32>, vector<16x128xf32> -> vector<16x128xf32>
    %14 = vector.extract_strided_slice %5 {offsets = [0, 64], sizes = [1, 128], strides = [1, 1]} : vector<1x192xf32> to vector<1x128xf32>
    %15 = vector.broadcast %14 : vector<1x128xf32> to vector<16x128xf32>
    %16 = arith.addf %13, %15 : vector<16x128xf32>
    %17 = vector.extract_strided_slice %16 {offsets = [0, 0], sizes = [16, 64], strides = [1, 1]} : vector<16x128xf32> to vector<16x64xf32>
    %18 = vector.shape_cast %17 : vector<16x64xf32> to vector<16x16x4xf32>
    %19 = tpu.transpose %18, [1, 0, 2] : vector<16x16x4xf32> -> vector<16x16x4xf32>
    %20 = vector.extract_strided_slice %16 {offsets = [0, 64], sizes = [16, 64], strides = [1, 1]} : vector<16x128xf32> to vector<16x64xf32>
    %21 = vector.shape_cast %20 : vector<16x64xf32> to vector<16x16x4xf32>
    %22 = tpu.transpose %21, [1, 0, 2] : vector<16x16x4xf32> -> vector<16x16x4xf32>
    %23 = arith.index_cast %1 : i32 to index
    %c0_11 = arith.constant 0 : index
    %24 = vector.load %arg1[%23, %c0_11] : memref<16x32xf32, #tpu.memory_space<vmem>>, vector<16x32xf32>
    %cst_12 = arith.constant dense<0.000000e+00> : vector<16x64xf32>
    %25 = tpu.matmul %24, %2, %cst_12 {dimension_numbers = #tpu.dot_dimension_numbers<[1], [0], [0], [1], [0, 0, 1, 1], [], []>} : vector<16x32xf32>, vector<32x64xf32>, vector<16x64xf32> -> vector<16x64xf32>
    %26 = vector.broadcast %3 : vector<1x64xf32> to vector<16x64xf32>
    %27 = arith.addf %25, %26 : vector<16x64xf32>
    %cst_13 = arith.constant 0.000000e+00 : f32
    %28 = vector.broadcast %cst_13 : f32 to vector<16x64xf32>
    %29 = arith.maximumf %27, %28 : vector<16x64xf32>
    %30 = vector.extract_strided_slice %4 {offsets = [0, 0], sizes = [64, 64], strides = [1, 1]} : vector<64x192xf32> to vector<64x64xf32>
    %cst_14 = arith.constant dense<0.000000e+00> : vector<16x64xf32>
    %31 = tpu.matmul %29, %30, %cst_14 {dimension_numbers = #tpu.dot_dimension_numbers<[1], [0], [0], [1], [0, 0, 1, 1], [], []>} : vector<16x64xf32>, vector<64x64xf32>, vector<16x64xf32> -> vector<16x64xf32>
    %32 = vector.extract_strided_slice %5 {offsets = [0, 0], sizes = [1, 64], strides = [1, 1]} : vector<1x192xf32> to vector<1x64xf32>
    %33 = vector.broadcast %32 : vector<1x64xf32> to vector<16x64xf32>
    %34 = arith.addf %31, %33 : vector<16x64xf32>
    %35 = vector.shape_cast %34 : vector<16x64xf32> to vector<16x16x4xf32>
    %36 = tpu.transpose %35, [1, 0, 2] : vector<16x16x4xf32> -> vector<16x16x4xf32>
    %c0_15 = arith.constant 0 : index
    %c0_16 = arith.constant 0 : index
    %37 = vector.load %arg8[%c0_15, %c0_16] : memref<64x64xbf16, #tpu.memory_space<vmem>>, vector<64x64xbf16>
    %c0_17 = arith.constant 0 : index
    %c0_18 = arith.constant 0 : index
    %38 = vector.load %arg7[%c0_17, %c0_18] : memref<64x256xbf16, #tpu.memory_space<vmem>>, vector<64x256xbf16>
    %cst_19 = arith.constant dense<0.000000e+00> : vector<64x256xf32>
    %39 = tpu.matmul %37, %38, %cst_19 {dimension_numbers = #tpu.dot_dimension_numbers<[1], [0], [0], [1], [0, 0, 1, 1], [], []>} : vector<64x64xbf16>, vector<64x256xbf16>, vector<64x256xf32> -> vector<64x256xf32>
    %c0_20 = arith.constant 0 : index
    %c0_21 = arith.constant 0 : index
    %40 = vector.load %arg9[%c0_20, %c0_21] : memref<64x1xf32, #tpu.memory_space<vmem>>, vector<64x1xf32>
    %41 = vector.broadcast %40 : vector<64x1xf32> to vector<64x256xf32>
    %42 = arith.addf %39, %41 : vector<64x256xf32>
    %43 = math.tanh %42 : vector<64x256xf32>
    %c0_22 = arith.constant 0 : index
    %c0_23 = arith.constant 0 : index
    %44 = vector.load %arg10[%c0_22, %c0_23] : memref<16x64xbf16, #tpu.memory_space<vmem>>, vector<16x64xbf16>
    %45 = arith.truncf %43 : vector<64x256xf32> to vector<64x256xbf16>
    %cst_24 = arith.constant dense<0.000000e+00> : vector<16x256xf32>
    %46 = tpu.matmul %44, %45, %cst_24 {dimension_numbers = #tpu.dot_dimension_numbers<[1], [0], [0], [1], [0, 0, 1, 1], [], []>} : vector<16x64xbf16>, vector<64x256xbf16>, vector<16x256xf32> -> vector<16x256xf32>
    %c0_25 = arith.constant 0 : index
    %c0_26 = arith.constant 0 : index
    %47 = vector.load %arg11[%c0_25, %c0_26] : memref<16x1xf32, #tpu.memory_space<vmem>>, vector<16x1xf32>
    %48 = vector.broadcast %47 : vector<16x1xf32> to vector<16x256xf32>
    %49 = arith.addf %46, %48 : vector<16x256xf32>
    %50 = vector.shape_cast %49 : vector<16x256xf32> to vector<16x16x16xf32>
    "tpu.trace_start"() <{level = 10 : i32, message = "hnd,hmd->hnm"}> : () -> ()
    %cst_27 = arith.constant dense<0.000000e+00> : vector<16x16x16xf32>
    %51 = tpu.matmul %36, %19, %cst_27 {dimension_numbers = #tpu.dot_dimension_numbers<[2], [2], [1], [1], [0, 0, 0, 1, 1, 1], [0], [0]>} : vector<16x16x4xf32>, vector<16x16x4xf32>, vector<16x16x16xf32> -> vector<16x16x16xf32>
    "tpu.trace_stop"() : () -> ()
    %52 = arith.addf %51, %50 : vector<16x16x16xf32>
    %c0_28 = arith.constant 0 : index
    %c0_29 = arith.constant 0 : index
    %53 = vector.load %arg6[%c0_28, %c0_29] : memref<16x16xbf16, #tpu.memory_space<vmem>>, vector<16x16xbf16>
    %54 = arith.extf %53 : vector<16x16xbf16> to vector<16x16xf32>
    %55 = vector.shape_cast %54 : vector<16x16xf32> to vector<1x16x16xf32>
    %56 = vector.broadcast %55 : vector<1x16x16xf32> to vector<16x16x16xf32>
    %57 = arith.addf %52, %56 : vector<16x16x16xf32>
    %cst_30 = arith.constant dense<0xFF800000> : vector<16x16xf32>
    %58 = vector.multi_reduction <maximumf>, %57, %cst_30 [2] : vector<16x16x16xf32> to vector<16x16xf32>
    %59 = vector.shape_cast %58 : vector<16x16xf32> to vector<16x16x1xf32>
    %60 = vector.broadcast %59 : vector<16x16x1xf32> to vector<16x16x16xf32>
    %61 = arith.subf %57, %60 : vector<16x16x16xf32>
    %62 = math.exp %61 : vector<16x16x16xf32>
    %cst_31 = arith.constant dense<0.000000e+00> : vector<16x16xf32>
    %63 = vector.multi_reduction <add>, %62, %cst_31 [2] : vector<16x16x16xf32> to vector<16x16xf32>
    %64 = vector.shape_cast %63 : vector<16x16xf32> to vector<16x16x1xf32>
    %65 = tpu.reciprocal %64 {approx = true} : vector<16x16x1xf32> -> vector<16x16x1xf32>
    %66 = vector.broadcast %65 : vector<16x16x1xf32> to vector<16x16x16xf32>
    %67 = arith.mulf %62, %66 : vector<16x16x16xf32>
    "tpu.trace_start"() <{level = 10 : i32, message = "hnm,hmd->hnd"}> : () -> ()
    %cst_32 = arith.constant dense<0.000000e+00> : vector<16x16x4xf32>
    %68 = tpu.matmul %67, %22, %cst_32 {dimension_numbers = #tpu.dot_dimension_numbers<[2], [1], [1], [2], [0, 0, 0, 1, 1, 2], [0], [0]>} : vector<16x16x16xf32>, vector<16x16x4xf32>, vector<16x16x4xf32> -> vector<16x16x4xf32>
    "tpu.trace_stop"() : () -> ()
    %69 = tpu.transpose %68, [1, 0, 2] : vector<16x16x4xf32> -> vector<16x16x4xf32>
    %70 = vector.shape_cast %69 : vector<16x16x4xf32> to vector<16x64xf32>
    %cst_33 = arith.constant 0.000000e+00 : f32
    %71 = vector.broadcast %cst_33 : f32 to vector<16x64xf32>
    %72 = arith.maximumf %70, %71 : vector<16x64xf32>
    %73 = tpu.concatenate %72, %29 in 1 : vector<16x64xf32>, vector<16x64xf32> -> vector<16x128xf32>
    %c0_34 = arith.constant 0 : index
    %c0_35 = arith.constant 0 : index
    %74 = vector.load %arg12[%c0_34, %c0_35] : memref<16x128xf32, #tpu.memory_space<vmem>>, vector<16x128xf32>
    tpu.vector_store %arg12[%c0_34, %c0_35], %73 {strides = array<i32>} : memref<16x128xf32, #tpu.memory_space<vmem>>, vector<16x128xf32>,
    return
  }
  func.func @transform_0(%arg0: i32) -> (i32, i32) {
    %c0_i32 = arith.constant 0 : i32
    %c0_i32_0 = arith.constant 0 : i32
    %c0_i32_1 = arith.constant 0 : i32
    return %c0_i32, %c0_i32_0 : i32, i32
  }
  func.func @transform_1(%arg0: i32) -> (i32, i32) {
    %c0_i32 = arith.constant 0 : i32
    %c0_i32_0 = arith.constant 0 : i32
    %c0_i32_1 = arith.constant 0 : i32
    return %c0_i32, %c0_i32_0 : i32, i32
  }
  func.func @transform_2(%arg0: i32) -> (i32, i32) {
    %c0_i32 = arith.constant 0 : i32
    %c0_i32_0 = arith.constant 0 : i32
    %c0_i32_1 = arith.constant 0 : i32
    return %c0_i32, %c0_i32_0 : i32, i32
  }
  func.func @transform_3(%arg0: i32) -> (i32, i32) {
    %c0_i32 = arith.constant 0 : i32
    %c0_i32_0 = arith.constant 0 : i32
    %c0_i32_1 = arith.constant 0 : i32
    return %c0_i32, %c0_i32_0 : i32, i32
  }
  func.func @transform_4(%arg0: i32) -> (i32, i32) {
    %c0_i32 = arith.constant 0 : i32
    %c0_i32_0 = arith.constant 0 : i32
    %c0_i32_1 = arith.constant 0 : i32
    return %c0_i32, %c0_i32_0 : i32, i32
  }
  func.func @transform_5(%arg0: i32) -> (i32, i32) {
    %c0_i32 = arith.constant 0 : i32
    %c0_i32_0 = arith.constant 0 : i32
    return %arg0, %c0_i32 : i32, i32
  }
  func.func @transform_6(%arg0: i32) -> (i32, i32) {
    %c0_i32 = arith.constant 0 : i32
    %c0_i32_0 = arith.constant 0 : i32
    return %c0_i32, %arg0 : i32, i32
  }
  func.func @transform_7(%arg0: i32) -> (i32, i32) {
    %c0_i32 = arith.constant 0 : i32
    %c0_i32_0 = arith.constant 0 : i32
    %c0_i32_1 = arith.constant 0 : i32
    return %c0_i32, %c0_i32_0 : i32, i32
  }
  func.func @transform_8(%arg0: i32) -> (i32, i32) {
    %c0_i32 = arith.constant 0 : i32
    %c0_i32_0 = arith.constant 0 : i32
    %c0_i32_1 = arith.constant 0 : i32
    return %c0_i32, %c0_i32_0 : i32, i32
  }
  func.func @transform_9(%arg0: i32) -> (i32, i32) {
    %c0_i32 = arith.constant 0 : i32
    %c0_i32_0 = arith.constant 0 : i32
    %c0_i32_1 = arith.constant 0 : i32
    return %c0_i32, %c0_i32_0 : i32, i32
  }
  func.func @transform_10(%arg0: i32) -> (i32, i32) {
    %c0_i32 = arith.constant 0 : i32
    %c0_i32_0 = arith.constant 0 : i32
    %c0_i32_1 = arith.constant 0 : i32
    return %c0_i32, %c0_i32_0 : i32, i32
  }
  func.func @transform_11(%arg0: i32) -> (i32, i32) {
    %c0_i32 = arith.constant 0 : i32
    %c0_i32_0 = arith.constant 0 : i32
    return %arg0, %c0_i32 : i32, i32
  }
}

</mosaic_0001>

<bundles_post_ra>
// kernel: tpu_custom_call.1
= control target key start
LH: loop header
LB: loop body
LE: loop exit
PB: predicated region body
PF: predicated region fallthrough
CT: control target
= control target key end

     0   :  { %16 = vsyncpa [#allocation3], 0  ;;  %s11779_s0 = inlined_call_operand.vmem [shape: f32[16,32], index: 0, kind: input, shape index: {}]   ;;  %s11780_s1 = inlined_call_operand.hbm [shape: f32[32,64], index: 1, kind: input, shape index: {}]   ;;  %s11781_s2 = inlined_call_operand.vmem [shape: f32[1,64], index: 2, kind: input, shape index: {}]   ;;  %s11782_s3 = inlined_call_operand.hbm [shape: f32[64,192], index: 3, kind: input, shape index: {}]   ;;  %s11783_s4 = inlined_call_operand.vmem [shape: f32[1,192], index: 4, kind: input, shape index: {}]   ;;  %s11784_s5 = inlined_call_operand.hbm [shape: bf16[16,16], index: 5, kind: input, shape index: {}]   ;;  %s11785_s6 = inlined_call_operand.vmem [shape: bf16[64,256], index: 6, kind: input, shape index: {}]   ;;  %s11786_s7 = inlined_call_operand.hbm [shape: bf16[64,64], index: 7, kind: input, shape index: {}]   ;;  %s11787_s8 = inlined_call_operand.vmem [shape: f32[64,1], index: 8, kind: input, shape index: {}]   ;;  %s11788_s9 = inlined_call_operand.hbm [shape: bf16[16,64], index: 9, kind: input, shape index: {}]   ;;  %s11789_s10 = inlined_call_operand.vmem [shape: f32[16,1], index: 10, kind: input, shape index: {}]   ;;  %s11790_s11 = inlined_call_operand.hbm [shape: f32[16,128], index: 11, kind: output, shape index: {}]  }
   0x1   :  { %17 = vsyncpa [#allocation6], 0 }
   0x2   :  { %18 = vsyncpa [#allocation9], 0  ;;  %s41_s19 = sshll.u32 %s11782_s3, 4  ;;  %s42_s19 = int_to_ptr.hbm [resolvable:$true] %s41_s19 }
   0x3   :  { %19 = vsyncpa [#allocation4], 0  ;;  %s7284_s20 = smov [#allocation5]   ;;  %s7285_s22 = smov 256  }
   0x4   :  { %s43_s21 = sshll.u32 %s7284_s20, 4  ;;  %s7286_s23 = smov 16   ;;  %s44_s21 = int_to_ptr.vmem [resolvable:$true] %s43_s21 }
   0x5   :  { %49 = dma.hbm_to_vmem [thread:$0]  %s42_s19, 2048, %s44_s21, [#allocation6], %s7285_s22, %s7285_s22, %s7286_s23  }
   0x6   :  { %s71_s26 = sshll.u32 %s11786_s7, 4  ;;  %s7287_s27 = smov [#allocation8]   ;;  %s72_s26 = int_to_ptr.hbm [resolvable:$true] %s71_s26 }
   0x7   :  { %s73_s28 = sshll.u32 %s7287_s27, 4  ;;  %s26_s3 = sshll.u32 %s11780_s1, 4  ;;  %s74_s28 = int_to_ptr.vmem [resolvable:$true] %s73_s28  ;;  %s27_s3 = int_to_ptr.hbm [resolvable:$true] %s26_s3 }
   0x8   :  { %s7288_s12 = smov 64   ;;  %s7289_s13 = smov 4  }
   0x9   :  { %79 = dma.hbm_to_vmem [thread:$0]  %s72_s26, 512, %s74_s28, [#allocation9], %s7288_s12, %s7288_s12, %s7289_s13  }
   0xa   :  { %s7290_s14 = smov [#allocation2]   ;;  %s56_s17 = sshll.u32 %s11784_s5, 4  ;;  %s57_s17 = int_to_ptr.hbm [resolvable:$true] %s56_s17 }
   0xb   :  { %s28_s15 = sshll.u32 %s7290_s14, 4  ;;  %s7291_s18 = smov 128   ;;  %s29_s15 = int_to_ptr.vmem [resolvable:$true] %s28_s15 }
   0xc   :  { %s7292_s19 = smov 8   ;;  %s7293_s1 = smov [#allocation7]  }
   0xd   :  { %34 = dma.hbm_to_vmem [thread:$0]  %s27_s3, 512, %s29_s15, [#allocation3], %s7291_s18, %s7291_s18, %s7292_s19  }
   0xe   :  { %s58_s20 = sshll.u32 %s7293_s1, 4  ;;  %s86_s24 = sshll.u32 %s11788_s9, 4  ;;  %s59_s20 = int_to_ptr.vmem [resolvable:$true] %s58_s20  ;;  %s87_s24 = int_to_ptr.hbm [resolvable:$true] %s86_s24 }
   0xf   :  { %64 = dma.hbm_to_vmem [thread:$0]  %s57_s17, 128, %s59_s20, [#allocation6], %s7288_s12, %s7288_s12, %s7289_s13  }
  0x10   :  { %s7294_s5 = smov [#allocation10]  }
  0x11   :  { %s88_s25 = sshll.u32 %s7294_s5, 4  ;;  %s89_s25 = int_to_ptr.vmem [resolvable:$true] %s88_s25 }
  0x12   :  { %94 = dma.hbm_to_vmem [thread:$0]  %s87_s24, 128, %s89_s25, [#allocation9], %s7288_s12, %s7288_s12, %s7289_s13  }
  0x13   :  { %7276 = dma.done.wait [#allocation3], 512  }
  0x14   :  { %7277 = vsyncadd [#allocation3], 4294966784 }
  0x15   :  { %7278 = dma.done.wait [#allocation6], 2176  }
  0x16   :  { %7279 = vsyncadd [#allocation6], 4294965120 }
  0x17   :  { %7280 = dma.done.wait [#allocation9], 640  }
  0x18   :  { %7281 = vsyncadd [#allocation9], 4294966656  ;;  %v122_v0 = vld [vmem:[#allocation2 + $0x18] sm:$0xff]  ;;  %v138_v1 = vld [vmem:[#allocation5 + $0x70] sm:$0xff]  ;;  %vm146_vm0 = vcmask 261120   ;;  %vm229_vm1 = vcmask 523264  }
  0x19   :  { %v139_v2 = vld [vmem:[#allocation5 + $0x78] sm:$0xff]  ;;  %165 = vmatpush.msra.mxu0 %v122_v0  ;;  %2283 = vmatpush.msra.mxu2 %v122_v0  ;;  %v121_v4 = vld [vmem:[#allocation2 + $0x10] sm:$0xff]  ;;  %v120_v6 = vld [vmem:[#allocation2 + $0x8] sm:$0xff]  ;;  %v7295_v60 = vmov 0   ;;  %s7297_s22 = smov 120   ;;  %s7299_s24 = smov 104  }
  0x1a   :  { %v6848_v3 = vpack.i.bf16 %v139_v2, %v138_v1  ;;  %v134_v5 = vld [vmem:[#allocation5 + $0x50] sm:$0xff]  ;;  %v135_v7 = vld [vmem:[#allocation5 + $0x58] sm:$0xff]  ;;  %v119_v8 = vld [vmem:[#allocation2] sm:$0xff]  ;;  %2311 = vmatpush.msra.mxu3 %v138_v1  ;;  %6890 = vset.pattern.permute.xlu1 %v7295_v60  ;;  %s7300_s5 = smov 108   ;;  %s7301_s25 = smov 112   ;;  %vm374_vm2 = vcmask 1047556  }
  0x1b   :  { %166 = vmatpush.msra.mxu0 %v121_v4  ;;  %v6858_v9 = vpack.i.bf16 %v135_v7, %v134_v5  ;;  %v6673_v10 = vld [vmem:[%s11785_s6 + $0x30] sm:$0xf]  ;;  %v6800_v11 = vld [vmem:[%s11785_s6 + $0x34] sm:$0xf0]  ;;  %v6799_v12 = vld [vmem:[%s11785_s6 + $0x34] sm:$0xf]  ;;  %2284 = vmatpush.msra.mxu2 %v121_v4 }
  0x1c   :  { %6849 = vrot.lane.b32.xlu0 %v6848_v3, %s7288_s12  ;;  %v6675_v13 = vld [vmem:[%s11785_s6 + $0x38] sm:$0xf0]  ;;  %v136_v14 = vld [vmem:[#allocation5 + $0x60] sm:$0xff]  ;;  %v137_v15 = vld [vmem:[#allocation5 + $0x68] sm:$0xff]  ;;  %v6674_v17 = vor.u32 %v6800_v11, %v6673_v10  ;;  %6888 = vset.pattern.permute.xlu2 %v7295_v60  ;;  %s7302_s9 = smov 92   ;;  %s7303_s26 = smov 96  }
  0x1d   :  { %167 = vmatpush.msra.mxu0 %v120_v6  ;;  %6859 = vrot.lane.b32.xlu1 %v6858_v9, %s7288_s12  ;;  %v141_v16 = vld [vmem:[%s11779_s0] sm:$0xff]  ;;  %v6678_v19 = vor.u32 %v6799_v12, %v6675_v13  ;;  %v6798_v20 = vld [vmem:[%s11785_s6 + $0x24] sm:$0xf0]  ;;  %v6853_v23 = vpack.i.bf16 %v137_v15, %v136_v14  ;;  %v6667_v25 = vld [vmem:[%s11785_s6 + $0x28] sm:$0xf0]  ;;  %s7305_s27 = smov 80  }
  0x1e   :  { %v6665_v18 = vld [vmem:[%s11785_s6 + $0x20] sm:$0xf]  ;;  %2285 = vmatpush.msra.mxu2 %v120_v6  ;;  %v133_v22 = vld [vmem:[#allocation5 + $0x48] sm:$0xff]  ;;  %2312 = vmatpush.msra.mxu3 %v136_v14  ;;  %v6797_v24 = vld [vmem:[%s11785_s6 + $0x24] sm:$0xf]  ;;  %s7306_s28 = smov 84  }
  0x1f   :  { %v132_v21 = vld [vmem:[#allocation5 + $0x40] sm:$0xff]  ;;  %168 = vmatpush.msra.mxu0 %v119_v8  ;;  %v6666_v26 = vor.u32 %v6798_v20, %v6665_v18  ;;  %v6670_v28 = vor.u32 %v6797_v24, %v6667_v25  ;;  %v6657_v29 = vld [vmem:[%s11785_s6 + $0x10] sm:$0xf]  ;;  %v6796_v30 = vld [vmem:[%s11785_s6 + $0x14] sm:$0xf0]  ;;  %6889 = vset.pattern.permute.xlu0 %v7295_v60  ;;  %s7307_s29 = smov 88  }
  0x20   :  { %2286 = vmatpush.msra.mxu2 %v119_v8  ;;  %6623 = vmatmul.msk.f32.vlgmr.msra.gmra.mxu0 %vm146_vm0, %v141_v16  ;;  %v6863_v27 = vpack.i.bf16 %v133_v22, %v132_v21  ;;  %v6795_v31 = vld [vmem:[%s11785_s6 + $0x14] sm:$0xf]  ;;  %v6659_v32 = vld [vmem:[%s11785_s6 + $0x18] sm:$0xf0]  ;;  %v142_v37 = vld [vmem:[%s11779_s0 + $0x8] sm:$0xff]  ;;  %v6658_v38 = vor.u32 %v6796_v30, %v6657_v29  ;;  %s7296_s0 = smov 116  }
  0x21   :  { %6627 = vmatmul.msk.f32.vlgmr.msra.gmra.mxu2 %vm146_vm0, %v141_v16  ;;  %3454 = vmatpush.bf16.msrb.mxu0 %v6674_v17  ;;  %v130_v33 = vld [vmem:[#allocation5 + $0x30] sm:$0xff]  ;;  %v127_v35 = vld [vmem:[#allocation5 + $0x18] sm:$0xff]  ;;  %v6649_v39 = vld [vmem:[%s11785_s6] sm:$0xf]  ;;  %v6662_v41 = vor.u32 %v6795_v31, %v6659_v32  ;;  %s7308_s30 = smov 68   ;;  %s7309_s3 = smov 72  }
  0x22   :  { %3483 = vmatpush.bf16.msrb.mxu2 %v6678_v19  ;;  %2313 = vmatpush.msra.mxu3 %v134_v5  ;;  %v126_v34 = vld [vmem:[#allocation5 + $0x10] sm:$0xff]  ;;  %v131_v36 = vld [vmem:[#allocation5 + $0x38] sm:$0xff]  ;;  %v6794_v42 = vld [vmem:[%s11785_s6 + $0x4] sm:$0xf0]  ;;  %s7310_s14 = smov 76   ;;  %s7314_s7 = smov 48  }
  0x23   :  { %v6868_v40 = vpack.i.bf16 %v131_v36, %v130_v33  ;;  %v124_v43 = vld [vmem:[#allocation5] sm:$0xff]  ;;  %v125_v44 = vld [vmem:[#allocation5 + $0x8] sm:$0xff]  ;;  %v6878_v45 = vpack.i.bf16 %v127_v35, %v126_v34  ;;  %v6650_v50 = vor.u32 %v6794_v42, %v6649_v39  ;;  %v6790_v55 = vld [vmem:[#allocation8 + $0x8] sm:$0xff]  ;;  %vm4118_vm3 = vcmask 31744   ;;  %s7315_s17 = smov 12   ;;  %s7316_s1 = smov 20  }
  0x24   :  { %6854 = vrot.lane.b32.xlu0 %v6853_v23, %s7288_s12  ;;  %2314 = vmatpush.msra.mxu3 %v132_v21  ;;  %v6793_v46 = vld [vmem:[%s11785_s6 + $0x4] sm:$0xf]  ;;  %v6651_v47 = vld [vmem:[%s11785_s6 + $0x8] sm:$0xf0]  ;;  %v6883_v51 = vpack.i.bf16 %v125_v44, %v124_v43  ;;  %v140_v56 = vld [vmem:[%s11783_s4] sm:$0x3] }
  0x25   :  { %3455 = vmatpush.bf16.msrb.mxu0 %v6666_v26  ;;  %6864 = vrot.lane.b32.xlu1 %v6863_v27, %s7288_s12  ;;  %v128_v48 = vld [vmem:[#allocation5 + $0x20] sm:$0xff]  ;;  %v129_v49 = vld [vmem:[#allocation5 + $0x28] sm:$0xff]  ;;  %v6654_v52 = vor.u32 %v6793_v46, %v6651_v47  ;;  %v7490_v58 = vperm.slane %v140_v56, 0  ;;  %v180_v59 = vperm.slane %v140_v56, 1  ;;  %v3332_v61 = vld [vmem:[%s11787_s8 + $0x10] sm:$0xff]  ;;  %s7298_s6 = smov 124  }
  0x26   :  { %3484 = vmatpush.bf16.msrb.mxu2 %v6670_v28  ;;  %2315 = vmatpush.msra.mxu3 %v130_v33  ;;  %v6873_v53 = vpack.i.bf16 %v129_v49, %v128_v48  ;;  %v6789_v54 = vld [vmem:[#allocation8] sm:$0xff]  ;;  %v3334_v57 = vld [vmem:[%s11787_s8 + $0x20] sm:$0xff]  ;;  %v3337_v62 = vld [vmem:[%s11787_s8 + $0x38] sm:$0xff]  ;;  %s7304_s4 = smov 100   ;;  %vm4715_vm4 = vcmask 130048   ;;  %s7318_s20 = smov 28  }
  0x27   :  { %6869 = vrot.lane.b32.xlu2 %v6868_v40, %s7288_s12  ;;  %v3336_v63 = vld [vmem:[%s11787_s8 + $0x30] sm:$0xff]  ;;  %v6791_v0 = vld [vmem:[#allocation8 + $0x10] sm:$0xff]  ;;  %v3331_v1 = vld [vmem:[%s11787_s8 + $0x8] sm:$0xff]  ;;  %s7322_s21 = smov 44   ;;  %vm6550_vm5 = vcmask 64512   ;;  %vm6553_vm6 = vcmask 97280  }
  0x28   :  { %6624 = vmatmul.msk.f32.gmra.mxu0 %vm146_vm0, %v142_v37  ;;  %2316 = vmatpush.msra.mxu3 %v128_v48  ;;  %v3330_v2 = vld [vmem:[%s11787_s8] sm:$0xff]  ;;  %v3335_v3 = vld [vmem:[%s11787_s8 + $0x28] sm:$0xff]  ;;  %v3333_v5 = vld [vmem:[%s11787_s8 + $0x18] sm:$0xff]  ;;  %s7317_s8 = smov 24   ;;  %vm6558_vm7 = vcmask 162816   ;;  %vm6561_vm8 = vcmask 195584  }
  0x29   :  { %6628 = vmatmul.msk.f32.gmra.mxu2 %vm146_vm0, %v142_v37  ;;  %3456 = vmatpush.bf16.msrb.mxu0 %v6658_v38  ;;  %v6792_v4 = vld [vmem:[#allocation8 + $0x18] sm:$0xff]  ;;  %vm6564_vm9 = vcmask 228352   ;;  %vm6569_vm10 = vcmask 293888   ;;  %vm6572_vm11 = vcmask 326656   ;;  %vm6575_vm12 = vcmask 359424  }
  0x2a   :  { %3485 = vmatpush.bf16.msrb.mxu2 %v6662_v41  ;;  %2317 = vmatpush.msra.mxu3 %v126_v34  ;;  %v6971_v28 = vld [vmem:[%s11781_s2] ss:$0 sm:$0xff]  ;;  %s7321_s2 = smov 52   ;;  %vm6578_vm13 = vcmask 392192   ;;  %vm6581_vm14 = vcmask 424960   ;;  %vm6584_vm15 = vcmask 457728  }
  0x2c   :  { %6879 = vrot.lane.b32.xlu0 %v6878_v45, %s7288_s12  ;;  %2318 = vmatpush.msra.mxu3 %v124_v43 }
  0x2d   :  { %3457 = vmatpush.bf16.msrb.mxu0 %v6650_v50  ;;  %6884 = vrot.lane.b32.xlu1 %v6883_v51, %s7288_s12 }
  0x2e   :  { %3486 = vmatpush.bf16.msrb.mxu2 %v6654_v52 }
  0x2f   :  { %6874 = vrot.lane.b32.xlu2 %v6873_v53, %s7288_s12 }
  0x30   :  { %6679 = vmatmul.msk.bf16.vlgmr.msrb.gmra.mxu0 %vm229_vm1, %v6789_v54 }
  0x31   :  { %6683 = vmatmul.msk.bf16.vlgmr.msrb.gmra.mxu2 %vm229_vm1, %v6789_v54 }
  0x34   :  { %248 = vrot.lane.b32.xlu0 %v180_v59, %s7288_s12 }
  0x35   :  { %3360 = vperm.xlu1 %6890, %v3334_v57  }
  0x37   :  { %246 = vrot.lane.b32.xlu2 %v7490_v58, %s7288_s12 }
  0x3c   :  { %3375 = vperm.xlu0 %6889, %v3337_v62  }
  0x3d   :  { %3350 = vperm.xlu1 %6890, %v3332_v61  }
  0x3f   :  { %3370 = vperm.xlu2 %6888, %v3336_v63  }
  0x40   :  { %6680 = vmatmul.msk.bf16.gmra.mxu0 %vm229_vm1, %v6790_v55 }
  0x41   :  { %6684 = vmatmul.msk.bf16.gmra.mxu2 %vm229_vm1, %v6790_v55 }
  0x44   :  { %3340 = vperm.xlu0 %6889, %v3330_v2  }
  0x45   :  { %3345 = vperm.xlu1 %6890, %v3331_v1  }
  0x47   :  { %3365 = vperm.xlu2 %6888, %v3335_v3  }
  0x4f   :  { %3355 = vperm.xlu2 %6888, %v3333_v5  }
  0x50   :  { %6681 = vmatmul.msk.bf16.gmra.mxu0 %vm229_vm1, %v6791_v0 }
  0x51   :  { %6685 = vmatmul.msk.bf16.gmra.mxu2 %vm229_vm1, %v6791_v0 }
  0x60   :  { %6682 = vmatmul.msk.bf16.gmra.mxu0 %vm229_vm1, %v6792_v4 }
  0x61   :  { %6686 = vmatmul.msk.bf16.gmra.mxu2 %vm229_vm1, %v6792_v4 }
  0x81   :  { %v6870_v7 = vpop.permute.xlu2 %6869 }
  0x82   :  { %v6872_v22 = vunpack.i.h.bf16 %v6870_v7  ;;  %v6871_v23 = vunpack.i.l.bf16 %v6870_v7 }
  0x84   :  { %v233_v30 = vsel %vm229_vm1, %v6871_v23, %v6872_v22 }
  0x89   :  { %v6875_v18 = vpop.permute.xlu2 %6874 }
  0x8a   :  { %v6877_v26 = vunpack.i.h.bf16 %v6875_v18  ;;  %v6876_v27 = vunpack.i.l.bf16 %v6875_v18 }
  0x8c   :  { %v232_v35 = vsel %vm229_vm1, %v6876_v27, %v6877_v26 }
  0x8e   :  { %v6850_v6 = vpop.permute.xlu0 %6849 }
  0x8f   :  { %v6852_v8 = vunpack.i.h.bf16 %v6850_v6  ;;  %v6851_v9 = vunpack.i.l.bf16 %v6850_v6  ;;  %v6860_v10 = vpop.permute.xlu1 %6859 }
  0x90   :  { %v6862_v13 = vunpack.i.h.bf16 %v6860_v10  ;;  %v6861_v14 = vunpack.i.l.bf16 %v6860_v10 }
  0x91   :  { %v237_v11 = vsel %vm229_vm1, %v6851_v9, %v6852_v8  ;;  %v7549_v59 = vpop.permute.xlu2 %246 }
  0x92   :  { %266 = vmatpush.msra.mxu1 %v237_v11  ;;  %v235_v24 = vsel %vm229_vm1, %v6861_v14, %v6862_v13  ;;  %v3534_v14 = vld [vmem:[%s11789_s10] sm:$0xff] }
  0x93   :  { %3538 = vperm.xlu1 %6890, %v3534_v14   ;;  %v7311_v14 = vmov 1983009808  }
  0x96   :  { %v6855_v12 = vpop.permute.xlu0 %6854 }
  0x97   :  { %v6857_v15 = vunpack.i.h.bf16 %v6855_v12  ;;  %v6856_v16 = vunpack.i.l.bf16 %v6855_v12  ;;  %v6865_v17 = vpop.permute.xlu1 %6864 }
  0x98   :  { %v6867_v20 = vunpack.i.h.bf16 %v6865_v17  ;;  %v6866_v21 = vunpack.i.l.bf16 %v6865_v17 }
  0x99   :  { %v236_v19 = vsel %vm229_vm1, %v6856_v16, %v6857_v15  ;;  %v3371_v62 = vpop.permute.xlu2 %3370 }
  0x9a   :  { %267 = vmatpush.msra.mxu1 %v236_v19  ;;  %v234_v25 = vsel %vm229_vm1, %v6866_v21, %v6867_v20 }
  0x9c   :  { %268 = vmatpush.msra.mxu1 %v235_v24 }
  0x9d   :  { %v170_v29 = vpop.f32.mrf.mxu0 }
  0x9e   :  { %269 = vmatpush.msra.mxu1 %v234_v25  ;;  %v6880_v31 = vpop.permute.xlu0 %6879  ;;  %v171_v32 = vadd.f32 %v6971_v28, %v170_v29 }
  0x9f   :  { %v6882_v33 = vunpack.i.h.bf16 %v6880_v31  ;;  %v6881_v34 = vunpack.i.l.bf16 %v6880_v31  ;;  %v6885_v36 = vpop.permute.xlu1 %6884 }
  0xa0   :  { %270 = vmatpush.msra.mxu1 %v233_v30  ;;  %v6887_v37 = vunpack.i.h.bf16 %v6885_v36  ;;  %v6886_v38 = vunpack.i.l.bf16 %v6885_v36  ;;  %v176_v40 = vmax.f32 %v171_v32, 0.0 }
  0xa1   :  { %v231_v39 = vsel %vm229_vm1, %v6881_v34, %v6882_v33  ;;  %v3366_v3 = vpop.permute.xlu2 %3365 }
  0xa2   :  { %271 = vmatpush.msra.mxu1 %v232_v35  ;;  %v230_v41 = vsel %vm229_vm1, %v6886_v38, %v6887_v37 }
  0xa4   :  { %272 = vmatpush.msra.mxu1 %v231_v39  ;;  %v2288_v42 = vpop.f32.mrf.mxu2 }
  0xa5   :  { %v7531_v43 = vadd.f32 %v6971_v28, %v2288_v42  ;;  %v173_v44 = vpop.f32.mrf.mxu0 }
  0xa6   :  { %273 = vmatpush.msra.mxu1 %v230_v41  ;;  %v174_v45 = vadd.f32 %v6971_v28, %v173_v44  ;;  %v7551_v63 = vpop.permute.xlu0 %248 }
  0xa7   :  { %11893 = vst [vmem:[#allocation16_spill] sm:$0xff] %v7531_v43  ;;  %6625 = vmatmul.msk.f32.vlgmr.msra.gmra.mxu1 %vm229_vm1, %v176_v40  ;;  %v11792_v46 = vmax.f32 %v7531_v43, 0.0  ;;  %v3361_v2 = vpop.permute.xlu1 %3360 }
  0xa8   :  { %v177_v47 = vmax.f32 %v174_v45, 0.0 }
  0xa9   :  { %6629 = vmatmul.msk.f32.vlgmr.msra.gmra.mxu3 %vm229_vm1, %v11792_v46  ;;  %v3356_v11 = vpop.permute.xlu2 %3355 }
  0xac   :  { %v2291_v48 = vpop.f32.mrf.mxu2 }
  0xad   :  { %v7538_v49 = vadd.f32 %v6971_v28, %v2291_v48  ;;  %v3459_v50 = vpop.f32.mrf.mxu0 }
  0xae   :  { %v3376_v5 = vpop.permute.xlu0 %3375 }
  0xaf   :  { %11894 = vst [vmem:[#allocation17_spill] sm:$0xff] %v7538_v49  ;;  %6626 = vmatmul.msk.f32.gmra.mxu1 %vm229_vm1, %v177_v47  ;;  %v11791_v51 = vmax.f32 %v7538_v49, 0.0  ;;  %v3351_v7 = vpop.permute.xlu1 %3350 }
  0xb1   :  { %6630 = vmatmul.msk.f32.gmra.mxu3 %vm229_vm1, %v11791_v51 }
  0xb4   :  { %v7545_v52 = vpop.f32.mrf.mxu2 }
  0xb5   :  { %v3461_v53 = vpop.f32.mrf.mxu0 }
  0xb6   :  { %v3341_v13 = vpop.permute.xlu0 %3340 }
  0xb7   :  { %v3460_v19 = vadd.f32 %v3459_v50, %v3341_v13  ;;  %v3346_v22 = vpop.permute.xlu1 %3345  ;;  %v3489_v39 = vadd.f32 %v7545_v52, %v3341_v13 }
  0xb8   :  { %v3462_v27 = vadd.f32 %v3461_v53, %v3346_v22 }
  0xbc   :  { %v7547_v54 = vpop.f32.mrf.mxu2 }
  0xbd   :  { %v3464_v55 = vpop.f32.mrf.mxu0  ;;  %v3491_v41 = vadd.f32 %v7547_v54, %v3346_v22 }
  0xbe   :  { %v3465_v16 = vadd.f32 %v3464_v55, %v3351_v7 }
  0xc4   :  { %v3493_v56 = vpop.f32.mrf.mxu2 }
  0xc5   :  { %v3466_v57 = vpop.f32.mrf.mxu0  ;;  %v3494_v31 = vadd.f32 %v3493_v56, %v3351_v7 }
  0xc6   :  { %v3467_v18 = vadd.f32 %v3466_v57, %v3356_v11 }
  0xcc   :  { %v3495_v60 = vpop.f32.mrf.mxu2 }
  0xcd   :  { %v3469_v61 = vpop.f32.mrf.mxu0  ;;  %v3496_v33 = vadd.f32 %v3495_v60, %v3356_v11  ;;  %v6801_v60 = vld [vmem:[#allocation10] sm:$0xff] }
  0xce   :  { %v3470_v8 = vadd.f32 %v3469_v61, %v3361_v2 }
  0xd0   :  { %6972 = vtanh.f32 %v3470_v8 }
  0xd4   :  { %v3498_v0 = vpop.f32.mrf.mxu2 }
  0xd5   :  { %v3471_v1 = vpop.f32.mrf.mxu0  ;;  %v3499_v20 = vadd.f32 %v3498_v0, %v3361_v2 }
  0xd6   :  { %v3472_v10 = vadd.f32 %v3471_v1, %v3366_v3  ;;  %v6973_v24 = vpop.eup %6972 }
  0xdc   :  { %v3500_v4 = vpop.f32.mrf.mxu2 }
  0xdd   :  { %v3474_v6 = vpop.f32.mrf.mxu0  ;;  %v3501_v23 = vadd.f32 %v3500_v4, %v3366_v3 }
  0xde   :  { %v3475_v9 = vadd.f32 %v3474_v6, %v3371_v62 }
  0xe0   :  { %6974 = vtanh.f32 %v3475_v9 }
  0xe1   :  { %6976 = vtanh.f32 %v3472_v10 }
  0xe4   :  { %v3503_v12 = vpop.f32.mrf.mxu2 }
  0xe5   :  { %v3476_v15 = vpop.f32.mrf.mxu0  ;;  %v3504_v21 = vadd.f32 %v3503_v12, %v3371_v62  ;;  %v250_v62 = vsel %vm229_vm1, %v7549_v59, %v7551_v63 }
  0xe6   :  { %v3477_v17 = vadd.f32 %v3476_v15, %v3376_v5  ;;  %v6975_v25 = vpop.eup %6974  ;;  %v379_v15 = vunpack.c.l.s4 %v7311_v14 }
  0xe7   :  { %v6977_v28 = vpop.eup %6976 }
  0xe8   :  { %6978 = vtanh.f32 %v3477_v17  ;;  %v3530_v37 = vpack.c.bf16 %v6977_v28, %v6973_v24 }
  0xe9   :  { %6980 = vtanh.f32 %v3465_v16 }
  0xea   :  { %6982 = vtanh.f32 %v3467_v18 }
  0xeb   :  { %6984 = vtanh.f32 %v3460_v19 }
  0xec   :  { %6986 = vtanh.f32 %v3499_v20  ;;  %v3505_v26 = vpop.f32.mrf.mxu2  ;;  %v7692_v20 = vunpack.c.0.s8 %v379_v15 }
  0xed   :  { %6988 = vtanh.f32 %v3504_v21  ;;  %v3506_v29 = vadd.f32 %v3505_v26, %v3376_v5 }
  0xee   :  { %v6979_v30 = vpop.eup %6978  ;;  %6990 = vtanh.f32 %v3501_v23 }
  0xef   :  { %v6981_v32 = vpop.eup %6980  ;;  %6992 = vtanh.f32 %v3506_v29  ;;  %v3532_v34 = vpack.c.bf16 %v6979_v30, %v6975_v25 }
  0xf0   :  { %v6983_v35 = vpop.eup %6982  ;;  %6994 = vtanh.f32 %v3462_v27 }
  0xf1   :  { %v6985_v36 = vpop.eup %6984  ;;  %3558 = vmatpush.bf16.msrb.mxu1 %v3532_v34  ;;  %6996 = vtanh.f32 %v3494_v31  ;;  %v3528_v45 = vpack.c.bf16 %v6983_v35, %v6981_v32 }
  0xf2   :  { %v6987_v38 = vpop.eup %6986  ;;  %6998 = vtanh.f32 %v3496_v33 }
  0xf3   :  { %v6989_v40 = vpop.eup %6988  ;;  %7000 = vtanh.f32 %v3489_v39 }
  0xf4   :  { %v6991_v42 = vpop.eup %6990  ;;  %7002 = vtanh.f32 %v3491_v41 }
  0xf5   :  { %v6993_v44 = vpop.eup %6992  ;;  %3559 = vmatpush.bf16.msrb.mxu1 %v3530_v37  ;;  %v3531_v53 = vpack.c.bf16 %v6991_v42, %v6987_v38 }
  0xf6   :  { %v6995_v47 = vpop.eup %6994  ;;  %v3533_v48 = vpack.c.bf16 %v6993_v44, %v6989_v40 }
  0xf7   :  { %v6997_v50 = vpop.eup %6996  ;;  %v3526_v56 = vpack.c.bf16 %v6995_v47, %v6985_v36  ;;  %v7312_v36 = vmov 1934713408  }
  0xf8   :  { %3572 = vmatpush.bf16.msrb.mxu3 %v3533_v48  ;;  %v6999_v55 = vpop.eup %6998  ;;  %v427_v37 = vunpack.c.l.s4 %v7312_v36 }
  0xf9   :  { %3560 = vmatpush.bf16.msrb.mxu1 %v3528_v45  ;;  %v7001_v57 = vpop.eup %7000  ;;  %v3529_v52 = vpack.c.bf16 %v6999_v55, %v6997_v50 }
  0xfa   :  { %v7003_v61 = vpop.eup %7002 }
  0xfb   :  { %v3527_v54 = vpack.c.bf16 %v7003_v61, %v7001_v57  ;;  %v7742_v57 = vunpack.c.0.s8 %v427_v37 }
  0xfc   :  { %3573 = vmatpush.bf16.msrb.mxu3 %v3531_v53 }
  0xfd   :  { %3561 = vmatpush.bf16.msrb.mxu1 %v3526_v56 }
 0x100   :  { %3574 = vmatpush.bf16.msrb.mxu3 %v3529_v52  ;;  %6691 = vmatmul.msk.bf16.vlgmr.msrb.gmra.mxu1 %vm229_vm1, %v6801_v60 }
 0x104   :  { %3575 = vmatpush.bf16.msrb.mxu3 %v3527_v54 }
 0x105   :  { %v7661_v8 = vpop.permute.xlu1 %3538 }
 0x107   :  { %6692 = vmatmul.msk.bf16.vlgmr.msrb.gmra.mxu3 %vm229_vm1, %v6801_v60 }
 0x124   :  { %v275_v0 = vpop.f32.mrf.mxu1 }
 0x125   :  { %v7563_v1 = vadd.f32 %v275_v0, %v250_v62 }
 0x127   :  { %295 = vrot.lane.b32.xlu2 %v7563_v1, %s7296_s0  ;;  %289 = vrot.lane.b32.xlu0 %v7563_v1, %s7297_s22  ;;  %v376_v19 = vrot.slane %v7563_v1, 4 }
 0x128   :  { %283 = vrot.lane.b32.xlu1 %v7563_v1, %s7298_s6 }
 0x12c   :  { %v278_v59 = vpop.f32.mrf.mxu1  ;;  %v2320_v2 = vpop.f32.mrf.mxu3 }
 0x12d   :  { %v7595_v63 = vadd.f32 %v278_v59, %v250_v62  ;;  %v7628_v3 = vadd.f32 %v2320_v2, %v7490_v58 }
 0x12f   :  { %313 = vrot.lane.b32.xlu2 %v7563_v1, %s7299_s24  ;;  %307 = vrot.lane.b32.xlu0 %v7563_v1, %s7300_s5  ;;  %v6891_v4 = vpack.i.bf16 %v7595_v63, %v7563_v1  ;;  %v600_v2 = vrot.slane %v7595_v63, 4 }
 0x130   :  { %301 = vrot.lane.b32.xlu1 %v7563_v1, %s7301_s25 }
 0x134   :  { %v2323_v9 = vpop.f32.mrf.mxu3 }
 0x135   :  { %v7664_v10 = vadd.f32 %v2323_v9, %v7490_v58 }
 0x137   :  { %331 = vrot.lane.b32.xlu2 %v7563_v1, %s7302_s9  ;;  %325 = vrot.lane.b32.xlu0 %v7563_v1, %s7303_s26 }
 0x138   :  { %319 = vrot.lane.b32.xlu1 %v7563_v1, %s7304_s4 }
 0x13f   :  { %349 = vrot.lane.b32.xlu2 %v7563_v1, %s7305_s27  ;;  %343 = vrot.lane.b32.xlu0 %v7563_v1, %s7306_s28 }
 0x140   :  { %337 = vrot.lane.b32.xlu1 %v7563_v1, %s7307_s29 }
 0x147   :  { %367 = vrot.lane.b32.xlu2 %v7563_v1, %s7308_s30  ;;  %361 = vrot.lane.b32.xlu0 %v7563_v1, %s7309_s3 }
 0x148   :  { %355 = vrot.lane.b32.xlu1 %v7563_v1, %s7310_s14 }
 0x14f   :  { %285 = vrot.lane.b32.xlu2 %v7595_v63, %s7298_s6  ;;  %297 = vrot.lane.b32.xlu0 %v7595_v63, %s7296_s0 }
 0x150   :  { %291 = vrot.lane.b32.xlu1 %v7595_v63, %s7297_s22 }
 0x157   :  { %303 = vrot.lane.b32.xlu2 %v7595_v63, %s7301_s25  ;;  %315 = vrot.lane.b32.xlu0 %v7595_v63, %s7299_s24 }
 0x158   :  { %309 = vrot.lane.b32.xlu1 %v7595_v63, %s7300_s5 }
 0x15f   :  { %321 = vrot.lane.b32.xlu2 %v7595_v63, %s7304_s4  ;;  %333 = vrot.lane.b32.xlu0 %v7595_v63, %s7302_s9 }
 0x160   :  { %327 = vrot.lane.b32.xlu1 %v7595_v63, %s7303_s26 }
 0x167   :  { %339 = vrot.lane.b32.xlu2 %v7595_v63, %s7307_s29  ;;  %351 = vrot.lane.b32.xlu0 %v7595_v63, %s7305_s27 }
 0x168   :  { %345 = vrot.lane.b32.xlu1 %v7595_v63, %s7306_s28 }
 0x16f   :  { %357 = vrot.lane.b32.xlu2 %v7595_v63, %s7310_s14  ;;  %369 = vrot.lane.b32.xlu0 %v7595_v63, %s7308_s30 }
 0x170   :  { %363 = vrot.lane.b32.xlu1 %v7595_v63, %s7309_s3 }
 0x177   :  { %2334 = vrot.lane.b32.xlu2 %v7628_v3, %s7297_s22  ;;  %2340 = vrot.lane.b32.xlu0 %v7628_v3, %s7296_s0 }
 0x178   :  { %6892 = vrot.lane.b32.xlu1 %v6891_v4, %s7288_s12 }
 0x17f   :  { %2328 = vrot.lane.b32.xlu2 %v7628_v3, %s7298_s6  ;;  %2346 = vrot.lane.b32.xlu0 %v7628_v3, %s7301_s25 }
 0x180   :  { %2358 = vrot.lane.b32.xlu1 %v7628_v3, %s7299_s24 }
 0x181   :  { %v7643_v5 = vpop.permute.xlu2 %295 }
 0x182   :  { %11895 = vst [vmem:[#allocation18_spill] sm:$0xff] %v7643_v5  ;;  %v386_v22 = vrot.slane %v7643_v5, 4 }
 0x187   :  { %2352 = vrot.lane.b32.xlu2 %v7628_v3, %s7300_s5  ;;  %2370 = vrot.lane.b32.xlu0 %v7628_v3, %s7303_s26 }
 0x188   :  { %2364 = vrot.lane.b32.xlu1 %v7628_v3, %s7304_s4 }
 0x189   :  { %v7651_v6 = vpop.permute.xlu2 %313 }
 0x18a   :  { %11896 = vst [vmem:[#allocation19_spill] sm:$0xff] %v7651_v6  ;;  %v398_v31 = vrot.slane %v7651_v6, 4 }
 0x18f   :  { %2406 = vrot.lane.b32.xlu2 %v7628_v3, %s7309_s3  ;;  %2412 = vrot.lane.b32.xlu0 %v7628_v3, %s7308_s30 }
 0x190   :  { %2382 = vrot.lane.b32.xlu1 %v7628_v3, %s7307_s29 }
 0x191   :  { %v7659_v7 = vpop.permute.xlu2 %331 }
 0x192   :  { %11897 = vst [vmem:[#allocation20_spill] sm:$0xff] %v7659_v7  ;;  %v500_v61 = vrot.slane %v7659_v7, 4 }
 0x197   :  { %2394 = vrot.lane.b32.xlu2 %v7628_v3, %s7305_s27  ;;  %2336 = vrot.lane.b32.xlu0 %v7664_v10, %s7297_s22  ;;  %s7324_s22 = smov 60  }
 0x198   :  { %2388 = vrot.lane.b32.xlu1 %v7628_v3, %s7306_s28 }
 0x199   :  { %v7672_v11 = vpop.permute.xlu2 %349  ;;  %v7674_v12 = vpop.permute.xlu0 %289 }
 0x19a   :  { %11898 = vst [vmem:[#allocation21_spill] sm:$0xff] %v7672_v11  ;;  %v7676_v13 = vpop.permute.xlu1 %283  ;;  %v373_v18 = vrot.slane %v7674_v12, 4  ;;  %v377_v23 = vsel %vm374_vm2, %v7674_v12, %v376_v19  ;;  %v3577_v19 = vpop.f32.mrf.mxu3 }
 0x19b   :  { %11899 = vst [vmem:[#allocation22_spill] sm:$0xff] %v7674_v12  ;;  %v388_v21 = vrot.slane %v7676_v13, 4  ;;  %v387_v26 = vsel %vm374_vm2, %v386_v22, %v7676_v13  ;;  %v385_v28 = vperm.slane %v377_v23, %v7692_v20 }
 0x19c   :  { %11900 = vst [vmem:[#allocation23_spill] sm:$0xff] %v7676_v13  ;;  %v375_v25 = vsel %vm374_vm2, %v373_v18, %v7563_v1  ;;  %v393_v38 = vperm.slane %v387_v26, %v7692_v20  ;;  %v3563_v18 = vpop.f32.mrf.mxu1 }
 0x19d   :  { %v389_v29 = vsel %vm374_vm2, %v7643_v5, %v388_v21  ;;  %v381_v35 = vperm.slane %v375_v25, %v7692_v20  ;;  %v436_v45 = vrot.slane %v385_v28, 4  ;;  %v3535_v25 = vld [vmem:[%s11789_s10 + $0x8] sm:$0xff]  ;;  %v7778_v37 = vadd.f32 %v3563_v18, %v7661_v8  ;;  %s7313_s10 = smov 32  }
 0x19e   :  { %v397_v39 = vperm.slane %v389_v29, %v7692_v20  ;;  %v422_v50 = vrot.slane %v393_v38, 4 }
 0x19f   :  { %2400 = vrot.lane.b32.xlu2 %v7628_v3, %s7310_s14  ;;  %2330 = vrot.lane.b32.xlu0 %v7664_v10, %s7298_s6  ;;  %v424_v56 = vrot.slane %v381_v35, 4  ;;  %11910 = vst [vmem:[#allocation33_spill] sm:$0xff] %v7778_v37 }
 0x1a0   :  { %2376 = vrot.lane.b32.xlu1 %v7628_v3, %s7302_s9  ;;  %v434_v52 = vrot.slane %v397_v39, 4  ;;  %v437_v54 = vsel %vm374_vm2, %v397_v39, %v436_v45  ;;  %v423_v4 = vsel %vm374_vm2, %v422_v50, %v381_v35 }
 0x1a1   :  { %v7684_v58 = vpop.permute.xlu0 %307  ;;  %v7688_v17 = vpop.permute.xlu2 %367  ;;  %v425_v21 = vsel %vm374_vm2, %v393_v38, %v424_v56  ;;  %v445_v23 = vperm.slane %v437_v54, %v7742_v57  ;;  %v7781_v38 = vadd.f32 %v3577_v19, %v7661_v8  ;;  %v429_v39 = vperm.slane %v423_v4, %v7742_v57 }
 0x1a2   :  { %11901 = vst [vmem:[#allocation24_spill] sm:$0xff] %v7684_v58  ;;  %v7686_v16 = vpop.permute.xlu1 %301  ;;  %v412_v32 = vrot.slane %v7684_v58, 4  ;;  %v435_v22 = vsel %vm374_vm2, %v434_v52, %v385_v28 }
 0x1a3   :  { %11902 = vst [vmem:[#allocation25_spill] sm:$0xff] %v7686_v16  ;;  %v400_v24 = vrot.slane %v7686_v16, 4  ;;  %v399_v40 = vsel %vm374_vm2, %v398_v31, %v7686_v16  ;;  %v484_v8 = vrot.slane %v445_v23, 4 }
 0x1a4   :  { %11903 = vst [vmem:[#allocation26_spill] sm:$0xff] %v7688_v17  ;;  %v405_v53 = vperm.slane %v399_v40, %v7692_v20 }
 0x1a5   :  { %v401_v33 = vsel %vm374_vm2, %v7651_v6, %v400_v24  ;;  %11911 = vst [vmem:[#allocation34_spill] sm:$0xff] %v7781_v38 }
 0x1a6   :  { %v409_v47 = vperm.slane %v401_v33, %v7692_v20  ;;  %v448_v9 = vrot.slane %v405_v53, 4 }
 0x1a7   :  { %2360 = vrot.lane.b32.xlu2 %v7664_v10, %s7299_s24  ;;  %2354 = vrot.lane.b32.xlu0 %v7664_v10, %s7300_s5 }
 0x1a8   :  { %2342 = vrot.lane.b32.xlu1 %v7664_v10, %s7296_s0  ;;  %v460_v62 = vrot.slane %v409_v47, 4  ;;  %s7323_s0 = smov 56  }
 0x1a9   :  { %v7709_v27 = vpop.permute.xlu0 %325  ;;  %v7726_v41 = vpop.permute.xlu2 %285 }
 0x1aa   :  { %11904 = vst [vmem:[#allocation27_spill] sm:$0xff] %v7709_v27  ;;  %v7714_v30 = vpop.permute.xlu1 %319  ;;  %v488_v26 = vrot.slane %v7709_v27, 4 }
 0x1ab   :  { %11905 = vst [vmem:[#allocation28_spill] sm:$0xff] %v7714_v30  ;;  %v410_v34 = vrot.slane %v7714_v30, 4  ;;  %v413_v44 = vsel %vm374_vm2, %v7714_v30, %v412_v32 }
 0x1ac   :  { %11906 = vst [vmem:[#allocation29_spill] sm:$0xff] %v7726_v41  ;;  %v421_v55 = vperm.slane %v413_v44, %v7692_v20 }
 0x1ad   :  { %v411_v42 = vsel %vm374_vm2, %v410_v34, %v7684_v58 }
 0x1ae   :  { %v417_v48 = vperm.slane %v411_v42, %v7692_v20  ;;  %v461_v14 = vsel %vm374_vm2, %v421_v55, %v460_v62  ;;  %v458_v24 = vrot.slane %v421_v55, 4  ;;  %v433_v42 = vperm.slane %v425_v21, %v7742_v57 }
 0x1af   :  { %2366 = vrot.lane.b32.xlu2 %v7664_v10, %s7304_s4  ;;  %2384 = vrot.lane.b32.xlu0 %v7664_v10, %s7307_s29  ;;  %v469_v28 = vperm.slane %v461_v14, %v7742_v57 }
 0x1b0   :  { %2348 = vrot.lane.b32.xlu1 %v7664_v10, %s7301_s25  ;;  %v446_v59 = vrot.slane %v417_v48, 4  ;;  %v449_v29 = vsel %vm374_vm2, %v417_v48, %v448_v9  ;;  %v459_v45 = vsel %vm374_vm2, %v458_v24, %v409_v47  ;;  %v476_v21 = vrot.slane %v433_v42, 4 }
 0x1b1   :  { %v7744_v60 = vpop.permute.xlu0 %343  ;;  %v7769_v34 = vpop.permute.xlu2 %303  ;;  %v457_v44 = vperm.slane %v449_v29, %v7742_v57  ;;  %v482_v54 = vrot.slane %v469_v28, 4  ;;  %v465_v4 = vperm.slane %v459_v45, %v7742_v57  ;;  %v7803_v9 = vsel %vm374_vm2, %v469_v28, %v484_v8 }
 0x1b2   :  { %11907 = vst [vmem:[#allocation30_spill] sm:$0xff] %v7744_v60  ;;  %v498_v0 = vrot.slane %v7744_v60, 4  ;;  %v7749_v1 = vpop.permute.xlu1 %337  ;;  %v501_v15 = vsel %vm374_vm2, %v7744_v60, %v500_v61  ;;  %v447_v33 = vsel %vm374_vm2, %v446_v59, %v405_v53  ;;  %v441_v53 = vperm.slane %v435_v22, %v7742_v57 }
 0x1b3   :  { %11908 = vst [vmem:[#allocation31_spill] sm:$0xff] %v7749_v1  ;;  %v486_v32 = vrot.slane %v7749_v1, 4  ;;  %v509_v35 = vperm.slane %v501_v15, %v7692_v20  ;;  %v489_v40 = vsel %vm374_vm2, %v7749_v1, %v488_v26  ;;  %v453_v55 = vperm.slane %v447_v33, %v7742_v57 }
 0x1b4   :  { %v499_v31 = vsel %vm374_vm2, %v498_v0, %v7659_v7  ;;  %11909 = vst [vmem:[#allocation32_spill] sm:$0xff] %v7769_v34  ;;  %v512_v61 = vrot.slane %v7672_v11, 4  ;;  %v497_v47 = vperm.slane %v489_v40, %v7692_v20  ;;  %v472_v0 = vrot.slane %v429_v39, 4 }
 0x1b5   :  { %v505_v48 = vperm.slane %v499_v31, %v7692_v20  ;;  %v487_v56 = vsel %vm374_vm2, %v486_v32, %v7709_v27  ;;  %v546_v62 = vrot.slane %v509_v35, 4  ;;  %v522_v59 = vrot.slane %v7688_v17, 4 }
 0x1b6   :  { %v474_v14 = vrot.slane %v457_v44, 4  ;;  %v493_v18 = vperm.slane %v487_v56, %v7692_v20  ;;  %v480_v22 = vrot.slane %v441_v53, 4  ;;  %v612_v24 = vrot.slane %v7726_v41, 4 }
 0x1b7   :  { %2372 = vrot.lane.b32.xlu2 %v7664_v10, %s7303_s26  ;;  %2390 = vrot.lane.b32.xlu0 %v7664_v10, %s7306_s28  ;;  %v534_v15 = vrot.slane %v505_v48, 4  ;;  %v7809_v26 = vsel %vm374_vm2, %v482_v54, %v445_v23  ;;  %v547_v31 = vsel %vm374_vm2, %v546_v62, %v497_v47  ;;  %v548_v32 = vrot.slane %v497_v47, 4 }
 0x1b8   :  { %3543 = vperm.xlu1 %6890, %v3535_v25   ;;  %v470_v25 = vrot.slane %v453_v55, 4  ;;  %v7818_v33 = vsel %vm374_vm2, %v457_v44, %v476_v21  ;;  %v478_v28 = vrot.slane %v465_v4, 4  ;;  %v624_v40 = vrot.slane %v7769_v34, 4 }
 0x1b9   :  { %v7790_v50 = vpop.permute.xlu0 %361  ;;  %v535_v45 = vsel %vm374_vm2, %v534_v15, %v493_v18  ;;  %v536_v8 = vrot.slane %v493_v18, 4  ;;  %v7826_v56 = vpop.permute.xlu2 %321  ;;  %v7833_v44 = vsel %vm374_vm2, %v474_v14, %v433_v42  ;;  %v7836_v47 = vsel %vm374_vm2, %v465_v4, %v480_v22 }
 0x1ba   :  { %11912 = vst [vmem:[#allocation35_spill] sm:$0xff] %v7790_v50  ;;  %v7796_v52 = vpop.permute.xlu1 %355  ;;  %v510_v19 = vrot.slane %v7790_v50, 4  ;;  %v513_v23 = vsel %vm374_vm2, %v7790_v50, %v512_v61  ;;  %v7840_v21 = vperm.slane %v547_v31, %v7742_v57  ;;  %v7845_v18 = vsel %vm374_vm2, %v470_v25, %v429_v39 }
 0x1bb   :  { %11913 = vst [vmem:[#allocation36_spill] sm:$0xff] %v7796_v52  ;;  %v7849_v51 = vperm.slane %v513_v23, %v7692_v20  ;;  %v7853_v4 = vsel %vm374_vm2, %v453_v55, %v472_v0  ;;  %v7856_v14 = vperm.slane %v535_v45, %v7742_v57  ;;  %v7862_v31 = vsel %vm374_vm2, %v478_v28, %v441_v53 }
 0x1bc   :  { %11914 = vst [vmem:[#allocation37_spill] sm:$0xff] %v7826_v56  ;;  %v511_v54 = vsel %vm374_vm2, %v510_v19, %v7672_v11  ;;  %v549_v19 = vsel %vm374_vm2, %v509_v35, %v548_v32  ;;  %v822_v39 = vrot.slane %v7833_v44, 4  ;;  %v537_v35 = vsel %vm374_vm2, %v505_v48, %v536_v8 }
 0x1bd   :  { %v7859_v22 = vperm.slane %v511_v54, %v7692_v20  ;;  %v524_v25 = vrot.slane %v7796_v52, 4  ;;  %v834_v55 = vrot.slane %v7818_v33, 4  ;;  %v7870_v0 = vperm.slane %v549_v19, %v7742_v57 }
 0x1be   :  { %v634_v45 = vrot.slane %v7826_v56, 4  ;;  %v572_v28 = vrot.slane %v7849_v51, 4  ;;  %v523_v48 = vsel %vm374_vm2, %v522_v59, %v7796_v52  ;;  %v7887_v19 = vperm.slane %v537_v35, %v7742_v57 }
 0x1bf   :  { %2414 = vrot.lane.b32.xlu2 %v7664_v10, %s7308_s30  ;;  %2378 = vrot.lane.b32.xlu0 %v7664_v10, %s7302_s9  ;;  %v560_v46 = vrot.slane %v7859_v22, 4  ;;  %v7928_v60 = vsel %vm374_vm2, %v834_v55, %v7853_v4 }
 0x1c0   :  { %2408 = vrot.lane.b32.xlu1 %v7664_v10, %s7309_s3  ;;  %v8022_v27 = vperm.slane %v7928_v60, %v7692_v20 }
 0x1c1   :  { %v7830_v62 = vpop.permute.xlu0 %297 }
 0x1c2   :  { %11915 = vst [vmem:[#allocation38_spill] sm:$0xff] %v7830_v62  ;;  %v7842_v15 = vpop.permute.xlu1 %291  ;;  %v610_v42 = vrot.slane %v7830_v62, 4  ;;  %v613_v53 = vsel %vm374_vm2, %v7830_v62, %v612_v24 }
 0x1c3   :  { %11916 = vst [vmem:[#allocation39_spill] sm:$0xff] %v7842_v15  ;;  %v598_v54 = vrot.slane %v7842_v15, 4  ;;  %v601_v59 = vsel %vm374_vm2, %v7842_v15, %v600_v2  ;;  %v621_v23 = vperm.slane %v613_v53, %v7692_v20  ;;  %v529_v53 = vperm.slane %v523_v48, %v7692_v20 }
 0x1c4   :  { %v611_v8 = vsel %vm374_vm2, %v610_v42, %v7726_v41  ;;  %v525_v42 = vsel %vm374_vm2, %v7688_v17, %v524_v25  ;;  %v609_v24 = vperm.slane %v601_v59, %v7692_v20 }
 0x1c5   :  { %v599_v35 = vsel %vm374_vm2, %v598_v54, %v7595_v63  ;;  %v617_v29 = vperm.slane %v611_v8, %v7692_v20  ;;  %v7914_v63 = vpop.permute.xlu2 %339  ;;  %v533_v11 = vperm.slane %v525_v42, %v7692_v20  ;;  %v561_v25 = vsel %vm374_vm2, %v529_v53, %v560_v46 }
 0x1c6   :  { %v605_v36 = vperm.slane %v599_v35, %v7692_v20  ;;  %11919 = vst [vmem:[#allocation42_spill] sm:$0xff] %v7914_v63  ;;  %v660_v54 = vrot.slane %v609_v24, 4  ;;  %v658_v7 = vrot.slane %v621_v23, 4  ;;  %v558_v46 = vrot.slane %v529_v53, 4 }
 0x1c7   :  { %3596 = vrot.lane.b32.xlu2 %v7778_v37, %s7305_s27  ;;  %3590 = vrot.lane.b32.xlu0 %v7778_v37, %s7303_s26  ;;  %v569_v55 = vperm.slane %v561_v25, %v7742_v57 }
 0x1c8   :  { %2396 = vrot.lane.b32.xlu1 %v7664_v10, %s7305_s27  ;;  %v648_v43 = vrot.slane %v605_v36, 4  ;;  %v659_v25 = vsel %vm374_vm2, %v658_v7, %v609_v24  ;;  %v559_v7 = vsel %vm374_vm2, %v558_v46, %v7859_v22 }
 0x1c9   :  { %v7903_v32 = vpop.permute.xlu0 %315  ;;  %v586_v46 = vrot.slane %v569_v55, 4 }
 0x1ca   :  { %11917 = vst [vmem:[#allocation40_spill] sm:$0xff] %v7903_v32  ;;  %v622_v2 = vrot.slane %v7903_v32, 4  ;;  %v625_v61 = vsel %vm374_vm2, %v7903_v32, %v624_v40  ;;  %v7910_v49 = vpop.permute.xlu1 %309  ;;  %v823_v40 = vsel %vm374_vm2, %v822_v39, %v7845_v18 }
 0x1cb   :  { %11918 = vst [vmem:[#allocation41_spill] sm:$0xff] %v7910_v49  ;;  %v633_v59 = vperm.slane %v625_v61, %v7692_v20  ;;  %v635_v35 = vsel %vm374_vm2, %v634_v45, %v7910_v49  ;;  %v646_v61 = vrot.slane %v617_v29, 4  ;;  %v636_v32 = vrot.slane %v7910_v49, 4 }
 0x1cc   :  { %v623_v8 = vsel %vm374_vm2, %v622_v2, %v7769_v34  ;;  %v649_v2 = vsel %vm374_vm2, %v617_v29, %v648_v43  ;;  %v661_v45 = vsel %vm374_vm2, %v621_v23, %v660_v54  ;;  %v641_v42 = vperm.slane %v635_v35, %v7692_v20 }
 0x1cd   :  { %v629_v48 = vperm.slane %v623_v8, %v7692_v20  ;;  %v684_v39 = vrot.slane %v633_v59, 4  ;;  %v657_v43 = vperm.slane %v649_v2, %v7742_v57  ;;  %v637_v29 = vsel %vm374_vm2, %v7826_v56, %v636_v32 }
 0x1ce   :  { %v570_v23 = vrot.slane %v533_v11, 4  ;;  %v645_v54 = vperm.slane %v637_v29, %v7692_v20  ;;  %v670_v8 = vrot.slane %v641_v42, 4  ;;  %v647_v53 = vsel %vm374_vm2, %v646_v61, %v605_v36 }
 0x1cf   :  { %v672_v6 = vrot.slane %v629_v48, 4  ;;  %3620 = vrot.lane.b32.xlu2 %v7778_v37, %s7286_s23  ;;  %3614 = vrot.lane.b32.xlu0 %v7778_v37, %s7313_s10  ;;  %v669_v2 = vperm.slane %v661_v45, %v7742_v57  ;;  %v573_v32 = vsel %vm374_vm2, %v533_v11, %v572_v28  ;;  %v700_v56 = vrot.slane %v657_v43, 4  ;;  %v7963_v28 = vpop.permute.xlu2 %357 }
 0x1d0   :  { %2402 = vrot.lane.b32.xlu1 %v7664_v10, %s7310_s14  ;;  %v671_v34 = vsel %vm374_vm2, %v670_v8, %v629_v48  ;;  %v682_v16 = vrot.slane %v645_v54, 4  ;;  %v685_v29 = vsel %vm374_vm2, %v645_v54, %v684_v39  ;;  %v653_v24 = vperm.slane %v647_v53, %v7742_v57  ;;  %11922 = vst [vmem:[#allocation45_spill] sm:$0xff] %v7963_v28 }
 0x1d1   :  { %v673_v35 = vsel %vm374_vm2, %v641_v42, %v672_v6  ;;  %v7946_v1 = vpop.permute.xlu0 %333  ;;  %v677_v6 = vperm.slane %v671_v34, %v7742_v57  ;;  %v693_v42 = vperm.slane %v685_v29, %v7742_v57  ;;  %v665_v11 = vperm.slane %v659_v25, %v7742_v57 }
 0x1d2   :  { %11920 = vst [vmem:[#allocation43_spill] sm:$0xff] %v7946_v1  ;;  %v681_v50 = vperm.slane %v673_v35, %v7742_v57  ;;  %v7957_v36 = vpop.permute.xlu1 %327  ;;  %v683_v48 = vsel %vm374_vm2, %v682_v16, %v633_v59  ;;  %v708_v61 = vrot.slane %v669_v2, 4  ;;  %v588_v54 = vrot.slane %v7887_v19, 4 }
 0x1d3   :  { %11921 = vst [vmem:[#allocation44_spill] sm:$0xff] %v7957_v36  ;;  %v689_v45 = vperm.slane %v683_v48, %v7742_v57  ;;  %v581_v22 = vperm.slane %v573_v32, %v7742_v57  ;;  %v7978_v8 = vperm.slane %v823_v40, %v7692_v20  ;;  %v571_v16 = vsel %vm374_vm2, %v570_v23, %v7849_v51 }
 0x1d4   :  { %v698_v30 = vrot.slane %v681_v50, 4  ;;  %v7971_v39 = vsel %vm374_vm2, %v681_v50, %v700_v56  ;;  %v694_v59 = vrot.slane %v677_v6, 4  ;;  %v7988_v50 = vperm.slane %v559_v7, %v7742_v57 }
 0x1d5   :  { %v946_v35 = vrot.slane %v7971_v39, 4  ;;  %v7994_v53 = vsel %vm374_vm2, %v569_v55, %v588_v54  ;;  %v696_v51 = vrot.slane %v653_v24, 4  ;;  %v704_v23 = vrot.slane %v665_v11, 4 }
 0x1d6   :  { %v7968_v34 = vsel %vm374_vm2, %v698_v30, %v657_v43  ;;  %v706_v30 = vrot.slane %v693_v42, 4  ;;  %v7983_v43 = vsel %vm374_vm2, %v693_v42, %v708_v61  ;;  %v702_v25 = vrot.slane %v689_v45, 4 }
 0x1d7   :  { %3602 = vrot.lane.b32.xlu2 %v7778_v37, %s7288_s12  ;;  %v934_v56 = vrot.slane %v7968_v34, 4  ;;  %v7997_v32 = vperm.slane %v571_v16, %v7742_v57  ;;  %v8001_v29 = vsel %vm374_vm2, %v586_v46, %v7887_v19  ;;  %v594_v42 = vrot.slane %v581_v22, 4 }
 0x1d8   :  { %3584 = vrot.lane.b32.xlu1 %v7778_v37, %s7301_s25  ;;  %v970_v7 = vrot.slane %v7983_v43, 4  ;;  %v8007_v61 = vsel %vm374_vm2, %v677_v6, %v696_v51  ;;  %v8010_v55 = vsel %vm374_vm2, %v706_v30, %v669_v2  ;;  %v695_v54 = vsel %vm374_vm2, %v694_v59, %v653_v24 }
 0x1d9   :  { %v8004_v48 = vpop.permute.xlu0 %351  ;;  %v8014_v16 = vsel %vm374_vm2, %v689_v45, %v704_v23  ;;  %v710_v40 = vrot.slane %v7914_v63, 4  ;;  %v935_v19 = vsel %vm374_vm2, %v934_v56, %v695_v54  ;;  %v947_v46 = vsel %vm374_vm2, %v946_v35, %v8007_v61  ;;  %v2335_v35 = vpop.permute.xlu2 %2334 }
 0x1da   :  { %11923 = vst [vmem:[#allocation46_spill] sm:$0xff] %v8004_v48  ;;  %v8026_v30 = vpop.permute.xlu1 %345  ;;  %v8029_v24 = vsel %vm374_vm2, %v702_v25, %v665_v11  ;;  %v8032_v45 = vperm.slane %v947_v46, %v7692_v20  ;;  %v11925_v59 = vrot.slane %v7870_v0, 4  ;;  %v958_v51 = vrot.slane %v8010_v55, 4 }
 0x1db   :  { %11924 = vst [vmem:[#allocation47_spill] sm:$0xff] %v8026_v30  ;;  %v971_v23 = vsel %vm374_vm2, %v970_v7, %v8014_v16  ;;  %v8046_v11 = vsel %vm374_vm2, %v594_v42, %v7870_v0  ;;  %v712_v25 = vrot.slane %v7957_v36, 4  ;;  %v724_v46 = vrot.slane %v7946_v1, 4 }
 0x1dc   :  { %v8037_v56 = vsel %vm374_vm2, %v581_v22, %v11925_v59  ;;  %v8052_v22 = vperm.slane %v935_v19, %v7692_v20  ;;  %v722_v59 = vrot.slane %v8026_v30, 4  ;;  %v959_v7 = vsel %vm374_vm2, %v958_v51, %v8029_v24 }
 0x1dd   :  { %v11926_v0 = vrot.slane %v7809_v26, 4  ;;  %v11927_v2 = vrot.slane %v7628_v3, 4  ;;  %v8066_v6 = vperm.slane %v959_v7, %v7692_v20  ;;  %v8069_v19 = vperm.slane %v971_v23, %v7692_v20 }
 0x1de   :  { %v2418_v41 = vrot.slane %v2335_v35, 4  ;;  %v711_v51 = vsel %vm374_vm2, %v710_v40, %v7957_v36  ;;  %v725_v13 = vsel %vm374_vm2, %v8026_v30, %v724_v46  ;;  %v748_v49 = vrot.slane %v7963_v28, 4 }
 0x1df   :  { %v847_v42 = vsel %vm374_vm2, %v11926_v0, %v7862_v31  ;;  %v2421_v60 = vsel %vm374_vm2, %v2335_v35, %v11927_v2  ;;  %v713_v2 = vsel %vm374_vm2, %v7914_v63, %v712_v25  ;;  %v1006_v7 = vrot.slane %v8069_v19, 4 }
 0x1e0   :  { %3608 = vrot.lane.b32.xlu1 %v7778_v37, %s7314_s7  ;;  %v982_v37 = vrot.slane %v8032_v45, 4  ;;  %v8084_v35 = vperm.slane %v2421_v60, %v7692_v20  ;;  %v723_v40 = vsel %vm374_vm2, %v722_v59, %v7946_v1  ;;  %v936_v36 = vrot.slane %v695_v54, 4 }
 0x1e1   :  { %v8089_v0 = vpop.permute.xlu0 %369  ;;  %v8092_v30 = vperm.slane %v711_v51, %v7692_v20  ;;  %v733_v25 = vperm.slane %v725_v13, %v7692_v20  ;;  %v2419_v60 = vsel %vm374_vm2, %v2418_v41, %v7628_v3  ;;  %v721_v63 = vperm.slane %v713_v2, %v7692_v20 }
 0x1e2   :  { %v983_v23 = vsel %vm374_vm2, %v982_v37, %v8052_v22  ;;  %11928 = vst [vmem:[#allocation48_spill] sm:$0xff] %v8089_v0  ;;  %v1007_v37 = vsel %vm374_vm2, %v1006_v7, %v8066_v6  ;;  %v8102_v59 = vperm.slane %v847_v42, %v7692_v20  ;;  %v960_v51 = vrot.slane %v8029_v24, 4  ;;  %v8109_v1 = vpop.permute.xlu1 %363 }
 0x1e3   :  { %v989_v46 = vperm.slane %v983_v23, %v7742_v57  ;;  %v1013_v54 = vperm.slane %v1007_v37, %v7742_v57  ;;  %v8105_v23 = vperm.slane %v723_v40, %v7692_v20  ;;  %v746_v13 = vrot.slane %v8089_v0, 4  ;;  %11929 = vst [vmem:[#allocation49_spill] sm:$0xff] %v8109_v1 }
 0x1e4   :  { %v948_v58 = vrot.slane %v8007_v61, 4  ;;  %v937_v2 = vsel %vm374_vm2, %v7968_v34, %v936_v36  ;;  %v760_v42 = vrot.slane %v8092_v30, 4  ;;  %v770_v37 = vrot.slane %v733_v25, 4 }
 0x1e5   :  { %v1032_v7 = vrot.slane %v989_v46, 4  ;;  %v1030_v41 = vrot.slane %v1013_v54, 4  ;;  %v749_v40 = vsel %vm374_vm2, %v8089_v0, %v748_v49  ;;  %v772_v62 = vrot.slane %v721_v63, 4 }
 0x1e6   :  { %v736_v5 = vrot.slane %v8004_v48, 4  ;;  %v734_v61 = vrot.slane %v8109_v1, 4  ;;  %v761_v36 = vsel %vm374_vm2, %v8105_v23, %v760_v42  ;;  %v747_v34 = vsel %vm374_vm2, %v746_v13, %v7963_v28 }
 0x1e7   :  { %v1033_v24 = vsel %vm374_vm2, %v1013_v54, %v1032_v7  ;;  %v1031_v52 = vsel %vm374_vm2, %v1030_v41, %v989_v46  ;;  %v8129_v49 = vperm.slane %v937_v2, %v7692_v20  ;;  %v961_v54 = vsel %vm374_vm2, %v8010_v55, %v960_v51  ;;  %v8153_v51 = vpop.permute.xlu2 %2328 }
 0x1e8   :  { %6697 = vmatpush.xpose.msk.msra.mxu3 %vm4118_vm3, %v1033_v24  ;;  %6693 = vmatpush.xpose.msk.msra.mxu1 %vm4118_vm3, %v1031_v52  ;;  %v8134_v46 = vperm.slane %v749_v40, %v7692_v20  ;;  %v737_v7 = vsel %vm374_vm2, %v8109_v1, %v736_v5  ;;  %v949_v41 = vsel %vm374_vm2, %v7971_v39, %v948_v58  ;;  %v11931_v3 = vrot.slane %v7845_v18, 4 }
 0x1e9   :  { %v8141_v52 = vperm.slane %v961_v54, %v7692_v20  ;;  %v8144_v13 = vperm.slane %v2419_v60, %v7692_v20  ;;  %v8148_v42 = vsel %vm374_vm2, %v770_v37, %v721_v63  ;;  %v8151_v55 = vsel %vm374_vm2, %v733_v25, %v772_v62 }
 0x1ea   :  { %v8156_v5 = vperm.slane %v761_v36, %v7742_v57  ;;  %v8159_v58 = vperm.slane %v747_v34, %v7692_v20  ;;  %v735_v39 = vsel %vm374_vm2, %v734_v61, %v8004_v48  ;;  %v972_v60 = vrot.slane %v8014_v16, 4  ;;  %v8197_v37 = vpop.permute.xlu1 %6892 }
 0x1eb   :  { %v8165_v40 = vperm.slane %v737_v7, %v7692_v20  ;;  %v8168_v63 = vperm.slane %v949_v41, %v7692_v20  ;;  %v996_v62 = vrot.slane %v8129_v49, 4  ;;  %v1020_v25 = vrot.slane %v8141_v52, 4  ;;  %11932 = vst [vmem:[#allocation50_spill] sm:$0xff] %v8197_v37 }
 0x1ec   :  { %v973_v24 = vsel %vm374_vm2, %v7983_v43, %v972_v60  ;;  %v11930_v61 = vrot.slane %v7803_v9, 4  ;;  %v870_v36 = vrot.slane %v8022_v27, 4  ;;  %v984_v41 = vrot.slane %v8052_v22, 4 }
 0x1ed   :  { %v8181_v34 = vperm.slane %v973_v24, %v7692_v20  ;;  %v997_v54 = vsel %vm374_vm2, %v8168_v63, %v996_v62  ;;  %v825_v24 = vsel %vm374_vm2, %v7833_v44, %v11931_v3 }
 0x1ee   :  { %v859_v16 = vsel %vm374_vm2, %v11930_v61, %v7836_v47  ;;  %v1005_v43 = vperm.slane %v997_v54, %v7742_v57  ;;  %v871_v60 = vsel %vm374_vm2, %v870_v36, %v7978_v8  ;;  %v1008_v61 = vrot.slane %v8066_v6, 4 }
 0x1ef   :  { %v8186_v7 = vperm.slane %v859_v16, %v7692_v20  ;;  %v1021_v62 = vsel %vm374_vm2, %v8181_v34, %v1020_v25  ;;  %v877_v16 = vperm.slane %v871_v60, %v7742_v57  ;;  %v985_v54 = vsel %vm374_vm2, %v8032_v45, %v984_v41 }
 0x1f0   :  { %v1029_v36 = vperm.slane %v1021_v62, %v7742_v57  ;;  %v1044_v6 = vrot.slane %v1005_v43, 4  ;;  %v993_v18 = vperm.slane %v985_v54, %v7742_v57  ;;  %v1009_v44 = vsel %vm374_vm2, %v8069_v19, %v1008_v61 }
 0x1f1   :  { %v894_v22 = vrot.slane %v8186_v7, 4  ;;  %v1017_v25 = vperm.slane %v1009_v44, %v7742_v57  ;;  %v920_v2 = vrot.slane %v877_v16, 4  ;;  %v8213_v60 = vperm.slane %v825_v24, %v7692_v20  ;;  %v8228_v44 = vpop.permute.xlu2 %2352 }
 0x1f2   :  { %v1045_v37 = vsel %vm374_vm2, %v1029_v36, %v1044_v6  ;;  %v1042_v41 = vrot.slane %v1029_v36, 4  ;;  %v11933_v62 = vrot.slane %v7853_v4, 4  ;;  %v741_v19 = vperm.slane %v735_v39, %v7692_v20 }
 0x1f3   :  { %v895_v3 = vsel %vm374_vm2, %v894_v22, %v8102_v59  ;;  %6721 = vmatpush.xpose.msk.msra.mxu2 %vm4118_vm3, %v1045_v37  ;;  %v1034_v61 = vrot.slane %v1017_v25, 4  ;;  %v11934_v22 = vrot.slane %v7862_v31, 4  ;;  %v860_v6 = vrot.slane %v7836_v47, 4  ;;  %v2341_v37 = vpop.permute.xlu0 %2340 }
 0x1f4   :  { %v901_v45 = vperm.slane %v895_v3, %v7742_v57  ;;  %v837_v54 = vsel %vm374_vm2, %v7818_v33, %v11933_v62  ;;  %v1043_v4 = vsel %vm374_vm2, %v1042_v41, %v1005_v43  ;;  %v884_v47 = vrot.slane %v8213_v60, 4 }
 0x1f5   :  { %v849_v24 = vsel %vm374_vm2, %v7809_v26, %v11934_v22  ;;  %6717 = vmatpush.xpose.msk.msra.mxu0 %vm4118_vm3, %v1043_v4  ;;  %v8238_v31 = vperm.slane %v837_v54, %v7692_v20  ;;  %v861_v26 = vsel %vm374_vm2, %v7803_v9, %v860_v6  ;;  %v1036_v39 = vrot.slane %v993_v18, 4 }
 0x1f6   :  { %v918_v36 = vrot.slane %v901_v45, 4  ;;  %v921_v3 = vsel %vm374_vm2, %v901_v45, %v920_v2  ;;  %v8233_v33 = vperm.slane %v849_v24, %v7692_v20  ;;  %v796_v43 = vrot.slane %v8165_v40, 4 }
 0x1f7   :  { %6698 = vmatpush.xpose.msk.msra.mxu3 %vm4118_vm3, %v921_v3  ;;  %v8246_v45 = vperm.slane %v861_v26, %v7692_v20  ;;  %v784_v62 = vrot.slane %v741_v19, 4  ;;  %v1035_v54 = vsel %vm374_vm2, %v1034_v61, %v993_v18  ;;  %v885_v9 = vsel %vm374_vm2, %v8238_v31, %v884_v47  ;;  %v8262_v18 = vpop.permute.xlu1 %2358 }
 0x1f8   :  { %v919_v2 = vsel %vm374_vm2, %v918_v36, %v877_v16  ;;  %v908_v41 = vrot.slane %v8233_v33, 4  ;;  %v1037_v22 = vsel %vm374_vm2, %v1017_v25, %v1036_v39  ;;  %v777_v16 = vperm.slane %v8148_v42, %v7742_v57 }
 0x1f9   :  { %6694 = vmatpush.xpose.msk.msra.mxu1 %vm4118_vm3, %v919_v2  ;;  %v893_v6 = vperm.slane %v885_v9, %v7742_v57  ;;  %v11935_v61 = vrot.slane %v8105_v23, 4  ;;  %v782_v4 = vrot.slane %v8159_v58, 4  ;;  %v11936_v42 = vrot.slane %v8134_v46, 4 }
 0x1fa   :  { %v909_v36 = vsel %vm374_vm2, %v8246_v45, %v908_v41  ;;  %v2432_v47 = vrot.slane %v8153_v51, 4  ;;  %v8277_v39 = vperm.slane %v8151_v55, %v7742_v57  ;;  %v872_v23 = vrot.slane %v7978_v8, 4 }
 0x1fb   :  { %6705 = vmatpush.xpose.msk.msrb.mxu3 %vm4118_vm3, %v1037_v22  ;;  %v759_v25 = vsel %vm374_vm2, %v11935_v61, %v8092_v30  ;;  %v795_v3 = vsel %vm374_vm2, %v11936_v42, %v8165_v40  ;;  %v917_v26 = vperm.slane %v909_v36, %v7742_v57  ;;  %v932_v2 = vrot.slane %v893_v6, 4 }
 0x1fc   :  { %v785_v30 = vsel %vm374_vm2, %v8159_v58, %v784_v62  ;;  %v797_v41 = vsel %vm374_vm2, %v8134_v46, %v796_v43  ;;  %v2430_v9 = vrot.slane %v2341_v37, 4  ;;  %v8285_v40 = vperm.slane %v759_v25, %v7742_v57  ;;  %v8297_v62 = vpop.permute.xlu2 %2406 }
 0x1fd   :  { %6701 = vmatpush.xpose.msk.msrb.mxu1 %vm4118_vm3, %v1035_v54  ;;  %v930_v54 = vrot.slane %v917_v26, 4  ;;  %v801_v22 = vperm.slane %v795_v3, %v7742_v57  ;;  %v933_v36 = vsel %vm374_vm2, %v917_v26, %v932_v2  ;;  %v2433_v55 = vsel %vm374_vm2, %v2341_v37, %v2432_v47  ;;  %v2347_v26 = vpop.permute.xlu0 %2346 }
 0x1fe   :  { %v812_v61 = vrot.slane %v8156_v5, 4  ;;  %v816_v8 = vrot.slane %v777_v16, 4  ;;  %v783_v42 = vsel %vm374_vm2, %v782_v4, %v741_v19  ;;  %6722 = vmatpush.xpose.msk.msra.mxu2 %vm4118_vm3, %v933_v36  ;;  %v793_v58 = vperm.slane %v785_v30, %v7742_v57 }
 0x1ff   :  { %v931_v46 = vsel %vm374_vm2, %v930_v54, %v893_v6  ;;  %v805_v43 = vperm.slane %v797_v41, %v7742_v57  ;;  %v873_v37 = vsel %vm374_vm2, %v8022_v27, %v872_v23  ;;  %v896_v25 = vrot.slane %v8102_v59, 4 }
 0x200   :  { %6718 = vmatpush.xpose.msk.msra.mxu0 %vm4118_vm3, %v931_v46  ;;  %v820_v3 = vrot.slane %v8277_v39, 4  ;;  %v2431_v19 = vsel %vm374_vm2, %v2430_v9, %v8153_v51  ;;  %v2441_v6 = vperm.slane %v2433_v55, %v7692_v20  ;;  %v881_v4 = vperm.slane %v873_v37, %v7742_v57 }
 0x201   :  { %v2456_v47 = vrot.slane %v8228_v44, 4  ;;  %v8309_v2 = vperm.slane %v783_v42, %v7742_v57  ;;  %v814_v30 = vrot.slane %v801_v22, 4  ;;  %v897_v27 = vsel %vm374_vm2, %v8186_v7, %v896_v25  ;;  %v2365_v42 = vpop.permute.xlu1 %2364 }
 0x202   :  { %v808_v59 = vrot.slane %v8285_v40, 4  ;;  %v8315_v23 = vsel %vm374_vm2, %v801_v22, %v816_v8  ;;  %v905_v51 = vperm.slane %v897_v27, %v7742_v57  ;;  %v924_v41 = vrot.slane %v881_v4, 4 }
 0x203   :  { %v810_v54 = vrot.slane %v793_v58, 4  ;;  %v8319_v9 = vsel %vm374_vm2, %v805_v43, %v820_v3  ;;  %v2437_v36 = vperm.slane %v2431_v19, %v7692_v20  ;;  %v2444_v55 = vrot.slane %v2347_v26, 4 }
 0x204   :  { %v2478_v46 = vrot.slane %v2441_v6, 4  ;;  %v922_v37 = vrot.slane %v905_v51, 4  ;;  %v925_v7 = vsel %vm374_vm2, %v905_v51, %v924_v41  ;;  %v2442_v25 = vrot.slane %v8262_v18, 4 }
 0x205   :  { %v806_v22 = vrot.slane %v8309_v2, 4  ;;  %v8326_v8 = vsel %vm374_vm2, %v814_v30, %v777_v16  ;;  %v818_v27 = vrot.slane %v805_v43, 4  ;;  %6706 = vmatpush.xpose.msk.msrb.mxu3 %vm4118_vm3, %v925_v7  ;;  %v1194_v3 = vrot.slane %v8319_v9, 4  ;;  %v2395_v7 = vpop.permute.xlu2 %2394 }
 0x206   :  { %v923_v19 = vsel %vm374_vm2, %v922_v37, %v881_v4  ;;  %v2454_v28 = vrot.slane %v2365_v42, 4  ;;  %v2457_v0 = vsel %vm374_vm2, %v2365_v42, %v2456_v47  ;;  %v2466_v51 = vrot.slane %v2437_v36, 4 }
 0x207   :  { %v11937_v41 = vrot.slane %v8144_v13, 4  ;;  %v11938_v16 = vrot.slane %v8084_v35, 4  ;;  %6702 = vmatpush.xpose.msk.msrb.mxu1 %vm4118_vm3, %v923_v19  ;;  %v2445_v30 = vsel %vm374_vm2, %v8262_v18, %v2444_v55  ;;  %v2479_v4 = vsel %vm374_vm2, %v2478_v46, %v8084_v35 }
 0x208   :  { %v2443_v37 = vsel %vm374_vm2, %v2442_v25, %v2347_v26  ;;  %v2465_v47 = vperm.slane %v2457_v0, %v7692_v20  ;;  %v8348_v42 = vsel %vm374_vm2, %v810_v54, %v8156_v5  ;;  %v8356_v18 = vsel %vm374_vm2, %v793_v58, %v812_v61 }
 0x209   :  { %v2469_v1 = vsel %vm374_vm2, %v2437_v36, %v11937_v41  ;;  %v2481_v43 = vsel %vm374_vm2, %v2441_v6, %v11938_v16  ;;  %v8352_v36 = vsel %vm374_vm2, %v818_v27, %v8277_v39  ;;  %v2554_v6 = vrot.slane %v8297_v62, 4 }
 0x20a   :  { %v1158_v35 = vrot.slane %v8348_v42, 4  ;;  %v8360_v26 = vperm.slane %v2469_v1, %v7742_v57  ;;  %v8363_v0 = vperm.slane %v2481_v43, %v7742_v57  ;;  %v2453_v5 = vperm.slane %v2445_v30, %v7692_v20 }
 0x20b   :  { %v2455_v39 = vsel %vm374_vm2, %v2454_v28, %v8228_v44  ;;  %v2467_v55 = vsel %vm374_vm2, %v2466_v51, %v8144_v13  ;;  %v8372_v61 = vperm.slane %v2479_v4, %v7742_v57  ;;  %v2449_v58 = vperm.slane %v2443_v37, %v7692_v20 }
 0x20c   :  { %v2555_v1 = vsel %vm374_vm2, %v2554_v6, %v2395_v7  ;;  %v2502_v46 = vrot.slane %v2465_v47, 4  ;;  %v8378_v25 = vsel %vm374_vm2, %v806_v22, %v8285_v40  ;;  %v1170_v27 = vrot.slane %v8356_v18, 4 }
 0x20d   :  { %v1182_v28 = vrot.slane %v8352_v36, 4  ;;  %v2556_v44 = vrot.slane %v2395_v7, 4  ;;  %v2461_v19 = vperm.slane %v2455_v39, %v7692_v20  ;;  %v1159_v13 = vsel %vm374_vm2, %v1158_v35, %v8378_v25  ;;  %v2401_v12 = vpop.permute.xlu2 %2400 }
 0x20e   :  { %v8386_v51 = vperm.slane %v2467_v55, %v7742_v57  ;;  %v2528_v16 = vrot.slane %v8363_v0, 4  ;;  %v2504_v43 = vrot.slane %v2453_v5, 4  ;;  %v2524_v40 = vrot.slane %v8372_v61, 4 }
 0x20f   :  { %v8392_v22 = vperm.slane %v2555_v1, %v7692_v20  ;;  %v2492_v30 = vrot.slane %v2449_v58, 4  ;;  %v8396_v4 = vsel %vm374_vm2, %v8309_v2, %v808_v59  ;;  %v2503_v37 = vsel %vm374_vm2, %v2502_v46, %v2453_v5 }
 0x210   :  { %v2505_v6 = vsel %vm374_vm2, %v2465_v47, %v2504_v43  ;;  %v8401_v7 = vperm.slane %v1159_v13, %v7692_v20  ;;  %v1171_v35 = vsel %vm374_vm2, %v1170_v27, %v8396_v4  ;;  %v2557_v39 = vsel %vm374_vm2, %v8297_v62, %v2556_v44  ;;  %v8419_v27 = vpop.permute.xlu0 %2370 }
 0x211   :  { %v2490_v55 = vrot.slane %v2461_v19, 4  ;;  %v1183_v1 = vsel %vm374_vm2, %v1182_v28, %v8326_v8  ;;  %v1195_v2 = vsel %vm374_vm2, %v1194_v3, %v8315_v23  ;;  %v2493_v59 = vsel %vm374_vm2, %v2461_v19, %v2492_v30 }
 0x212   :  { %11939 = vst [vmem:[#allocation51_spill] sm:$0xff] %v8401_v7  ;;  %v8413_v47 = vperm.slane %v1171_v35, %v7692_v20  ;;  %v8416_v5 = vperm.slane %v1183_v1, %v7692_v20  ;;  %v1208_v46 = vrot.slane %v8401_v7, 4  ;;  %v2509_v62 = vperm.slane %v2503_v37, %v7742_v57 }
 0x213   :  { %v2513_v44 = vperm.slane %v2505_v6, %v7742_v57  ;;  %v8424_v28 = vperm.slane %v1195_v2, %v7692_v20  ;;  %v11943_v3 = vrot.slane %v7988_v50, 4  ;;  %v11944_v30 = vrot.slane %v7856_v14, 4 }
 0x214   :  { %11940 = vst [vmem:[#allocation52_spill] sm:$0xff] %v8413_v47  ;;  %v1209_v13 = vsel %vm374_vm2, %v8413_v47, %v1208_v46  ;;  %v1232_v43 = vrot.slane %v8416_v5, 4  ;;  %v11945_v6 = vrot.slane %v8001_v29, 4  ;;  %v11946_v2 = vrot.slane %v7997_v32, 4 }
 0x215   :  { %11941 = vst [vmem:[#allocation53_spill] sm:$0xff] %v8416_v5  ;;  %v8430_v19 = vsel %vm374_vm2, %v11943_v3, %v7856_v14  ;;  %v8439_v37 = vsel %vm374_vm2, %v7988_v50, %v11944_v30  ;;  %v1217_v1 = vperm.slane %v1209_v13, %v7742_v57  ;;  %v11948_v14 = vrot.slane %v7994_v53, 4 }
 0x216   :  { %11942 = vst [vmem:[#allocation54_spill] sm:$0xff] %v8424_v28  ;;  %v1047_v35 = vsel %vm374_vm2, %v11945_v6, %v8430_v19  ;;  %v8450_v46 = vsel %vm374_vm2, %v11946_v2, %v7840_v21  ;;  %v2501_v30 = vperm.slane %v2493_v59, %v7742_v57  ;;  %v1233_v6 = vsel %vm374_vm2, %v8424_v28, %v1232_v43 }
 0x217   :  { %v8453_v3 = vperm.slane %v1047_v35, %v7692_v20  ;;  %v1059_v50 = vsel %vm374_vm2, %v11948_v14, %v8439_v37  ;;  %v11949_v13 = vrot.slane %v7840_v21, 4  ;;  %v1070_v2 = vrot.slane %v8046_v11, 4 }
 0x218   :  { %v2491_v35 = vsel %vm374_vm2, %v2490_v55, %v2449_v58  ;;  %v1241_v54 = vperm.slane %v1233_v6, %v7742_v57  ;;  %v1260_v41 = vrot.slane %v1217_v1, 4  ;;  %v1082_v14 = vrot.slane %v8037_v56, 4 }
 0x219   :  { %11947 = vst [vmem:[#allocation55_spill] sm:$0xff] %v8453_v3  ;;  %v8466_v24 = vsel %vm374_vm2, %v7997_v32, %v11949_v13  ;;  %v2522_v48 = vrot.slane %v2509_v62, 4  ;;  %v8473_v59 = vperm.slane %v1059_v50, %v7692_v20  ;;  %v1071_v21 = vsel %vm374_vm2, %v1070_v2, %v8450_v46  ;;  %v8478_v32 = vpop.permute.xlu1 %2382 }
 0x21a   :  { %v1096_v43 = vrot.slane %v8453_v3, 4  ;;  %v1258_v13 = vrot.slane %v1241_v54, 4  ;;  %v1261_v17 = vsel %vm374_vm2, %v1241_v54, %v1260_v41  ;;  %v8482_v58 = vperm.slane %v1071_v21, %v7692_v20 }
 0x21b   :  { %11950 = vst [vmem:[#allocation56_spill] sm:$0xff] %v8473_v59  ;;  %v1083_v55 = vsel %vm374_vm2, %v1082_v14, %v8466_v24  ;;  %v2516_v6 = vrot.slane %v8386_v51, 4  ;;  %v8488_v50 = vperm.slane %v2557_v39, %v7692_v20  ;;  %v2526_v15 = vrot.slane %v2513_v44, 4  ;;  %6737 = vmatpush.xpose.msk.msrb.mxu2 %vm4118_vm3, %v1261_v17 }
 0x21c   :  { %11951 = vst [vmem:[#allocation57_spill] sm:$0xff] %v8482_v58  ;;  %v1097_v2 = vsel %vm374_vm2, %v8473_v59, %v1096_v43  ;;  %v1259_v54 = vsel %vm374_vm2, %v1258_v13, %v1217_v1  ;;  %v8495_v41 = vperm.slane %v1083_v55, %v7692_v20  ;;  %v1120_v14 = vrot.slane %v8482_v58, 4 }
 0x21d   :  { %v1105_v21 = vperm.slane %v1097_v2, %v7742_v57  ;;  %v2497_v3 = vperm.slane %v2491_v35, %v7742_v57  ;;  %v2523_v39 = vsel %vm374_vm2, %v2522_v48, %v8372_v61  ;;  %v2525_v17 = vsel %vm374_vm2, %v2509_v62, %v2524_v40  ;;  %6733 = vmatpush.xpose.msk.msrb.mxu0 %vm4118_vm3, %v1259_v54  ;;  %v2413_v2 = vpop.permute.xlu0 %2412 }
 0x21e   :  { %11952 = vst [vmem:[#allocation58_spill] sm:$0xff] %v8495_v41  ;;  %v2529_v5 = vsel %vm374_vm2, %v2513_v44, %v2528_v16  ;;  %v2518_v43 = vrot.slane %v2501_v30, 4  ;;  %v1121_v13 = vsel %vm374_vm2, %v8495_v41, %v1120_v14  ;;  %v2568_v58 = vrot.slane %v2401_v12, 4 }
 0x21f   :  { %v1148_v55 = vrot.slane %v1105_v21, 4  ;;  %v2532_v35 = vrot.slane %v8419_v27, 4  ;;  %v11953_v59 = vrot.slane %v8360_v26, 4  ;;  %v1129_v61 = vperm.slane %v1121_v13, %v7742_v57 }
 0x220   :  { %v2527_v16 = vsel %vm374_vm2, %v2526_v15, %v8363_v0  ;;  %v2892_v40 = vrot.slane %v2523_v39, 4  ;;  %v2902_v62 = vrot.slane %v2529_v5, 4  ;;  %v2904_v44 = vrot.slane %v2525_v17, 4 }
 0x221   :  { %v8512_v48 = vsel %vm374_vm2, %v2501_v30, %v11953_v59  ;;  %v2616_v54 = vrot.slane %v8488_v50, 4  ;;  %v2514_v14 = vrot.slane %v2497_v3, 4  ;;  %v1146_v1 = vrot.slane %v1129_v61, 4  ;;  %v8529_v38 = vpop.permute.xlu1 %2388 }
 0x222   :  { %v1149_v41 = vsel %vm374_vm2, %v1129_v61, %v1148_v55  ;;  %v8521_v7 = vsel %vm374_vm2, %v2518_v43, %v8360_v26  ;;  %v2878_v30 = vrot.slane %v8512_v48, 4  ;;  %v2890_v15 = vrot.slane %v2527_v16, 4 }
 0x223   :  { %6738 = vmatpush.xpose.msk.msrb.mxu2 %vm4118_vm3, %v1149_v41  ;;  %v1147_v0 = vsel %vm374_vm2, %v1146_v1, %v1105_v21  ;;  %v2566_v28 = vrot.slane %v2413_v2, 4  ;;  %v2569_v47 = vsel %vm374_vm2, %v2413_v2, %v2568_v58  ;;  %v8532_v55 = vsel %vm374_vm2, %v2527_v16, %v2892_v40  ;;  %v8551_v2 = vpop.permute.xlu2 %2360 }
 0x224   :  { %v2903_v26 = vsel %vm374_vm2, %v2902_v62, %v2525_v17  ;;  %v8536_v43 = vsel %vm374_vm2, %v2529_v5, %v2904_v44  ;;  %6734 = vmatpush.xpose.msk.msrb.mxu0 %vm4118_vm3, %v1147_v0  ;;  %v8543_v21 = vsel %vm374_vm2, %v2514_v14, %v8386_v51  ;;  %v8546_v58 = vsel %vm374_vm2, %v2497_v3, %v2516_v6 }
 0x225   :  { %v2866_v1 = vrot.slane %v8521_v7, 4  ;;  %v2577_v16 = vperm.slane %v2569_v47, %v7692_v20  ;;  %v2879_v40 = vsel %vm374_vm2, %v2878_v30, %v8546_v58  ;;  %v2567_v62 = vsel %vm374_vm2, %v2566_v28, %v2401_v12  ;;  %v2337_v44 = vpop.permute.xlu0 %2336 }
 0x226   :  { %v2530_v51 = vrot.slane %v8478_v32, 4  ;;  %v8561_v6 = vperm.slane %v2879_v40, %v7692_v20  ;;  %v2891_v0 = vsel %vm374_vm2, %v2890_v15, %v2523_v39  ;;  %v8568_v47 = vperm.slane %v2903_v26, %v7692_v20 }
 0x227   :  { %v2867_v3 = vsel %vm374_vm2, %v2866_v1, %v8543_v21  ;;  %v994_v30 = vrot.slane %v8168_v63, 4  ;;  %v2533_v28 = vsel %vm374_vm2, %v8478_v32, %v2532_v35  ;;  %v8575_v1 = vperm.slane %v2891_v0, %v7692_v20 }
 0x228   :  { %v8564_v14 = vperm.slane %v2867_v3, %v7692_v20  ;;  %v2914_v40 = vrot.slane %v8561_v6, 4  ;;  %v2573_v3 = vperm.slane %v2567_v62, %v7692_v20  ;;  %v2938_v5 = vrot.slane %v8568_v47, 4 }
 0x229   :  { %v995_v39 = vsel %vm374_vm2, %v994_v30, %v8129_v49  ;;  %v1018_v15 = vrot.slane %v8181_v34, 4  ;;  %v2614_v63 = vrot.slane %v2577_v16, 4  ;;  %v2617_v26 = vsel %vm374_vm2, %v2577_v16, %v2616_v54 }
 0x22a   :  { %v2915_v32 = vsel %vm374_vm2, %v2914_v40, %v8564_v14  ;;  %v1001_v35 = vperm.slane %v995_v39, %v7742_v57  ;;  %v2531_v0 = vsel %vm374_vm2, %v2530_v51, %v8419_v27  ;;  %v2939_v12 = vsel %vm374_vm2, %v2938_v5, %v8575_v1  ;;  %v2377_v40 = vpop.permute.xlu1 %2376 }
 0x22b   :  { %v2921_v62 = vperm.slane %v2915_v32, %v7742_v57  ;;  %v1019_v49 = vsel %vm374_vm2, %v1018_v15, %v8141_v52  ;;  %v8595_v34 = vperm.slane %v2533_v28, %v7692_v20  ;;  %v2945_v54 = vperm.slane %v2939_v12, %v7742_v57  ;;  %v8608_v17 = vpop.permute.xlu2 %2366 }
 0x22c   :  { %v1025_v16 = vperm.slane %v1019_v49, %v7742_v57  ;;  %v1040_v30 = vrot.slane %v1001_v35, 4  ;;  %v2602_v39 = vrot.slane %v2573_v3, 4  ;;  %v11954_v27 = vrot.slane %v8392_v22, 4 }
 0x22d   :  { %v2542_v32 = vrot.slane %v8529_v38, 4  ;;  %v2964_v5 = vrot.slane %v2921_v62, 4  ;;  %v2615_v52 = vsel %vm374_vm2, %v2614_v63, %v8488_v50  ;;  %v8606_v28 = vperm.slane %v2617_v26, %v7742_v57 }
 0x22e   :  { %v2605_v51 = vsel %vm374_vm2, %v2573_v3, %v11954_v27  ;;  %v2962_v15 = vrot.slane %v2945_v54, 4  ;;  %v1038_v12 = vrot.slane %v1025_v16, 4  ;;  %v2642_v49 = vrot.slane %v2337_v44, 4 }
 0x22f   :  { %v2965_v41 = vsel %vm374_vm2, %v2945_v54, %v2964_v5  ;;  %v2543_v61 = vsel %vm374_vm2, %v2542_v32, %v2377_v40  ;;  %v2544_v13 = vrot.slane %v2377_v40, 4  ;;  %v1041_v27 = vsel %vm374_vm2, %v1025_v16, %v1040_v30 }
 0x230   :  { %v2963_v3 = vsel %vm374_vm2, %v2962_v15, %v2921_v62  ;;  %6699 = vmatmul.msk.f32.vlgmr.msra.gmra.mxu3 %vm4118_vm3, %v2965_v41  ;;  %v882_v50 = vrot.slane %v8238_v31, 4  ;;  %v906_v63 = vrot.slane %v8246_v45, 4  ;;  %v8618_v26 = vperm.slane %v2605_v51, %v7742_v57  ;;  %v8627_v41 = vpop.permute.xlu0 %2330 }
 0x231   :  { %v8621_v59 = vperm.slane %v2615_v52, %v7742_v57  ;;  %v2644_v54 = vrot.slane %v7664_v10, 4  ;;  %6695 = vmatmul.msk.f32.vlgmr.msra.gmra.mxu1 %vm4118_vm3, %v2963_v3  ;;  %v1039_v62 = vsel %vm374_vm2, %v1038_v12, %v1001_v35  ;;  %6713 = vmatpush.xpose.msk.msra.mxu3 %vm4118_vm3, %v1041_v27  ;;  %v2603_v31 = vsel %vm374_vm2, %v2602_v39, %v8392_v22 }
 0x232   :  { %v2638_v45 = vrot.slane %v8606_v28, 4  ;;  %v8633_v16 = vperm.slane %v2531_v0, %v7692_v20  ;;  %v2678_v30 = vrot.slane %v8608_v17, 4  ;;  %6709 = vmatpush.xpose.msk.msra.mxu1 %vm4118_vm3, %v1039_v62  ;;  %v2643_v40 = vsel %vm374_vm2, %v2642_v49, %v7664_v10 }
 0x233   :  { %v2645_v35 = vsel %vm374_vm2, %v2337_v44, %v2644_v54  ;;  %v2868_v51 = vrot.slane %v8543_v21, 4  ;;  %v8642_v32 = vperm.slane %v2543_v61, %v7692_v20  ;;  %v2545_v22 = vsel %vm374_vm2, %v8529_v38, %v2544_v13 }
 0x234   :  { %v883_v0 = vsel %vm374_vm2, %v882_v50, %v8213_v60  ;;  %v907_v39 = vsel %vm374_vm2, %v906_v63, %v8233_v33  ;;  %v2880_v5 = vrot.slane %v8546_v58, 4  ;;  %v8652_v10 = vperm.slane %v2603_v31, %v7742_v57 }
 0x235   :  { %v2630_v44 = vrot.slane %v8618_v26, 4  ;;  %v2592_v61 = vrot.slane %v8595_v34, 4  ;;  %v2580_v52 = vrot.slane %v8633_v16, 4  ;;  %v8659_v38 = vperm.slane %v2643_v40, %v7692_v20  ;;  %v8693_v40 = vpop.permute.xlu1 %2342 }
 0x236   :  { %v8662_v60 = vperm.slane %v2645_v35, %v7692_v20  ;;  %v2656_v33 = vrot.slane %v8627_v41, 4  ;;  %v8666_v13 = vperm.slane %v2545_v22, %v7692_v20  ;;  %v889_v58 = vperm.slane %v883_v0, %v7742_v57 }
 0x237   :  { %v913_v15 = vperm.slane %v907_v39, %v7742_v57  ;;  %v2869_v12 = vsel %vm374_vm2, %v8521_v7, %v2868_v51  ;;  %v2578_v49 = vrot.slane %v8642_v32, 4  ;;  %v2881_v27 = vsel %vm374_vm2, %v8512_v48, %v2880_v5 }
 0x238   :  { %v8674_v3 = vperm.slane %v2869_v12, %v7692_v20  ;;  %v8680_v50 = vperm.slane %v8532_v55, %v7692_v20  ;;  %v8683_v54 = vperm.slane %v2881_v27, %v7692_v20  ;;  %v8687_v62 = vperm.slane %v8536_v43, %v7692_v20  ;;  %v8716_v12 = vpop.permute.xlu0 %2354 }
 0x239   :  { %v926_v63 = vrot.slane %v913_v15, 4  ;;  %v11955_v7 = vrot.slane %v8378_v25, 4  ;;  %v11956_v51 = vrot.slane %v8396_v4, 4  ;;  %v11958_v39 = vrot.slane %v8315_v23, 4 }
 0x23a   :  { %v2928_v48 = vrot.slane %v8674_v3, 4  ;;  %v2952_v55 = vrot.slane %v8680_v50, 4 }
 0x23b   :  { %v1161_v31 = vsel %vm374_vm2, %v8348_v42, %v11955_v7  ;;  %v1173_v43 = vsel %vm374_vm2, %v8356_v18, %v11956_v51  ;;  %v927_v22 = vsel %vm374_vm2, %v926_v63, %v889_v58  ;;  %v11957_v42 = vrot.slane %v8326_v8, 4 }
 0x23c   :  { %v8698_v35 = vperm.slane %v1161_v31, %v7692_v20  ;;  %v8706_v25 = vperm.slane %v1173_v43, %v7692_v20  ;;  %v1197_v5 = vsel %vm374_vm2, %v8319_v9, %v11958_v39  ;;  %6710 = vmatpush.xpose.msk.msra.mxu1 %vm4118_vm3, %v927_v22  ;;  %v2929_v18 = vsel %vm374_vm2, %v8683_v54, %v2928_v48 }
 0x23d   :  { %v1185_v0 = vsel %vm374_vm2, %v8352_v36, %v11957_v42  ;;  %v2953_v4 = vsel %vm374_vm2, %v8687_v62, %v2952_v55  ;;  %v8727_v36 = vperm.slane %v1197_v5, %v7692_v20  ;;  %v2937_v23 = vperm.slane %v2929_v18, %v7742_v57 }
 0x23e   :  { %v8724_v8 = vperm.slane %v1185_v0, %v7692_v20  ;;  %v2961_v9 = vperm.slane %v2953_v4, %v7742_v57  ;;  %v1220_v27 = vrot.slane %v8698_v35, 4  ;;  %v928_v63 = vrot.slane %v889_v58, 4 }
 0x23f   :  { %v11959_v31 = vrot.slane %v8430_v19, 4  ;;  %v11960_v55 = vrot.slane %v8439_v37, 4  ;;  %v11961_v43 = vrot.slane %v8450_v46, 4  ;;  %v2976_v19 = vrot.slane %v2937_v23, 4 }
 0x240   :  { %v1244_v7 = vrot.slane %v8724_v8, 4  ;;  %v2974_v42 = vrot.slane %v2961_v9, 4  ;;  %v1221_v58 = vsel %vm374_vm2, %v8706_v25, %v1220_v27  ;;  %v929_v0 = vsel %vm374_vm2, %v913_v15, %v928_v63 }
 0x241   :  { %v1049_v48 = vsel %vm374_vm2, %v8001_v29, %v11959_v31  ;;  %v1061_v51 = vsel %vm374_vm2, %v7994_v53, %v11960_v55  ;;  %v1073_v22 = vsel %vm374_vm2, %v8046_v11, %v11961_v43  ;;  %v2581_v29 = vsel %vm374_vm2, %v8642_v32, %v2580_v52  ;;  %6714 = vmatpush.xpose.msk.msra.mxu3 %vm4118_vm3, %v929_v0  ;;  %v2349_v31 = vpop.permute.xlu1 %2348 }
 0x242   :  { %v1229_v37 = vperm.slane %v1221_v58, %v7742_v57  ;;  %v1245_v53 = vsel %vm374_vm2, %v8727_v36, %v1244_v7  ;;  %v8755_v46 = vperm.slane %v1049_v48, %v7692_v20  ;;  %v2975_v11 = vsel %vm374_vm2, %v2974_v42, %v2937_v23  ;;  %v8792_v58 = vpop.permute.xlu0 %2384 }
 0x243   :  { %v1253_v39 = vperm.slane %v1245_v53, %v7742_v57  ;;  %v2977_v15 = vsel %vm374_vm2, %v2961_v9, %v2976_v19  ;;  %v8761_v5 = vperm.slane %v1073_v22, %v7692_v20  ;;  %6719 = vmatmul.msk.f32.vlgmr.msra.gmra.mxu0 %vm4118_vm3, %v2975_v11  ;;  %v8766_v52 = vperm.slane %v1061_v51, %v7692_v20 }
 0x244   :  { %6723 = vmatmul.msk.f32.vlgmr.msra.gmra.mxu2 %vm4118_vm3, %v2977_v15  ;;  %v1268_v32 = vrot.slane %v1229_v37, 4  ;;  %v11962_v18 = vrot.slane %v8466_v24, 4  ;;  %v1108_v23 = vrot.slane %v8755_v46, 4  ;;  %v8774_v9 = vperm.slane %v2581_v29, %v7742_v57 }
 0x245   :  { %v1266_v27 = vrot.slane %v1253_v39, 4  ;;  %v1132_v7 = vrot.slane %v8761_v5, 4  ;;  %v2579_v48 = vsel %vm374_vm2, %v2578_v49, %v8633_v16  ;;  %v2590_v24 = vrot.slane %v8666_v13, 4 }
 0x246   :  { %v1085_v4 = vsel %vm374_vm2, %v8037_v56, %v11962_v18  ;;  %v1269_v55 = vsel %vm374_vm2, %v1253_v39, %v1268_v32  ;;  %v1109_v56 = vsel %vm374_vm2, %v8766_v52, %v1108_v23  ;;  %v2654_v42 = vrot.slane %v8693_v40, 4  ;;  %v8812_v39 = vpop.permute.xlu2 %2372 }
 0x247   :  { %v8777_v63 = vperm.slane %v1085_v4, %v7692_v20  ;;  %v1267_v51 = vsel %vm374_vm2, %v1266_v27, %v1229_v37  ;;  %6753 = vmatpush.xpose.msk.msra.mxu2 %vm4118_vm3, %v1269_v55  ;;  %v1117_v43 = vperm.slane %v1109_v56, %v7742_v57  ;;  %v2679_v49 = vsel %vm374_vm2, %v2678_v30, %v8716_v12 }
 0x248   :  { %6749 = vmatpush.xpose.msk.msra.mxu0 %vm4118_vm3, %v1267_v51  ;;  %v2680_v0 = vrot.slane %v8716_v12, 4  ;;  %v2657_v19 = vsel %vm374_vm2, %v8693_v40, %v2656_v33  ;;  %v2692_v29 = vrot.slane %v8659_v38, 4  ;;  %v2593_v37 = vsel %vm374_vm2, %v8666_v13, %v2592_v61 }
 0x249   :  { %v1133_v22 = vsel %vm374_vm2, %v8777_v63, %v1132_v7  ;;  %v1156_v53 = vrot.slane %v1117_v43, 4  ;;  %v2655_v11 = vsel %vm374_vm2, %v2654_v42, %v8627_v41  ;;  %v8815_v30 = vperm.slane %v2579_v48, %v7742_v57 }
 0x24a   :  { %v1141_v16 = vperm.slane %v1133_v22, %v7742_v57  ;;  %v2591_v12 = vsel %vm374_vm2, %v2590_v24, %v8595_v34  ;;  %v2661_v40 = vperm.slane %v2655_v11, %v7692_v20  ;;  %v8824_v61 = vsel %vm374_vm2, %v2630_v44, %v8774_v9  ;;  %v3565_v11 = vpop.f32.mrf.mxu1 }
 0x24b   :  { %v2685_v41 = vperm.slane %v2679_v49, %v7692_v20  ;;  %v2665_v15 = vperm.slane %v2657_v19, %v7692_v20  ;;  %v2626_v32 = vrot.slane %v8652_v10, 4  ;;  %v2704_v18 = vrot.slane %v8662_v60, 4 }
 0x24c   :  { %v1154_v33 = vrot.slane %v1141_v16, 4  ;;  %v1157_v13 = vsel %vm374_vm2, %v1141_v16, %v1156_v53  ;;  %v2681_v4 = vsel %vm374_vm2, %v8608_v17, %v2680_v0  ;;  %v2756_v44 = vrot.slane %v8812_v39, 4  ;;  %v8854_v16 = vpop.permute.xlu1 %3543 }
 0x24d   :  { %6754 = vmatpush.xpose.msk.msra.mxu2 %vm4118_vm3, %v1157_v13  ;;  %v8837_v23 = vperm.slane %v2593_v37, %v7742_v57  ;;  %v2690_v27 = vrot.slane %v2661_v40, 4  ;;  %v2693_v7 = vsel %vm374_vm2, %v2661_v40, %v2692_v29  ;;  %v8842_v48 = vperm.slane %v2591_v12, %v7742_v57 }
 0x24e   :  { %v1155_v34 = vsel %vm374_vm2, %v1154_v33, %v1117_v43  ;;  %v8846_v24 = vsel %vm374_vm2, %v2626_v32, %v8815_v30  ;;  %v2632_v55 = vrot.slane %v8774_v9, 4  ;;  %v3090_v17 = vrot.slane %v8824_v61, 4  ;;  %v8869_v33 = vpop.permute.xlu0 %2390 }
 0x24f   :  { %6750 = vmatpush.xpose.msk.msra.mxu0 %vm4118_vm3, %v1155_v34  ;;  %v2689_v56 = vperm.slane %v2681_v4, %v7692_v20  ;;  %v2714_v51 = vrot.slane %v2685_v41, 4  ;;  %v2702_v43 = vrot.slane %v2665_v15, 4  ;;  %v11963_v22 = vrot.slane %v8551_v2, 4 }
 0x250   :  { %v2701_v49 = vperm.slane %v2693_v7, %v7742_v57  ;;  %v2705_v0 = vsel %vm374_vm2, %v2665_v15, %v2704_v18  ;;  %v2668_v19 = vrot.slane %v2349_v31, 4  ;;  %v2628_v9 = vrot.slane %v8815_v30, 4 }
 0x251   :  { %v2667_v42 = vsel %vm374_vm2, %v11963_v22, %v2349_v31  ;;  %v8864_v37 = vsel %vm374_vm2, %v2638_v45, %v8837_v23  ;;  %v2640_v53 = vrot.slane %v8837_v23, 4  ;;  %v2691_v12 = vsel %vm374_vm2, %v2690_v27, %v8659_v38 }
 0x252   :  { %v2673_v29 = vperm.slane %v2667_v42, %v7692_v20  ;;  %11964 = vst [vmem:[#allocation59_spill] sm:$0xff] %v8864_v37  ;;  %v2669_v31 = vsel %vm374_vm2, %v8551_v2, %v2668_v19  ;;  %v8875_v13 = vadd.f32 %v3565_v11, %v8854_v16  ;;  %v2726_v15 = vrot.slane %v2689_v56, 4 }
 0x253   :  { %v2713_v45 = vperm.slane %v2705_v0, %v7742_v57  ;;  %v2677_v32 = vperm.slane %v2669_v31, %v7692_v20  ;;  %v2697_v38 = vperm.slane %v2691_v12, %v7742_v57  ;;  %v2703_v34 = vsel %vm374_vm2, %v2702_v43, %v8662_v60 }
 0x254   :  { %v2715_v40 = vsel %vm374_vm2, %v2714_v51, %v2673_v29  ;;  %v2716_v30 = vrot.slane %v2673_v29, 4  ;;  %11965 = vst [vmem:[#allocation60_spill] sm:$0xff] %v8875_v13  ;;  %v2744_v4 = vrot.slane %v2701_v49, 4  ;;  %3586 = vrot.lane.b32.xlu0 %v8875_v13, %s7301_s25  ;;  %3592 = vrot.lane.b32.xlu2 %v8875_v13, %s7303_s26  ;;  %v8894_v60 = vsel %vm374_vm2, %v8618_v26, %v2632_v55 }
 0x255   :  { %v2721_v18 = vperm.slane %v2715_v40, %v7742_v57  ;;  %v2727_v27 = vsel %vm374_vm2, %v2726_v15, %v2677_v32  ;;  %v2728_v7 = vrot.slane %v2677_v32, 4  ;;  %3598 = vrot.lane.b32.xlu1 %v8875_v13, %s7305_s27  ;;  %v2754_v43 = vrot.slane %v8792_v58, 4 }
 0x256   :  { %v2717_v2 = vsel %vm374_vm2, %v2685_v41, %v2716_v30  ;;  %v2733_v22 = vperm.slane %v2727_v27, %v7742_v57  ;;  %v2709_v42 = vperm.slane %v2703_v34, %v7742_v57  ;;  %v8904_v11 = vsel %vm374_vm2, %v3090_v17, %v8846_v24 }
 0x257   :  { %v2725_v23 = vperm.slane %v2717_v2, %v7742_v57  ;;  %v2738_v51 = vrot.slane %v2721_v18, 4  ;;  %v2729_v0 = vsel %vm374_vm2, %v2689_v56, %v2728_v7  ;;  %v2752_v12 = vrot.slane %v2713_v45, 4 }
 0x258   :  { %v2737_v26 = vperm.slane %v2729_v0, %v7742_v57  ;;  %v2740_v31 = vrot.slane %v2697_v38, 4  ;;  %v2746_v15 = vrot.slane %v2733_v22, 4  ;;  %v8911_v56 = vsel %vm374_vm2, %v8652_v10, %v2628_v9  ;;  %v8920_v10 = vpop.permute.xlu1 %2408 }
 0x259   :  { %v2742_v19 = vrot.slane %v2725_v23, 4  ;;  %v2745_v29 = vsel %vm374_vm2, %v2725_v23, %v2744_v4  ;;  %v2739_v40 = vsel %vm374_vm2, %v2738_v51, %v2697_v38  ;;  %v3092_v32 = vrot.slane %v8846_v24, 4  ;;  %v2379_v38 = vpop.permute.xlu0 %2378 }
 0x25a   :  { %v2990_v55 = vrot.slane %v2745_v29, 4  ;;  %v2750_v34 = vrot.slane %v2737_v26, 4  ;;  %v2753_v17 = vsel %vm374_vm2, %v2737_v26, %v2752_v12  ;;  %v2748_v4 = vrot.slane %v2709_v42, 4 }
 0x25b   :  { %v2743_v30 = vsel %vm374_vm2, %v2742_v19, %v2701_v49  ;;  %v2755_v2 = vsel %vm374_vm2, %v2754_v43, %v8812_v39  ;;  %v2741_v23 = vsel %vm374_vm2, %v2721_v18, %v2740_v31  ;;  %v2980_v7 = vrot.slane %v2739_v40, 4 }
 0x25c   :  { %v2978_v27 = vrot.slane %v2743_v30, 4  ;;  %v2991_v49 = vsel %vm374_vm2, %v2990_v55, %v2741_v23  ;;  %v2766_v51 = vrot.slane %v8869_v33, 4  ;;  %3610 = vrot.lane.b32.xlu0 %v8875_v13, %s7314_s7  ;;  %3616 = vrot.lane.b32.xlu2 %v8875_v13, %s7313_s10  ;;  %v3014_v9 = vrot.slane %v2753_v17, 4 }
 0x25d   :  { %v8928_v43 = vsel %vm374_vm2, %v8606_v28, %v2640_v53  ;;  %v2757_v18 = vsel %vm374_vm2, %v8792_v58, %v2756_v44  ;;  %3622 = vrot.lane.b32.xlu1 %v8875_v13, %s7286_s23  ;;  %v2747_v0 = vsel %vm374_vm2, %v2746_v15, %v2709_v42  ;;  %v2751_v19 = vsel %vm374_vm2, %v2750_v34, %v2713_v45 }
 0x25e   :  { %v8939_v12 = vperm.slane %v2755_v2, %v7692_v20  ;;  %v2992_v26 = vrot.slane %v2741_v23, 4  ;;  %v2767_v55 = vsel %vm374_vm2, %v2766_v51, %v2379_v38  ;;  %v2749_v28 = vsel %vm374_vm2, %v2733_v22, %v2748_v4 }
 0x25f   :  { %v2979_v39 = vsel %vm374_vm2, %v2978_v27, %v2739_v40  ;;  %v8945_v53 = vperm.slane %v2991_v49, %v7692_v20  ;;  %v3002_v58 = vrot.slane %v2751_v19, 4  ;;  %v3004_v44 = vrot.slane %v2747_v0, 4 }
 0x260   :  { %v2768_v31 = vrot.slane %v2379_v38, 4  ;;  %v8948_v42 = vperm.slane %v2979_v39, %v7692_v20  ;;  %v3015_v45 = vsel %vm374_vm2, %v3014_v9, %v2749_v28  ;;  %v2981_v15 = vsel %vm374_vm2, %v2743_v30, %v2980_v7 }
 0x261   :  { %v3003_v34 = vsel %vm374_vm2, %v3002_v58, %v2747_v0  ;;  %v8954_v2 = vperm.slane %v3015_v45, %v7692_v20  ;;  %v3026_v22 = vrot.slane %v8945_v53, 4  ;;  %v8958_v40 = vperm.slane %v2981_v15, %v7692_v20 }
 0x262   :  { %v8961_v4 = vperm.slane %v3003_v34, %v7692_v20  ;;  %v2993_v23 = vsel %vm374_vm2, %v2745_v29, %v2992_v26  ;;  %v3005_v27 = vsel %vm374_vm2, %v2751_v19, %v3004_v44  ;;  %v3016_v38 = vrot.slane %v2749_v28, 4  ;;  %v11966_v26 = vld [vmem:[#allocation34_spill] sm:$0xff]  ;;  %v8996_v44 = vpop.permute.xlu2 %2414  ;;  %v9001_v34 = vpop.permute.xlu1 %2396 }
 0x263   :  { %v8966_v30 = vperm.slane %v2767_v55, %v7692_v20  ;;  %v3027_v7 = vsel %vm374_vm2, %v3026_v22, %v8948_v42  ;;  %v3050_v49 = vrot.slane %v8954_v2, 4  ;;  %v8972_v51 = vperm.slane %v3005_v27, %v7692_v20 }
 0x264   :  { %v3033_v9 = vperm.slane %v3027_v7, %v7742_v57  ;;  %v8976_v0 = vperm.slane %v2993_v23, %v7692_v20  ;;  %v3017_v29 = vsel %vm374_vm2, %v2753_v17, %v3016_v38  ;;  %v3040_v19 = vrot.slane %v8958_v40, 4  ;;  %3640 = vrot.lane.b32.xlu0 %v11966_v26, %s7305_s27  ;;  %3628 = vrot.lane.b32.xlu2 %v11966_v26, %s7301_s25 }
 0x265   :  { %v8985_v55 = vperm.slane %v2757_v18, %v7692_v20  ;;  %v3051_v28 = vsel %vm374_vm2, %v3050_v49, %v8961_v4  ;;  %v8990_v39 = vperm.slane %v3017_v29, %v7692_v20  ;;  %v3064_v58 = vrot.slane %v8972_v51, 4  ;;  %3604 = vrot.lane.b32.xlu1 %v8875_v13, %s7288_s12  ;;  %v3579_v49 = vpop.f32.mrf.mxu3 }
 0x266   :  { %v3102_v17 = vrot.slane %v8894_v60, 4  ;;  %v3057_v45 = vperm.slane %v3051_v28, %v7742_v57  ;;  %v3076_v15 = vrot.slane %v3033_v9, 4  ;;  %v3041_v18 = vsel %vm374_vm2, %v8976_v0, %v3040_v19 }
 0x267   :  { %v3114_v22 = vrot.slane %v8864_v37, 4  ;;  %v2769_v23 = vsel %vm374_vm2, %v8869_v33, %v2768_v31  ;;  %v3049_v27 = vperm.slane %v3041_v18, %v7742_v57  ;;  %v3065_v38 = vsel %vm374_vm2, %v8990_v39, %v3064_v58 }
 0x268   :  { %v9013_v7 = vsel %vm374_vm2, %v8824_v61, %v3092_v32  ;;  %v2802_v29 = vrot.slane %v8966_v30, 4  ;;  %v3077_v19 = vsel %vm374_vm2, %v3057_v45, %v3076_v15  ;;  %v3073_v28 = vperm.slane %v3065_v38, %v7742_v57 }
 0x269   :  { %v2790_v33 = vrot.slane %v8996_v44, 4  ;;  %v2804_v31 = vrot.slane %v8939_v12, 4  ;;  %v2816_v18 = vrot.slane %v8985_v55, 4  ;;  %6700 = vmatmul.msk.f32.gmra.mxu3 %vm4118_vm3, %v3077_v19  ;;  %v3088_v24 = vrot.slane %v3049_v27, 4 }
 0x26a   :  { %v2777_v58 = vperm.slane %v2769_v23, %v7692_v20  ;;  %v3074_v61 = vrot.slane %v3057_v45, 4  ;;  %v3086_v32 = vrot.slane %v3073_v28, 4  ;;  %v2916_v41 = vrot.slane %v8564_v14, 4 }
 0x26b   :  { %v9025_v21 = vadd.f32 %v3579_v49, %v8854_v16  ;;  %v2778_v15 = vrot.slane %v8920_v10, 4  ;;  %v3089_v38 = vsel %vm374_vm2, %v3073_v28, %v3088_v24  ;;  %v2940_v13 = vrot.slane %v8575_v1, 4  ;;  %v11967_v49 = vld [vmem:[#allocation52_spill] sm:$0xff] }
 0x26c   :  { %v2803_v37 = vsel %vm374_vm2, %v2802_v29, %v8939_v12  ;;  %6724 = vmatmul.msk.f32.gmra.mxu2 %vm4118_vm3, %v3089_v38  ;;  %v3075_v23 = vsel %vm374_vm2, %v3074_v61, %v3033_v9  ;;  %v3087_v45 = vsel %vm374_vm2, %v3086_v32, %v3049_v27  ;;  %v2917_v14 = vsel %vm374_vm2, %v8561_v6, %v2916_v41  ;;  %v11968_v29 = vld [vmem:[#allocation54_spill] sm:$0xff]  ;;  %v11971_v61 = vld [vmem:[#allocation53_spill] sm:$0xff] }
 0x26d   :  { %6696 = vmatmul.msk.f32.gmra.mxu1 %vm4118_vm3, %v3075_v23  ;;  %6720 = vmatmul.msk.f32.gmra.mxu0 %vm4118_vm3, %v3087_v45  ;;  %v2925_v16 = vperm.slane %v2917_v14, %v7742_v57  ;;  %v2941_v1 = vsel %vm374_vm2, %v8568_v47, %v2940_v13  ;;  %v1206_v12 = vrot.slane %v11967_v49, 4  ;;  %v1230_v19 = vrot.slane %v11968_v29, 4  ;;  %v11970_v13 = vld [vmem:[#allocation51_spill] sm:$0xff] }
 0x26e   :  { %v2814_v28 = vrot.slane %v2777_v58, 4  ;;  %v2779_v9 = vsel %vm374_vm2, %v2778_v15, %v9001_v34  ;;  %v2949_v27 = vperm.slane %v2941_v1, %v7742_v57  ;;  %v11969_v6 = vrot.slane %v8621_v59, 4  ;;  %3664 = vrot.lane.b32.xlu0 %v11966_v26, %s7286_s23  ;;  %3652 = vrot.lane.b32.xlu2 %v11966_v26, %s7314_s7  ;;  %v2403_v1 = vpop.permute.xlu1 %2402 }
 0x26f   :  { %v2968_v47 = vrot.slane %v2925_v16, 4  ;;  %v1207_v24 = vsel %vm374_vm2, %v1206_v12, %v11970_v13  ;;  %v1231_v32 = vsel %vm374_vm2, %v1230_v19, %v11971_v61  ;;  %v9063_v15 = vperm.slane %v8904_v11, %v7692_v20  ;;  %3634 = vrot.lane.b32.xlu1 %v11966_v26, %s7303_s26 }
 0x270   :  { %v9051_v41 = vsel %vm374_vm2, %v11969_v6, %v8842_v48  ;;  %v2780_v38 = vrot.slane %v9001_v34, 4  ;;  %v1213_v23 = vperm.slane %v1207_v24, %v7742_v57  ;;  %v3103_v45 = vsel %vm374_vm2, %v3102_v17, %v8911_v56 }
 0x271   :  { %v3115_v14 = vsel %vm374_vm2, %v3114_v22, %v9051_v41  ;;  %v2969_v49 = vsel %vm374_vm2, %v2949_v27, %v2968_v47  ;;  %v11972_v12 = vrot.slane %v8842_v48, 4  ;;  %v9081_v29 = vperm.slane %v3103_v45, %v7692_v20 }
 0x272   :  { %v9084_v34 = vperm.slane %v3115_v14, %v7692_v20  ;;  %6707 = vmatmul.msk.f32.vlgmr.msrb.gmra.mxu3 %vm4118_vm3, %v2969_v49  ;;  %v1237_v17 = vperm.slane %v1231_v32, %v7742_v57  ;;  %v1256_v22 = vrot.slane %v1213_v23, 4  ;;  %v3126_v19 = vrot.slane %v8928_v43, 4 }
 0x273   :  { %v9078_v11 = vsel %vm374_vm2, %v8621_v59, %v11972_v12  ;;  %v3140_v6 = vrot.slane %v9063_v15, 4  ;;  %v2805_v48 = vsel %vm374_vm2, %v8966_v30, %v2804_v31  ;;  %v2817_v59 = vsel %vm374_vm2, %v2777_v58, %v2816_v18 }
 0x274   :  { %v3164_v47 = vrot.slane %v9084_v34, 4  ;;  %v2791_v13 = vsel %vm374_vm2, %v2790_v33, %v2403_v1  ;;  %v2785_v24 = vperm.slane %v2779_v9, %v7692_v20  ;;  %v1257_v61 = vsel %vm374_vm2, %v1237_v17, %v1256_v22 }
 0x275   :  { %v3127_v32 = vsel %vm374_vm2, %v3126_v19, %v9078_v11  ;;  %v3141_v45 = vsel %vm374_vm2, %v9081_v29, %v3140_v6  ;;  %v2781_v14 = vsel %vm374_vm2, %v8920_v10, %v2780_v38  ;;  %6729 = vmatpush.xpose.msk.msrb.mxu3 %vm4118_vm3, %v1257_v61  ;;  %v2792_v31 = vrot.slane %v2403_v1, 4 }
 0x276   :  { %v9105_v30 = vperm.slane %v3127_v32, %v7692_v20  ;;  %v3149_v33 = vperm.slane %v3141_v45, %v7742_v57  ;;  %v9109_v18 = vperm.slane %v2803_v37, %v7742_v57  ;;  %v2815_v58 = vsel %vm374_vm2, %v2814_v28, %v8985_v55  ;;  %3646 = vrot.lane.b32.xlu0 %v11966_v26, %s7288_s12 }
 0x277   :  { %v2797_v9 = vperm.slane %v2791_v13, %v7692_v20  ;;  %v2966_v49 = vrot.slane %v2949_v27, 4  ;;  %3642 = vrot.lane.b32.xlu2 %v9025_v21, %s7305_s27  ;;  %v2793_v37 = vsel %vm374_vm2, %v8996_v44, %v2792_v31  ;;  %v1254_v1 = vrot.slane %v1237_v17, 4  ;;  %3658 = vrot.lane.b32.xlu1 %v11966_v26, %s7313_s10 }
 0x278   :  { %v3165_v10 = vsel %vm374_vm2, %v9105_v30, %v3164_v47  ;;  %v3192_v38 = vrot.slane %v3149_v33, 4  ;;  %v2789_v55 = vperm.slane %v2781_v14, %v7692_v20  ;;  %v2828_v28 = vrot.slane %v2785_v24, 4  ;;  %v11973_v47 = vld [vmem:[#allocation56_spill] sm:$0xff] }
 0x279   :  { %v3173_v27 = vperm.slane %v3165_v10, %v7742_v57  ;;  %v2801_v12 = vperm.slane %v2793_v37, %v7692_v20  ;;  %v9128_v22 = vperm.slane %v2805_v48, %v7742_v57  ;;  %v2826_v19 = vrot.slane %v2797_v9, 4 }
 0x27a   :  { %v2967_v6 = vsel %vm374_vm2, %v2966_v49, %v2925_v16  ;;  %v1094_v13 = vrot.slane %v11973_v47, 4  ;;  %v9133_v44 = vperm.slane %v2817_v59, %v7742_v57  ;;  %v2829_v61 = vsel %vm374_vm2, %v2797_v9, %v2828_v28  ;;  %v11974_v49 = vld [vmem:[#allocation55_spill] sm:$0xff]  ;;  %v11975_v47 = vld [vmem:[#allocation58_spill] sm:$0xff] }
 0x27b   :  { %v3193_v17 = vsel %vm374_vm2, %v3173_v27, %v3192_v38  ;;  %6703 = vmatmul.msk.f32.vlgmr.msrb.gmra.mxu1 %vm4118_vm3, %v2967_v6  ;;  %v1255_v32 = vsel %vm374_vm2, %v1254_v1, %v1213_v23  ;;  %v9140_v45 = vperm.slane %v2815_v58, %v7742_v57  ;;  %v3190_v16 = vrot.slane %v3173_v27, 4 }
 0x27c   :  { %6739 = vmatmul.msk.f32.vlgmr.msrb.gmra.mxu2 %vm4118_vm3, %v3193_v17  ;;  %6725 = vmatpush.xpose.msk.msrb.mxu1 %vm4118_vm3, %v1255_v32  ;;  %v3104_v48 = vrot.slane %v8911_v56, 4  ;;  %v2840_v59 = vrot.slane %v2789_v55, 4  ;;  %v2838_v14 = vrot.slane %v2801_v12, 4  ;;  %v9147_v31 = vperm.slane %v9013_v7, %v7692_v20 }
 0x27d   :  { %v2827_v9 = vsel %vm374_vm2, %v2826_v19, %v2785_v24  ;;  %v2837_v23 = vperm.slane %v2829_v61, %v7742_v57  ;;  %v1095_v58 = vsel %vm374_vm2, %v1094_v13, %v11974_v49  ;;  %v2852_v10 = vrot.slane %v9109_v18, 4 }
 0x27e   :  { %v2856_v38 = vrot.slane %v9128_v22, 4  ;;  %v2864_v37 = vrot.slane %v9133_v44, 4  ;;  %v2841_v1 = vsel %vm374_vm2, %v2801_v12, %v2840_v59  ;;  %3636 = vrot.lane.b32.xlu0 %v9025_v21, %s7303_s26  ;;  %v2860_v7 = vrot.slane %v9140_v45, 4  ;;  %v11976_v59 = vld [vmem:[#allocation57_spill] sm:$0xff] }
 0x27f   :  { %3666 = vrot.lane.b32.xlu2 %v9025_v21, %s7286_s23  ;;  %v3116_v24 = vrot.slane %v9051_v41, 4  ;;  %v3128_v28 = vrot.slane %v9078_v11, 4  ;;  %v3191_v27 = vsel %vm374_vm2, %v3190_v16, %v3149_v33  ;;  %3630 = vrot.lane.b32.xlu1 %v9025_v21, %s7301_s25  ;;  %v2833_v19 = vperm.slane %v2827_v9, %v7742_v57  ;;  %s6608_s25 = sshll.u32 %s11790_s11, 4  ;;  %s6609_s25 = int_to_ptr.hbm [resolvable:$true] %s6608_s25 }
 0x280   :  { %v2839_v12 = vsel %vm374_vm2, %v2838_v14, %v2789_v55  ;;  %6735 = vmatmul.msk.f32.vlgmr.msrb.gmra.mxu0 %vm4118_vm3, %v3191_v27  ;;  %v1101_v6 = vperm.slane %v1095_v58, %v7742_v57  ;;  %v1118_v13 = vrot.slane %v11975_v47, 4  ;;  %v2849_v17 = vperm.slane %v2841_v1, %v7742_v57 }
 0x281   :  { %v2854_v61 = vrot.slane %v2837_v23, 4  ;;  %v3028_v32 = vrot.slane %v8948_v42, 4  ;;  %v3052_v33 = vrot.slane %v8961_v4, 4  ;;  %v9176_v16 = vsel %vm374_vm2, %v2837_v23, %v2856_v38 }
 0x282   :  { %v1119_v9 = vsel %vm374_vm2, %v1118_v13, %v11976_v59  ;;  %v1144_v55 = vrot.slane %v1101_v6, 4  ;;  %v2926_v14 = vrot.slane %v8683_v54, 4  ;;  %v2845_v49 = vperm.slane %v2839_v12, %v7742_v57 }
 0x283   :  { %v1125_v58 = vperm.slane %v1119_v9, %v7742_v57  ;;  %v3029_v1 = vsel %vm374_vm2, %v8945_v53, %v3028_v32  ;;  %v3053_v42 = vsel %vm374_vm2, %v8954_v2, %v3052_v33  ;;  %v2850_v4 = vrot.slane %v2833_v19, 4 }
 0x284   :  { %v9188_v23 = vsel %vm374_vm2, %v2833_v19, %v2852_v10  ;;  %v3037_v38 = vperm.slane %v3029_v1, %v7742_v57  ;;  %v3061_v27 = vperm.slane %v3053_v42, %v7742_v57  ;;  %v2927_v12 = vsel %vm374_vm2, %v2926_v14, %v8674_v3 }
 0x285   :  { %v1145_v54 = vsel %vm374_vm2, %v1125_v58, %v1144_v55  ;;  %v1142_v47 = vrot.slane %v1125_v58, 4  ;;  %v2950_v13 = vrot.slane %v8687_v62, 4  ;;  %v3214_v53 = vrot.slane %v9176_v16, 4 }
 0x286   :  { %6730 = vmatpush.xpose.msk.msrb.mxu3 %vm4118_vm3, %v1145_v54  ;;  %v3080_v2 = vrot.slane %v3037_v38, 4  ;;  %v3078_v32 = vrot.slane %v3061_v27, 4  ;;  %v2933_v10 = vperm.slane %v2927_v12, %v7742_v57  ;;  %3660 = vrot.lane.b32.xlu0 %v9025_v21, %s7313_s10  ;;  %v1218_v3 = vrot.slane %v8706_v25, 4 }
 0x287   :  { %v1143_v19 = vsel %vm374_vm2, %v1142_v47, %v1101_v6  ;;  %v2951_v33 = vsel %vm374_vm2, %v2950_v13, %v8680_v50  ;;  %v1242_v62 = vrot.slane %v8727_v36, 4  ;;  %3648 = vrot.lane.b32.xlu2 %v9025_v21, %s7288_s12  ;;  %3654 = vrot.lane.b32.xlu1 %v9025_v21, %s7314_s7  ;;  %v2862_v59 = vrot.slane %v2849_v17, 4 }
 0x288   :  { %6726 = vmatpush.xpose.msk.msrb.mxu1 %vm4118_vm3, %v1143_v19  ;;  %v3081_v9 = vsel %vm374_vm2, %v3061_v27, %v3080_v2  ;;  %v3079_v6 = vsel %vm374_vm2, %v3078_v32, %v3037_v38  ;;  %v2957_v55 = vperm.slane %v2951_v33, %v7742_v57  ;;  %v9216_v50 = vsel %vm374_vm2, %v2854_v61, %v9128_v22 }
 0x289   :  { %6708 = vmatmul.msk.f32.gmra.mxu3 %vm4118_vm3, %v3081_v9  ;;  %6704 = vmatmul.msk.f32.gmra.mxu1 %vm4118_vm3, %v3079_v6  ;;  %v2972_v25 = vrot.slane %v2933_v10, 4  ;;  %v1219_v36 = vsel %vm374_vm2, %v1218_v3, %v8698_v35  ;;  %v1243_v14 = vsel %vm374_vm2, %v1242_v62, %v8724_v8  ;;  %v9225_v58 = vsel %vm374_vm2, %v2849_v17, %v2864_v37 }
 0x28a   :  { %v3216_v1 = vrot.slane %v9188_v23, 4  ;;  %v1225_v42 = vperm.slane %v1219_v36, %v7742_v57  ;;  %v1249_v22 = vperm.slane %v1243_v14, %v7742_v57  ;;  %v2858_v61 = vrot.slane %v2845_v49, 4 }
 0x28b   :  { %v2970_v38 = vrot.slane %v2957_v55, 4  ;;  %v1106_v27 = vrot.slane %v8766_v52, 4  ;;  %v1130_v54 = vrot.slane %v8777_v63, 4  ;;  %v9234_v35 = vsel %vm374_vm2, %v2850_v4, %v9109_v18 }
 0x28c   :  { %v9238_v8 = vsel %vm374_vm2, %v2862_v59, %v9133_v44  ;;  %v3202_v37 = vrot.slane %v9216_v50, 4  ;;  %v1264_v17 = vrot.slane %v1225_v42, 4  ;;  %v2973_v47 = vsel %vm374_vm2, %v2957_v55, %v2972_v25 }
 0x28d   :  { %v1262_v12 = vrot.slane %v1249_v22, 4  ;;  %v1107_v13 = vsel %vm374_vm2, %v1106_v27, %v8755_v46  ;;  %v1131_v52 = vsel %vm374_vm2, %v1130_v54, %v8761_v5  ;;  %v2971_v18 = vsel %vm374_vm2, %v2970_v38, %v2933_v10 }
 0x28e   :  { %v1265_v63 = vsel %vm374_vm2, %v1249_v22, %v1264_v17  ;;  %v1113_v4 = vperm.slane %v1107_v13, %v7742_v57  ;;  %v1137_v44 = vperm.slane %v1131_v52, %v7742_v57  ;;  %v3038_v32 = vrot.slane %v8976_v0, 4 }
 0x28f   :  { %v1263_v2 = vsel %vm374_vm2, %v1262_v12, %v1225_v42  ;;  %v3062_v19 = vrot.slane %v8990_v39, 4  ;;  %v9255_v46 = vsel %vm374_vm2, %v2858_v61, %v9140_v45  ;;  %v9260_v10 = vsel %vm374_vm2, %v2845_v49, %v2860_v7 }
 0x290   :  { %v1152_v33 = vrot.slane %v1113_v4, 4  ;;  %v1150_v5 = vrot.slane %v1137_v44, 4  ;;  %v3203_v3 = vsel %vm374_vm2, %v3202_v37, %v9234_v35  ;;  %v3039_v0 = vsel %vm374_vm2, %v3038_v32, %v8958_v40  ;;  %v11977_v32 = vld [vmem:[#allocation59_spill] sm:$0xff] }
 0x291   :  { %6715 = vmatmul.msk.f32.vlgmr.msra.gmra.mxu3 %vm4118_vm3, %v2973_v47  ;;  %6711 = vmatmul.msk.f32.vlgmr.msra.gmra.mxu1 %vm4118_vm3, %v2971_v18  ;;  %v3063_v39 = vsel %vm374_vm2, %v3062_v19, %v8972_v51  ;;  %v9271_v62 = vperm.slane %v3203_v3, %v7692_v20  ;;  %v3226_v45 = vrot.slane %v9238_v8, 4  ;;  %v3204_v7 = vrot.slane %v9234_v35, 4  ;;  %v9303_v47 = vpop.permute.xlu2 %3596 }
 0x292   :  { %6745 = vmatpush.xpose.msk.msra.mxu3 %vm4118_vm3, %v1265_v63  ;;  %6741 = vmatpush.xpose.msk.msra.mxu1 %vm4118_vm3, %v1263_v2  ;;  %v1153_v49 = vsel %vm374_vm2, %v1137_v44, %v1152_v33  ;;  %v1151_v59 = vsel %vm374_vm2, %v1150_v5, %v1113_v4  ;;  %v3045_v40 = vperm.slane %v3039_v0, %v7742_v57  ;;  %v3238_v55 = vrot.slane %v9225_v58, 4 }
 0x293   :  { %v3069_v9 = vperm.slane %v3063_v39, %v7742_v57  ;;  %v3215_v51 = vsel %vm374_vm2, %v3214_v53, %v9188_v23  ;;  %v3227_v6 = vsel %vm374_vm2, %v3226_v45, %v9255_v46  ;;  %v3228_v14 = vrot.slane %v9255_v46, 4  ;;  %v11978_v45 = vld [vmem:[#allocation22_spill] sm:$0xff] }
 0x294   :  { %v3084_v25 = vrot.slane %v3045_v40, 4  ;;  %v3221_v36 = vperm.slane %v3215_v51, %v7692_v20  ;;  %v9291_v42 = vperm.slane %v3227_v6, %v7692_v20  ;;  %v3239_v22 = vsel %vm374_vm2, %v3238_v55, %v9260_v10  ;;  %v11982_v55 = vld [vmem:[#allocation18_spill] sm:$0xff] }
 0x295   :  { %v3252_v61 = vrot.slane %v9271_v62, 4  ;;  %v3082_v38 = vrot.slane %v3069_v9, 4  ;;  %v3138_v53 = vrot.slane %v9081_v29, 4  ;;  %v3245_v54 = vperm.slane %v3239_v22, %v7692_v20 }
 0x296   :  { %6746 = vmatpush.xpose.msk.msra.mxu3 %vm4118_vm3, %v1153_v49  ;;  %6742 = vmatpush.xpose.msk.msra.mxu1 %vm4118_vm3, %v1151_v59  ;;  %v3085_v27 = vsel %vm374_vm2, %v3069_v9, %v3084_v25  ;;  %v3276_v37 = vrot.slane %v9291_v42, 4  ;;  %v3162_v17 = vrot.slane %v9105_v30, 4  ;;  %v3105_v52 = vsel %vm374_vm2, %v8894_v60, %v3104_v48  ;;  %v11979_v49 = vld [vmem:[#allocation39_spill] sm:$0xff]  ;;  %v11981_v9 = vld [vmem:[#allocation36_spill] sm:$0xff]  ;;  %v11983_v25 = vld [vmem:[#allocation38_spill] sm:$0xff] }
 0x297   :  { %v3253_v12 = vsel %vm374_vm2, %v3221_v36, %v3252_v61  ;;  %v3083_v13 = vsel %vm374_vm2, %v3082_v38, %v3045_v40  ;;  %v3139_v29 = vsel %vm374_vm2, %v3138_v53, %v9063_v15  ;;  %v9323_v15 = vperm.slane %v3105_v52, %v7692_v20  ;;  %v11980_v40 = vld [vmem:[#allocation26_spill] sm:$0xff] }
 0x298   :  { %v3261_v63 = vperm.slane %v3253_v12, %v7742_v57  ;;  %v3277_v18 = vsel %vm374_vm2, %v3245_v54, %v3276_v37  ;;  %v3145_v30 = vperm.slane %v3139_v29, %v7742_v57  ;;  %v3163_v4 = vsel %vm374_vm2, %v3162_v17, %v9084_v34 }
 0x299   :  { %6716 = vmatmul.msk.f32.gmra.mxu3 %vm4118_vm3, %v3085_v27  ;;  %v3285_v44 = vperm.slane %v3277_v18, %v7742_v57  ;;  %6712 = vmatmul.msk.f32.gmra.mxu1 %vm4118_vm3, %v3083_v13  ;;  %v3169_v56 = vperm.slane %v3163_v4, %v7742_v57  ;;  %v3152_v60 = vrot.slane %v9147_v31, 4  ;;  %v3117_v34 = vsel %vm374_vm2, %v11977_v32, %v3116_v24 }
 0x29a   :  { %v3304_v48 = vrot.slane %v3261_v63, 4  ;;  %v3188_v2 = vrot.slane %v3145_v30, 4  ;;  %v3129_v19 = vsel %vm374_vm2, %v8928_v43, %v3128_v28  ;;  %v9335_v5 = vperm.slane %v3117_v34, %v7692_v20  ;;  %v11988_v34 = vld [vmem:[#allocation27_spill] sm:$0xff] }
 0x29b   :  { %v3302_v33 = vrot.slane %v3285_v44, 4  ;;  %v9338_v3 = vperm.slane %v3129_v19, %v7692_v20  ;;  %v3153_v0 = vsel %vm374_vm2, %v9323_v15, %v3152_v60  ;;  %v3240_v41 = vrot.slane %v9260_v10, 4  ;;  %v11986_v60 = vld [vmem:[#allocation23_spill] sm:$0xff]  ;;  %v11989_v19 = vld [vmem:[#allocation44_spill] sm:$0xff] }
 0x29c   :  { %v3305_v39 = vsel %vm374_vm2, %v3285_v44, %v3304_v48  ;;  %v3161_v24 = vperm.slane %v3153_v0, %v7742_v57  ;;  %v3186_v11 = vrot.slane %v3169_v56, 4  ;;  %v3176_v28 = vrot.slane %v9335_v5, 4  ;;  %v11984_v44 = vld [vmem:[#allocation24_spill] sm:$0xff]  ;;  %v11987_v48 = vld [vmem:[#allocation29_spill] sm:$0xff] }
 0x29d   :  { %6740 = vmatmul.msk.f32.gmra.mxu2 %vm4118_vm3, %v3305_v39  ;;  %v3303_v43 = vsel %vm374_vm2, %v3302_v33, %v3261_v63  ;;  %v6906_v59 = vpack.i.bf16 %v11979_v49, %v11978_v45  ;;  %v6896_v51 = vpack.i.bf16 %v11981_v9, %v11980_v40  ;;  %v3189_v10 = vsel %vm374_vm2, %v3169_v56, %v3188_v2  ;;  %v11985_v56 = vld [vmem:[#allocation41_spill] sm:$0xff] }
 0x29e   :  { %6736 = vmatmul.msk.f32.gmra.mxu0 %vm4118_vm3, %v3303_v43  ;;  %v3200_v6 = vrot.slane %v3161_v24, 4  ;;  %v6911_v22 = vpack.i.bf16 %v11983_v25, %v11982_v55  ;;  %v3250_v61 = vrot.slane %v3221_v36, 4  ;;  %v3177_v38 = vsel %vm374_vm2, %v9338_v3, %v3176_v28  ;;  %v11991_v55 = vld [vmem:[#allocation37_spill] sm:$0xff] }
 0x29f   :  { %v3187_v53 = vsel %vm374_vm2, %v3186_v11, %v3145_v30  ;;  %6907 = vrot.lane.b32.xlu0 %v6906_v59, %s7288_s12  ;;  %6897 = vrot.lane.b32.xlu2 %v6896_v51, %s7288_s12  ;;  %v3274_v27 = vrot.slane %v3245_v54, 4  ;;  %v3205_v37 = vsel %vm374_vm2, %v9216_v50, %v3204_v7  ;;  %v3185_v17 = vperm.slane %v3177_v38, %v7742_v57  ;;  %v9374_v54 = vpop.permute.xlu2 %3620  ;;  %v11992_v38 = vld [vmem:[#allocation25_spill] sm:$0xff] }
 0x2a0   :  { %6912 = vrot.lane.b32.xlu1 %v6911_v22, %s7288_s12  ;;  %v3251_v36 = vsel %vm374_vm2, %v3250_v61, %v9271_v62  ;;  %v3213_v12 = vperm.slane %v3205_v37, %v7692_v20  ;;  %v3217_v13 = vsel %vm374_vm2, %v9176_v16, %v3216_v1  ;;  %v3229_v62 = vsel %vm374_vm2, %v9238_v8, %v3228_v14  ;;  %v3585_v22 = vpop.permute.xlu1 %3584 }
 0x2a1   :  { %6731 = vmatmul.msk.f32.vlgmr.msrb.gmra.mxu3 %vm4118_vm3, %v3189_v10  ;;  %6727 = vmatmul.msk.f32.vlgmr.msrb.gmra.mxu1 %vm4118_vm3, %v3187_v53  ;;  %v3257_v50 = vperm.slane %v3251_v36, %v7742_v57  ;;  %v3275_v35 = vsel %vm374_vm2, %v3274_v27, %v9291_v42  ;;  %v3198_v23 = vrot.slane %v3185_v17, 4  ;;  %v3237_v16 = vperm.slane %v3229_v62, %v7692_v20  ;;  %v11995_v36 = vld [vmem:[#allocation35_spill] sm:$0xff] }
 0x2a2   :  { %v3281_v7 = vperm.slane %v3275_v35, %v7742_v57  ;;  %v3150_v1 = vrot.slane %v9323_v15, 4  ;;  %v3201_v29 = vsel %vm374_vm2, %v3185_v17, %v3200_v6  ;;  %v3225_v52 = vperm.slane %v3217_v13, %v7692_v20  ;;  %v11990_v6 = vld [vmem:[#allocation28_spill] sm:$0xff]  ;;  %v11994_v17 = vld [vmem:[#allocation46_spill] sm:$0xff] }
 0x2a3   :  { %v3241_v63 = vsel %vm374_vm2, %v9225_v58, %v3240_v41  ;;  %v3264_v42 = vrot.slane %v3213_v12, 4  ;;  %v3300_v18 = vrot.slane %v3257_v50, 4  ;;  %v3288_v30 = vrot.slane %v3237_v16, 4 }
 0x2a4   :  { %v3249_v46 = vperm.slane %v3241_v63, %v7692_v20  ;;  %v3298_v8 = vrot.slane %v3281_v7, 4  ;;  %v3199_v14 = vsel %vm374_vm2, %v3198_v23, %v3161_v24  ;;  %v6921_v15 = vpack.i.bf16 %v11985_v56, %v11984_v44 }
 0x2a5   :  { %6755 = vmatmul.msk.f32.vlgmr.msra.gmra.mxu2 %vm4118_vm3, %v3201_v29  ;;  %v3265_v4 = vsel %vm374_vm2, %v3225_v52, %v3264_v42  ;;  %v6901_v2 = vpack.i.bf16 %v11987_v48, %v11986_v60  ;;  %v6936_v33 = vpack.i.bf16 %v11989_v19, %v11988_v34  ;;  %v3151_v0 = vsel %vm374_vm2, %v3150_v1, %v9147_v31  ;;  %v11996_v29 = vld [vmem:[#allocation31_spill] sm:$0xff]  ;;  %v12000_v60 = vld [vmem:[#allocation49_spill] sm:$0xff] }
 0x2a6   :  { %6751 = vmatmul.msk.f32.vlgmr.msra.gmra.mxu0 %vm4118_vm3, %v3199_v14  ;;  %v3273_v58 = vperm.slane %v3265_v4, %v7742_v57  ;;  %v3289_v32 = vsel %vm374_vm2, %v3249_v46, %v3288_v30  ;;  %v3174_v39 = vrot.slane %v9338_v3, 4  ;;  %v3301_v24 = vsel %vm374_vm2, %v3281_v7, %v3300_v18  ;;  %v11998_v42 = vld [vmem:[#allocation19_spill] sm:$0xff]  ;;  %v11999_v18 = vld [vmem:[#allocation40_spill] sm:$0xff] }
 0x2a7   :  { %v3297_v41 = vperm.slane %v3289_v32, %v7742_v57  ;;  %6922 = vrot.lane.b32.xlu0 %v6921_v15, %s7288_s12  ;;  %6902 = vrot.lane.b32.xlu2 %v6901_v2, %s7288_s12  ;;  %v3299_v43 = vsel %vm374_vm2, %v3298_v8, %v3257_v50  ;;  %v3157_v28 = vperm.slane %v3151_v0, %v7742_v57  ;;  %v3262_v49 = vrot.slane %v3225_v52, 4  ;;  %v9420_v40 = vpop.permute.xlu2 %3602  ;;  %v9434_v50 = vpop.permute.xlu0 %3590  ;;  %v11997_v52 = vld [vmem:[#allocation42_spill] sm:$0xff]  ;;  %v12001_v48 = vld [vmem:[#allocation47_spill] sm:$0xff] }
 0x2a8   :  { %v3312_v11 = vrot.slane %v3273_v58, 4  ;;  %6937 = vrot.lane.b32.xlu1 %v6936_v33, %s7288_s12  ;;  %v3175_v45 = vsel %vm374_vm2, %v3174_v39, %v9335_v5  ;;  %v3286_v59 = vrot.slane %v3249_v46, 4  ;;  %v6931_v25 = vpack.i.bf16 %v11991_v55, %v11990_v6  ;;  %v11993_v5 = vld [vmem:[#allocation32_spill] sm:$0xff]  ;;  %v3609_v30 = vpop.permute.xlu1 %3608  ;;  %v12003_v32 = vld [vmem:[#allocation43_spill] sm:$0xff] }
 0x2a9   :  { %6732 = vmatmul.msk.f32.gmra.mxu3 %vm4118_vm3, %v3301_v24  ;;  %6728 = vmatmul.msk.f32.gmra.mxu1 %vm4118_vm3, %v3299_v43  ;;  %v3310_v31 = vrot.slane %v3297_v41, 4  ;;  %v3181_v3 = vperm.slane %v3175_v45, %v7742_v57  ;;  %v3196_v51 = vrot.slane %v3157_v28, 4  ;;  %v6916_v53 = vpack.i.bf16 %v11993_v5, %v11992_v38 }
 0x2aa   :  { %v3313_v9 = vsel %vm374_vm2, %v3297_v41, %v3312_v11  ;;  %v3263_v27 = vsel %vm374_vm2, %v3262_v49, %v3213_v12  ;;  %v3287_v37 = vsel %vm374_vm2, %v3286_v59, %v3237_v16  ;;  %v6956_v13 = vpack.i.bf16 %v11995_v36, %v11994_v17  ;;  %v12004_v41 = vld [vmem:[#allocation33_spill] sm:$0xff]  ;;  %v12005_v49 = vld [vmem:[#allocation48_spill] sm:$0xff]  ;;  %v12006_v59 = vld [vmem:[#allocation30_spill] sm:$0xff] }
 0x2ab   :  { %v3194_v10 = vrot.slane %v3181_v3, 4  ;;  %v3311_v61 = vsel %vm374_vm2, %v3310_v31, %v3273_v58  ;;  %v3197_v35 = vsel %vm374_vm2, %v3181_v3, %v3196_v51  ;;  %v3269_v12 = vperm.slane %v3263_v27, %v7742_v57  ;;  %v12002_v58 = vld [vmem:[#allocation20_spill] sm:$0xff] }
 0x2ac   :  { %v3293_v23 = vperm.slane %v3287_v37, %v7742_v57  ;;  %v6946_v63 = vpack.i.bf16 %v11997_v52, %v11996_v29  ;;  %v6926_v46 = vpack.i.bf16 %v11999_v18, %v11998_v42  ;;  %v3696_v44 = vrot.slane %v9420_v40, 4  ;;  %v9525_v42 = vld [vmem:[#allocation7] sm:$0xff]  }
 0x2ad   :  { %6756 = vmatmul.msk.f32.gmra.mxu2 %vm4118_vm3, %v3313_v9  ;;  %v3195_v62 = vsel %vm374_vm2, %v3194_v10, %v3157_v28  ;;  %v3308_v16 = vrot.slane %v3269_v12, 4  ;;  %v3708_v56 = vrot.slane %v3609_v30, 4  ;;  %v6951_v2 = vpack.i.bf16 %v12001_v48, %v12000_v60 }
 0x2ae   :  { %6752 = vmatmul.msk.f32.gmra.mxu0 %vm4118_vm3, %v3311_v61  ;;  %v3306_v1 = vrot.slane %v3293_v23, 4  ;;  %v6941_v34 = vpack.i.bf16 %v12003_v32, %v12002_v58  ;;  %v3672_v39 = vrot.slane %v12004_v41, 4  ;;  %v3684_v24 = vrot.slane %v3585_v22, 4 }
 0x2af   :  { %6932 = vrot.lane.b32.xlu0 %v6931_v25, %s7288_s12  ;;  %6917 = vrot.lane.b32.xlu2 %v6916_v53, %s7288_s12  ;;  %v9445_v7 = vpop.permute.xlu2 %3592  ;;  %v3309_v8 = vsel %vm374_vm2, %v3293_v23, %v3308_v16  ;;  %v3615_v4 = vpop.permute.xlu0 %3614  ;;  %v3709_v33 = vsel %vm374_vm2, %v9374_v54, %v3708_v56  ;;  %v6961_v3 = vpack.i.bf16 %v12006_v59, %v12005_v49  ;;  %v3682_v38 = vrot.slane %v9303_v47, 4 }
 0x2b0   :  { %6957 = vrot.lane.b32.xlu1 %v6956_v13, %s7288_s12  ;;  %v3307_v14 = vsel %vm374_vm2, %v3306_v1, %v3269_v12  ;;  %v3697_v15 = vsel %vm374_vm2, %v3615_v4, %v3696_v44  ;;  %v9474_v11 = vperm.slane %v3709_v33, %v7692_v20  ;;  %v3673_v43 = vsel %vm374_vm2, %v9434_v50, %v3672_v39 }
 0x2b1   :  { %6747 = vmatmul.msk.f32.vlgmr.msra.gmra.mxu3 %vm4118_vm3, %v3197_v35  ;;  %6743 = vmatmul.msk.f32.vlgmr.msra.gmra.mxu1 %vm4118_vm3, %v3195_v62  ;;  %v9468_v0 = vperm.slane %v3697_v15, %v7692_v20  ;;  %v3685_v31 = vsel %vm374_vm2, %v9303_v47, %v3684_v24  ;;  %v9482_v45 = vperm.slane %v3673_v43, %v7692_v20  ;;  %v3706_v27 = vrot.slane %v9374_v54, 4  ;;  %v12007_v47 = vld [vmem:[#allocation21_spill] sm:$0xff] }
 0x2b2   :  { %v9491_v10 = vperm.slane %v3685_v31, %v7692_v20  ;;  %v3683_v37 = vsel %vm374_vm2, %v3682_v38, %v3585_v22  ;;  %v3670_v13 = vrot.slane %v9434_v50, 4  ;;  %v12008_v62 = vld [vmem:[#allocation45_spill] sm:$0xff]  ;;  %v3694_v22 = vrot.slane %v3615_v4, 4 }
 0x2b3   :  { %v3756_v28 = vrot.slane %v9468_v0, 4  ;;  %v3732_v5 = vrot.slane %v9482_v45, 4  ;;  %v3707_v35 = vsel %vm374_vm2, %v3706_v27, %v3609_v30  ;;  %v6966_v12 = vpack.i.bf16 %v12008_v62, %v12007_v47 }
 0x2b4   :  { %v3689_v23 = vperm.slane %v3683_v37, %v7692_v20  ;;  %v3695_v56 = vsel %vm374_vm2, %v3694_v22, %v9420_v40  ;;  %v9536_v15 = vunpack.c.l.bf16 %v9525_v42  ;;  %v4183_v37 = vpop.f32.mrf.mxu3  ;;  %v12010_v22 = vld [vmem:[#allocation50_spill] sm:$0xff] }
 0x2b5   :  { %v3757_v9 = vsel %vm374_vm2, %v9474_v11, %v3756_v28  ;;  %v3733_v17 = vsel %vm374_vm2, %v9491_v10, %v3732_v5  ;;  %v3701_v32 = vperm.slane %v3695_v56, %v7692_v20 }
 0x2b6   :  { %v9500_v61 = vperm.slane %v3757_v9, %v7742_v57  ;;  %v9519_v16 = vperm.slane %v3733_v17, %v7742_v57  ;;  %v3718_v4 = vrot.slane %v3689_v23, 4 }
 0x2b7   :  { %6947 = vrot.lane.b32.xlu0 %v6946_v63, %s7288_s12  ;;  %6927 = vrot.lane.b32.xlu2 %v6926_v46, %s7288_s12  ;;  %v9463_v19 = vpop.permute.xlu2 %3616  ;;  %v3713_v63 = vperm.slane %v3707_v35, %v7692_v20  ;;  %v3671_v46 = vsel %vm374_vm2, %v3670_v13, %v12004_v41  ;;  %v3744_v5 = vrot.slane %v3701_v32, 4 }
 0x2b8   :  { %v3778_v36 = vrot.slane %v9500_v61, 4  ;;  %v3677_v60 = vperm.slane %v3671_v46, %v7692_v20  ;;  %v3918_v33 = vrot.slane %v9463_v19, 4 }
 0x2b9   :  { %6748 = vmatmul.msk.f32.gmra.mxu3 %vm4118_vm3, %v3309_v8  ;;  %6744 = vmatmul.msk.f32.gmra.mxu1 %vm4118_vm3, %v3307_v14  ;;  %v3742_v48 = vrot.slane %v3713_v63, 4 }
 0x2ba   :  { %v3779_v50 = vsel %vm374_vm2, %v3778_v36, %v9519_v16  ;;  %v3745_v36 = vsel %vm374_vm2, %v3713_v63, %v3744_v5  ;;  %v3720_v13 = vrot.slane %v3677_v60, 4  ;;  %v11841_v63 = vunpack.i.l.bf16 %v12010_v22  ;;  %v12012_v5 = vld [vmem:[#allocation60_spill] sm:$0xff] }
 0x2bb   :  { %v3743_v39 = vsel %vm374_vm2, %v3742_v48, %v3701_v32 }
 0x2bc   :  { %v3749_v9 = vperm.slane %v3743_v39, %v7742_v57 }
 0x2bf   :  { %6952 = vrot.lane.b32.xlu0 %v6951_v2, %s7288_s12  ;;  %6942 = vrot.lane.b32.xlu2 %v6941_v34, %s7288_s12  ;;  %v9494_v6 = vpop.permute.xlu2 %3628  ;;  %v3719_v34 = vsel %vm374_vm2, %v3718_v4, %v3677_v60  ;;  %v3894_v4 = vrot.slane %v9445_v7, 4 }
 0x2c0   :  { %v4358_v54 = vpop.f32.mrf.mxu0  ;;  %v3725_v28 = vperm.slane %v3719_v34, %v7742_v57 }
 0x2c1   :  { %v4359_v30 = vadd.f32 %v4358_v54, %v3779_v50  ;;  %v3721_v54 = vsel %vm374_vm2, %v3689_v23, %v3720_v13  ;;  %v3896_v13 = vrot.slane %v12012_v5, 4 }
 0x2c2   :  { %v3768_v27 = vrot.slane %v3725_v28, 4  ;;  %v9582_v46 = vperm.slane %v3721_v54, %v7742_v57 }
 0x2c3   :  { %v9540_v2 = vadd.f32 %v9536_v15, %v4359_v30 }
 0x2c4   :  { %v3769_v35 = vsel %vm374_vm2, %v3749_v9, %v3768_v27  ;;  %v3895_v27 = vsel %vm374_vm2, %v3894_v4, %v12012_v5 }
 0x2c5   :  { %12009 = vst [vmem:[#allocation34_spill] sm:$0xff] %v9540_v2  ;;  %v4752_v31 = vsel %vm4715_vm4, %v9540_v2, -inf }
 0x2c6   :  { %v9488_v51 = vpop.permute.xlu0 %3586 }
 0x2c7   :  { %6962 = vrot.lane.b32.xlu2 %v6961_v3, %s7288_s12  ;;  %v3908_v55 = vrot.slane %v9488_v51, 4  ;;  %v9497_v25 = vpop.permute.xlu1 %3598 }
 0x2c8   :  { %v3653_v8 = vpop.permute.xlu2 %3652 }
 0x2c9   :  { %v9506_v53 = vsel %vm374_vm2, %v9497_v25, %v3908_v55 }
 0x2ce   :  { %v3611_v1 = vpop.permute.xlu0 %3610 }
 0x2cf   :  { %6967 = vrot.lane.b32.xlu2 %v6966_v12, %s7288_s12  ;;  %v3932_v29 = vrot.slane %v3611_v1, 4  ;;  %v3623_v52 = vpop.permute.xlu1 %3622 }
 0x2d0   :  { %v3930_v18 = vrot.slane %v3623_v52, 4 }
 0x2d1   :  { %v9530_v14 = vsel %vm374_vm2, %v3623_v52, %v3932_v29  ;;  %v9564_v55 = vpop.permute.xlu2 %3642  ;;  %v11840_v29 = vunpack.i.h.bf16 %v12010_v22 }
 0x2d2   :  { %v3931_v44 = vsel %vm374_vm2, %v3930_v18, %v3611_v1  ;;  %v9577_v1 = vperm.slane %v3745_v36, %v7742_v57  ;;  %v3820_v18 = vrot.slane %v3653_v8, 4 }
 0x2d3   :  { %v9543_v58 = vperm.slane %v3931_v44, %v7692_v20  ;;  %v9603_v34 = vrot.slane %v11840_v29, 4 }
 0x2d4   :  { %v3770_v30 = vrot.slane %v9577_v1, 4 }
 0x2d5   :  { %v3966_v49 = vrot.slane %v9543_v58, 4 }
 0x2d6   :  { %v9548_v41 = vpop.permute.xlu0 %3640  ;;  %v9599_v32 = vsel %vm374_vm2, %v3770_v30, %v9582_v46 }
 0x2d7   :  { %v3605_v40 = vpop.permute.xlu1 %3604  ;;  %v3794_v17 = vrot.slane %v9548_v41, 4 }
 0x2d8   :  { %v3919_v24 = vsel %vm374_vm2, %v3918_v33, %v3605_v40  ;;  %v3920_v43 = vrot.slane %v3605_v40, 4  ;;  %v3766_v33 = vrot.slane %v3749_v9, 4 }
 0x2d9   :  { %v9557_v59 = vperm.slane %v3919_v24, %v7692_v20  ;;  %v3795_v62 = vsel %vm374_vm2, %v3794_v17, %v9494_v6  ;;  %v9594_v60 = vpop.permute.xlu2 %3666  ;;  %v9611_v24 = vrot.slane %v11841_v63, 4 }
 0x2da   :  { %4753 = vmax.xlane.f32.xlu1 %v4752_v31  ;;  %v9561_v3 = vsel %vm374_vm2, %v9463_v19, %v3920_v43  ;;  %v4184_v19 = vadd.f32 %v4183_v37, %v3769_v35  ;;  %v9587_v44 = vperm.slane %v3795_v62, %v7692_v20  ;;  %v3730_v43 = vrot.slane %v9491_v10, 4  ;;  %v4148_v37 = vpop.f32.mrf.mxu1 }
 0x2db   :  { %v9568_v38 = vsel %vm374_vm2, %v3966_v49, %v9557_v59  ;;  %v3754_v31 = vrot.slane %v9474_v11, 4  ;;  %v3784_v49 = vrot.slane %v11966_v26, 4 }
 0x2dc   :  { %v9590_v23 = vadd.f32 %v9536_v15, %v4184_v19  ;;  %v3830_v9 = vrot.slane %v9587_v44, 4  ;;  %v3767_v19 = vsel %vm374_vm2, %v3766_v33, %v3725_v28 }
 0x2de   :  { %12011 = vst [vmem:[#allocation52_spill] sm:$0xff] %v9590_v23 }
 0x2e0   :  { %v3665_v47 = vpop.permute.xlu0 %3664 }
 0x2e1   :  { %v3635_v12 = vpop.permute.xlu1 %3634  ;;  %v3818_v52 = vrot.slane %v3665_v47, 4  ;;  %v3821_v48 = vsel %vm374_vm2, %v3665_v47, %v3820_v18  ;;  %v3906_v47 = vrot.slane %v9497_v25, 4  ;;  %v4149_v18 = vadd.f32 %v4148_v37, %v3767_v19 }
 0x2e2   :  { %v3782_v50 = vrot.slane %v3635_v12, 4  ;;  %v9622_v17 = vperm.slane %v3821_v48, %v7692_v20  ;;  %v3731_v37 = vsel %vm374_vm2, %v3730_v43, %v9482_v45 }
 0x2e3   :  { %v3819_v40 = vsel %vm374_vm2, %v3818_v52, %v3653_v8  ;;  %v4722_v8 = vsel %vm4715_vm4, %v9590_v23, -inf  ;;  %v3897_v52 = vsel %vm374_vm2, %v9445_v7, %v3896_v13  ;;  %v3796_v7 = vrot.slane %v9494_v6, 4 }
 0x2e4   :  { %v3783_v56 = vsel %vm374_vm2, %v3782_v50, %v11966_v26  ;;  %v9626_v11 = vperm.slane %v3819_v40, %v7692_v20  ;;  %v3785_v26 = vsel %vm374_vm2, %v3635_v12, %v3784_v49  ;;  %v9636_v50 = vperm.slane %v3895_v27, %v7692_v20  ;;  %v9639_v12 = vpop.f32.mrf.mxu2 }
 0x2e5   :  { %v9607_v39 = vperm.slane %v3783_v56, %v7692_v20  ;;  %v3866_v4 = vrot.slane %v9622_v17, 4  ;;  %v9643_v28 = vperm.slane %v3785_v26, %v7692_v20  ;;  %v3907_v5 = vsel %vm374_vm2, %v3906_v47, %v9488_v51 }
 0x2e6   :  { %v3854_v33 = vrot.slane %v9626_v11, 4  ;;  %v9663_v6 = vperm.slane %v3897_v52, %v7692_v20  ;;  %v3780_v26 = vrot.slane %v9519_v16, 4  ;;  %v9675_v43 = vadd.f32 %v9536_v15, %v4149_v18 }
 0x2e7   :  { %v3831_v62 = vsel %vm374_vm2, %v3830_v9, %v9607_v39  ;;  %v3755_v9 = vsel %vm374_vm2, %v3754_v31, %v9468_v0  ;;  %v3844_v45 = vrot.slane %v9643_v28, 4  ;;  %v9679_v31 = vperm.slane %v3907_v5, %v7692_v20 }
 0x2e8   :  { %v3647_v36 = vpop.permute.xlu0 %3646  ;;  %v3837_v49 = vperm.slane %v3831_v62, %v7742_v57  ;;  %v3761_v13 = vperm.slane %v3755_v9, %v7742_v57  ;;  %12013 = vst [vmem:[#allocation54_spill] sm:$0xff] %v9675_v43  ;;  %v3944_v19 = vrot.slane %v9636_v50, 4  ;;  %v3968_v16 = vrot.slane %v9557_v59, 4 }
 0x2e9   :  { %4723 = vmax.xlane.f32.xlu0 %v4722_v8  ;;  %v3808_v10 = vrot.slane %v3647_v36, 4  ;;  %v3659_v35 = vpop.permute.xlu1 %3658  ;;  %v3797_v8 = vsel %vm374_vm2, %v9548_v41, %v3796_v7  ;;  %v3772_v52 = vrot.slane %v9582_v46, 4  ;;  %v9701_v7 = vperm.slane %v9506_v53, %v7692_v20 }
 0x2ea   :  { %v3806_v54 = vrot.slane %v3659_v35, 4  ;;  %v3880_v41 = vrot.slane %v3837_v49, 4  ;;  %v9684_v47 = vperm.slane %v3797_v8, %v7692_v20  ;;  %v4716_v46 = vsel %vm4715_vm4, %v9675_v43, -inf  ;;  %v4151_v9 = vpop.f32.mrf.mxu1 }
 0x2eb   :  { %v3809_v30 = vsel %vm374_vm2, %v3659_v35, %v3808_v10  ;;  %v3737_v10 = vperm.slane %v3731_v37, %v7742_v57  ;;  %v3774_v35 = vrot.slane %v3761_v13, 4  ;;  %12014 = vst [vmem:[#allocation51_spill] sm:$0xff] %v9701_v7  ;;  %v3969_v8 = vsel %vm374_vm2, %v9543_v58, %v3968_v16 }
 0x2ec   :  { %v4186_v25 = vpop.f32.mrf.mxu3  ;;  %v3807_v56 = vsel %vm374_vm2, %v3806_v54, %v3647_v36  ;;  %v3817_v48 = vperm.slane %v3809_v30, %v7692_v20  ;;  %v9667_v36 = vpop.permute.xlu2 %3648  ;;  %v9692_v30 = vunpack.c.h.bf16 %v9525_v42  ;;  %v3845_v59 = vsel %vm374_vm2, %v9684_v47, %v3844_v45 }
 0x2ed   :  { %v9650_v40 = vperm.slane %v3807_v56, %v7692_v20  ;;  %v3781_v56 = vsel %vm374_vm2, %v9500_v61, %v3780_v26  ;;  %v3945_v42 = vsel %vm374_vm2, %v9679_v31, %v3944_v19  ;;  %v3776_v61 = vrot.slane %v3737_v10, 4 }
 0x2ee   :  { %v9656_v27 = vsel %vm374_vm2, %v3866_v4, %v3817_v48  ;;  %v3868_v62 = vrot.slane %v3817_v48, 4  ;;  %v9695_v4 = vsel %vm374_vm2, %v3774_v35, %v3737_v10  ;;  %v3832_v45 = vrot.slane %v9607_v39, 4  ;;  %v9719_v35 = vpop.f32.mrf.mxu0 }
 0x2ef   :  { %v3855_v51 = vsel %vm374_vm2, %v3854_v33, %v9650_v40  ;;  %v4396_v48 = vpop.f32.mrf.mxu2  ;;  %v3773_v33 = vsel %vm374_vm2, %v9577_v1, %v3772_v52  ;;  %v3953_v58 = vperm.slane %v3945_v42, %v7742_v57  ;;  %v9735_v10 = vperm.slane %v9530_v14, %v7692_v20 }
 0x2f0   :  { %v3861_v0 = vperm.slane %v3855_v51, %v7742_v57  ;;  %v9687_v54 = vpop.permute.xlu0 %3636  ;;  %v3869_v53 = vsel %vm374_vm2, %v9622_v17, %v3868_v62  ;;  %v3856_v17 = vrot.slane %v9650_v40, 4  ;;  %v4394_v52 = vadd.f32 %v9639_v12, %v3781_v56 }
 0x2f1   :  { %12017 = vst [vmem:[#allocation55_spill] sm:$0xff] %v9735_v10  ;;  %v9742_v62 = vperm.slane %v3869_v53, %v7742_v57  ;;  %v4018_v12 = vrot.slane %v9564_v55, 4  ;;  %v3996_v56 = vrot.slane %v3953_v58, 4  ;;  %v12027_v43 = vunpack.i.l.bf16 %v12010_v22 }
 0x2f2   :  { %v3881_v18 = vsel %vm374_vm2, %v3861_v0, %v3880_v41  ;;  %v3878_v26 = vrot.slane %v3861_v0, 4  ;;  %v9717_v41 = vperm.slane %v3845_v59, %v7742_v57  ;;  %v3833_v59 = vsel %vm374_vm2, %v9587_v44, %v3832_v45 }
 0x2f3   :  { %v4187_v37 = vadd.f32 %v4186_v25, %v3881_v18  ;;  %v9725_v25 = vsel %vm374_vm2, %v3761_v13, %v3776_v61  ;;  %v3977_v18 = vperm.slane %v3969_v8, %v7742_v57  ;;  %v9763_v44 = vperm.slane %v9561_v3, %v7692_v20 }
 0x2f4   :  { %v3879_v39 = vsel %vm374_vm2, %v3878_v26, %v3837_v49  ;;  %v3892_v42 = vrot.slane %v9717_v41, 4 }
 0x2f5   :  { %v4253_v5 = vpop.f32.mrf.mxu3  ;;  %v9722_v1 = vadd.f32 %v9692_v30, %v4187_v37  ;;  %v4152_v16 = vadd.f32 %v4151_v9, %v3879_v39  ;;  %v3857_v37 = vsel %vm374_vm2, %v9626_v11, %v3856_v17  ;;  %12019 = vst [vmem:[#allocation57_spill] sm:$0xff] %v9763_v44  ;;  %v3997_v26 = vsel %vm374_vm2, %v3977_v18, %v3996_v56 }
 0x2f6   :  { %v4254_v51 = vadd.f32 %v4253_v5, %v3773_v33  ;;  %v3942_v33 = vrot.slane %v9679_v31, 4  ;;  %v3631_v5 = vpop.permute.xlu1 %3630  ;;  %v3893_v8 = vsel %vm374_vm2, %v9742_v62, %v3892_v42  ;;  %v4008_v39 = vrot.slane %v9025_v21, 4 }
 0x2f7   :  { %12015 = vst [vmem:[#allocation53_spill] sm:$0xff] %v9722_v1  ;;  %v4725_v13 = vsel %vm4715_vm4, %v9722_v1, -inf  ;;  %v9772_v11 = vperm.slane %v3833_v59, %v7742_v57  ;;  %v4042_v17 = vrot.slane %v9594_v60, 4  ;;  %v9776_v3 = vperm.slane %v3857_v37, %v7742_v57 }
 0x2f8   :  { %4717 = vmax.xlane.f32.xlu2 %v4716_v46  ;;  %v9730_v0 = vadd.f32 %v9536_v15, %v4254_v51  ;;  %4726 = vmax.xlane.f32.xlu0 %v4725_v13  ;;  %v9753_v46 = vadd.f32 %v9692_v30, %v4152_v16  ;;  %v3661_v61 = vpop.permute.xlu0 %3660  ;;  %v3994_v51 = vrot.slane %v3977_v18, 4  ;;  %v4006_v42 = vrot.slane %v9687_v54, 4 }
 0x2f9   :  { %v9737_v19 = vpop.permute.xlu2 %6897  ;;  %v4030_v16 = vrot.slane %v3661_v61, 4  ;;  %v4009_v18 = vsel %vm374_vm2, %v9687_v54, %v4008_v39  ;;  %v4020_v56 = vrot.slane %v3631_v5, 4  ;;  %v4397_v9 = vadd.f32 %v4396_v48, %v3893_v8 }
 0x2fa   :  { %12016 = vst [vmem:[#allocation56_spill] sm:$0xff] %v9730_v0  ;;  %v4734_v49 = vsel %vm4715_vm4, %v9730_v0, -inf  ;;  %v4719_v53 = vsel %vm4715_vm4, %v9753_v46, -inf  ;;  %v3842_v59 = vrot.slane %v9684_v47, 4  ;;  %v3980_v14 = vrot.slane %v9763_v44, 4 }
 0x2fb   :  { %4735 = vmax.xlane.f32.xlu1 %v4734_v49  ;;  %12018 = vst [vmem:[#allocation58_spill] sm:$0xff] %v9753_v46  ;;  %v9778_v49 = vpop.f32.mrf.mxu1  ;;  %v3995_v63 = vsel %vm374_vm2, %v3994_v51, %v3953_v58  ;;  %v4019_v40 = vsel %vm374_vm2, %v4018_v12, %v3631_v5  ;;  %v9795_v48 = vadd.f32 %v9692_v30, %v4397_v9  ;;  %v6900_v9 = vunpack.i.h.bf16 %v9737_v19 }
 0x2fc   :  { %v9798_v47 = vperm.slane %v4009_v18, %v7692_v20  ;;  %v4031_v8 = vsel %vm374_vm2, %v4030_v16, %v9667_v36  ;;  %v4007_v58 = vsel %vm374_vm2, %v4006_v42, %v9025_v21  ;;  %v4021_v12 = vsel %vm374_vm2, %v9564_v55, %v4020_v56 }
 0x2fd   :  { %12021 = vst [vmem:[#allocation22_spill] sm:$0xff] %v9795_v48  ;;  %v4761_v5 = vsel %vm4715_vm4, %v9795_v48, -inf  ;;  %v9813_v51 = vperm.slane %v4019_v40, %v7692_v20  ;;  %v6899_v21 = vunpack.i.l.bf16 %v9737_v19  ;;  %v9821_v55 = vperm.slane %v4031_v8, %v7692_v20 }
 0x2fe   :  { %v3655_v16 = vpop.permute.xlu1 %3654  ;;  %v9825_v18 = vadd.f32 %v9536_v15, %v4394_v52  ;;  %v9828_v40 = vperm.slane %v4007_v58, %v7692_v20  ;;  %v9831_v56 = vperm.slane %v4021_v12, %v7692_v20  ;;  %v3890_v1 = vrot.slane %v9742_v62, 4 }
 0x2ff   :  { %v4533_v45 = vpop.f32.mrf.mxu2  ;;  %v1514_v12 = vrot.slane %v6899_v21, 4 }
 0x300   :  { %v4534_v13 = vadd.f32 %v4533_v45, %v3997_v26  ;;  %4720 = vmax.xlane.f32.xlu2 %v4719_v53  ;;  %v4032_v26 = vrot.slane %v9667_v36, 4  ;;  %v4498_v45 = vpop.f32.mrf.mxu0  ;;  %v3882_v53 = vrot.slane %v9776_v3, 4  ;;  %4762 = vmax.xlane.f32.xlu0 %v4761_v5  ;;  %v3843_v36 = vsel %vm374_vm2, %v3842_v59, %v9643_v28  ;;  %12022 = vst [vmem:[#allocation39_spill] sm:$0xff] %v9825_v18 }
 0x301   :  { %v9786_v37 = vpop.permute.xlu2 %6902  ;;  %v3849_v42 = vperm.slane %v3843_v36, %v7742_v57  ;;  %v4758_v59 = vsel %vm4715_vm4, %v9825_v18, -inf }
 0x302   :  { %v9789_v29 = vadd.f32 %v9536_v15, %v4534_v13  ;;  %v4499_v13 = vadd.f32 %v4498_v45, %v3995_v63  ;;  %v3873_v63 = vperm.slane %v9656_v27, %v7742_v57  ;;  %v3883_v28 = vsel %vm374_vm2, %v3882_v53, %v9772_v11 }
 0x303   :  { %v4033_v19 = vsel %vm374_vm2, %v3661_v61, %v4032_v26  ;;  %v3888_v45 = vrot.slane %v3849_v42, 4  ;;  %v3943_v61 = vsel %vm374_vm2, %v3942_v33, %v9636_v50  ;;  %v3973_v26 = vperm.slane %v9568_v38, %v7742_v57 }
 0x304   :  { %12020 = vst [vmem:[#allocation59_spill] sm:$0xff] %v9789_v29  ;;  %v4782_v39 = vsel %vm4715_vm4, %v9789_v29, -inf  ;;  %v3886_v27 = vrot.slane %v3873_v63, 4  ;;  %v9839_v8 = vadd.f32 %v9536_v15, %v4499_v13  ;;  %v1516_v53 = vrot.slane %v6900_v9, 4 }
 0x305   :  { %4783 = vmax.xlane.f32.xlu1 %v4782_v39  ;;  %v4043_v39 = vsel %vm374_vm2, %v4042_v17, %v3655_v16  ;;  %v4080_v13 = vrot.slane %v9821_v55, 4  ;;  %v9855_v5 = vsel %vm374_vm2, %v3873_v63, %v3888_v45  ;;  %v3949_v36 = vperm.slane %v3943_v61, %v7742_v57 }
 0x306   :  { %12023 = vst [vmem:[#allocation26_spill] sm:$0xff] %v9839_v8  ;;  %v9845_v58 = vsel %vm374_vm2, %v3886_v27, %v3849_v42  ;;  %v4221_v17 = vpop.f32.mrf.mxu1  ;;  %v3990_v42 = vrot.slane %v3973_v26, 4  ;;  %v12024_v27 = vrot.slane %v9663_v6, 4  ;;  %v3981_v50 = vsel %vm374_vm2, %v9735_v10, %v3980_v14 }
 0x307   :  { %v4222_v38 = vadd.f32 %v4221_v17, %v3883_v28  ;;  %v4776_v33 = vsel %vm4715_vm4, %v9839_v8, -inf  ;;  %v3989_v63 = vperm.slane %v3981_v50, %v7742_v57  ;;  %v4044_v45 = vrot.slane %v3655_v16, 4 }
 0x308   :  { %4759 = vmax.xlane.f32.xlu2 %v4758_v59  ;;  %v3957_v31 = vsel %vm374_vm2, %v9701_v7, %v12024_v27  ;;  %v9869_v61 = vperm.slane %v4043_v39, %v7692_v20  ;;  %4777 = vmax.xlane.f32.xlu0 %v4776_v33  ;;  %v9872_v54 = vsel %vm374_vm2, %v3990_v42, %v3949_v36  ;;  %v3992_v27 = vrot.slane %v3949_v36, 4 }
 0x309   :  { %v9841_v52 = vpop.permute.xlu2 %6917  ;;  %v3965_v59 = vperm.slane %v3957_v31, %v7742_v57  ;;  %v1515_v29 = vsel %vm374_vm2, %v1514_v12, %v6900_v9  ;;  %v4056_v14 = vrot.slane %v9828_v40, 4  ;;  %v4002_v28 = vrot.slane %v3989_v63, 4 }
 0x30a   :  { %v9878_v31 = vperm.slane %v4033_v19, %v7692_v20  ;;  %v4081_v16 = vsel %vm374_vm2, %v9869_v61, %v4080_v13  ;;  %v9883_v39 = vsel %vm374_vm2, %v3973_v26, %v3992_v27  ;;  %v1517_v42 = vsel %vm374_vm2, %v6899_v21, %v1516_v53 }
 0x30b   :  { %v4004_v17 = vrot.slane %v3965_v59, 4  ;;  %v9887_v36 = vsel %vm374_vm2, %v4002_v28, %v3965_v59  ;;  %v9893_v12 = vadd.f32 %v9692_v30, %v4222_v38  ;;  %v9896_v19 = vperm.slane %v1515_v29, %v7692_v20 }
 0x30c   :  { %v12026_v13 = vrot.slane %v9772_v11, 4  ;;  %v4045_v21 = vsel %vm374_vm2, %v9594_v60, %v4044_v45  ;;  %v4057_v29 = vsel %vm374_vm2, %v9813_v51, %v4056_v14  ;;  %v9914_v11 = vperm.slane %v1517_v42, %v7692_v20 }
 0x30d   :  { %v9890_v9 = vsel %vm374_vm2, %v3989_v63, %v4004_v17  ;;  %12025 = vst [vmem:[#allocation36_spill] sm:$0xff] %v9893_v12  ;;  %v9911_v63 = vperm.slane %v4081_v16, %v7742_v57  ;;  %v6905_v28 = vunpack.i.h.bf16 %v9786_v37  ;;  %v9923_v17 = vperm.slane %v4045_v21, %v7692_v20 }
 0x30e   :  { %v9903_v26 = vsel %vm374_vm2, %v9776_v3, %v12026_v13  ;;  %v9918_v3 = vadd.f32 %v9778_v49, %v9599_v32  ;;  %v4731_v16 = vsel %vm4715_vm4, %v9893_v12, -inf  ;;  %v6904_v13 = vunpack.i.l.bf16 %v9786_v37  ;;  %v4256_v32 = vpop.f32.mrf.mxu3  ;;  %v4288_v18 = vpop.f32.mrf.mxu1 }
 0x30f   :  { %v4065_v33 = vperm.slane %v4057_v29, %v7742_v57  ;;  %v4106_v21 = vrot.slane %v9911_v63, 4  ;;  %v6920_v50 = vunpack.i.h.bf16 %v9841_v52  ;;  %v6919_v14 = vunpack.i.l.bf16 %v9841_v52 }
 0x310   :  { %4732 = vmax.xlane.f32.xlu0 %v4731_v16  ;;  %v1604_v48 = vrot.slane %v6905_v28, 4  ;;  %v1380_v29 = vrot.slane %v6904_v13, 4  ;;  %v12028_v37 = vunpack.i.h.bf16 %v12010_v22 }
 0x311   :  { %v6908_v53 = vpop.permute.xlu0 %6907  ;;  %v6928_v38 = vpop.permute.xlu2 %6927  ;;  %v4108_v2 = vrot.slane %v4065_v33, 4  ;;  %v4107_v42 = vsel %vm374_vm2, %v4106_v21, %v4065_v33  ;;  %v1616_v23 = vrot.slane %v6920_v50, 4  ;;  %v1392_v10 = vrot.slane %v6919_v14, 4 }
 0x312   :  { %v6909_v59 = vunpack.i.l.bf16 %v6908_v53  ;;  %v6910_v45 = vunpack.i.h.bf16 %v6908_v53  ;;  %v6913_v27 = vpop.permute.xlu1 %6912  ;;  %v6929_v49 = vunpack.i.l.bf16 %v6928_v38  ;;  %v6930_v60 = vunpack.i.h.bf16 %v6928_v38 }
 0x313   :  { %v6915_v8 = vunpack.i.h.bf16 %v6913_v27  ;;  %v6914_v12 = vunpack.i.l.bf16 %v6913_v27 }
 0x314   :  { %v1366_v53 = vrot.slane %v6909_v59, 4  ;;  %v1590_v0 = vrot.slane %v6910_v45, 4  ;;  %v1369_v38 = vsel %vm374_vm2, %v6909_v59, %v9611_v24  ;;  %v1390_v16 = vrot.slane %v6929_v49, 4 }
 0x315   :  { %v1614_v46 = vrot.slane %v6930_v60, 4  ;;  %v1602_v27 = vrot.slane %v6915_v8, 4  ;;  %v1378_v44 = vrot.slane %v6914_v12, 4  ;;  %v1377_v24 = vperm.slane %v1369_v38, %v7692_v20 }
 0x316   :  { %v1367_v52 = vsel %vm374_vm2, %v1366_v53, %v12027_v43  ;;  %v1591_v62 = vsel %vm374_vm2, %v1590_v0, %v12028_v37  ;;  %v1593_v59 = vsel %vm374_vm2, %v6910_v45, %v9603_v34  ;;  %v1381_v7 = vsel %vm374_vm2, %v6914_v12, %v1380_v29 }
 0x317   :  { %v3891_v43 = vsel %vm374_vm2, %v3890_v1, %v9717_v41  ;;  %v1373_v53 = vperm.slane %v1367_v52, %v7692_v20  ;;  %v1391_v33 = vsel %vm374_vm2, %v1390_v16, %v6919_v14  ;;  %v1393_v21 = vsel %vm374_vm2, %v6929_v49, %v1392_v10  ;;  %v4323_v41 = vpop.f32.mrf.mxu3 }
 0x318   :  { %v1603_v22 = vsel %vm374_vm2, %v1602_v27, %v6905_v28  ;;  %v1597_v37 = vperm.slane %v1591_v62, %v7692_v20  ;;  %v1615_v38 = vsel %vm374_vm2, %v1614_v46, %v6920_v50  ;;  %v1617_v34 = vsel %vm374_vm2, %v6930_v60, %v1616_v23 }
 0x319   :  { %v9956_v0 = vpop.permute.xlu0 %6922  ;;  %v1605_v12 = vsel %vm374_vm2, %v6915_v8, %v1604_v48  ;;  %v9962_v45 = vpop.permute.xlu2 %6942  ;;  %v1601_v1 = vperm.slane %v1593_v59, %v7692_v20  ;;  %v1379_v14 = vsel %vm374_vm2, %v1378_v44, %v6904_v13  ;;  %v1389_v10 = vperm.slane %v1381_v7, %v7692_v20 }
 0x31a   :  { %v4362_v28 = vadd.f32 %v9719_v35, %v3891_v43  ;;  %v9969_v49 = vperm.slane %v1391_v33, %v7692_v20  ;;  %v9972_v46 = vperm.slane %v1393_v21, %v7692_v20  ;;  %v1609_v23 = vperm.slane %v1603_v22, %v7692_v20  ;;  %v4291_v59 = vpop.f32.mrf.mxu1 }
 0x31b   :  { %v9977_v48 = vsel %vm374_vm2, %v9911_v63, %v4108_v2  ;;  %v1428_v8 = vrot.slane %v1377_v24, 4  ;;  %v9980_v50 = vperm.slane %v1615_v38, %v7692_v20  ;;  %v9983_v7 = vperm.slane %v1617_v34, %v7692_v20  ;;  %v4501_v21 = vpop.f32.mrf.mxu0 }
 0x31c   :  { %v1613_v35 = vperm.slane %v1605_v12, %v7692_v20  ;;  %v9987_v44 = vadd.f32 %v4256_v32, %v9903_v26  ;;  %v1416_v60 = vrot.slane %v1373_v53, 4  ;;  %v1640_v13 = vrot.slane %v1597_v37, 4 }
 0x31d   :  { %v1385_v29 = vperm.slane %v1379_v14, %v7692_v20  ;;  %v9991_v16 = vadd.f32 %v4288_v18, %v9695_v4  ;;  %v1652_v2 = vrot.slane %v1601_v1, 4  ;;  %v1426_v63 = vrot.slane %v1389_v10, 4 }
 0x31e   :  { %v9994_v52 = vadd.f32 %v9692_v30, %v4362_v28  ;;  %v9997_v27 = vadd.f32 %v4323_v41, %v9725_v25  ;;  %v1638_v32 = vrot.slane %v1609_v23, 4  ;;  %v1650_v4 = vrot.slane %v1613_v35, 4 }
 0x31f   :  { %v1429_v18 = vsel %vm374_vm2, %v1389_v10, %v1428_v8  ;;  %v1414_v22 = vrot.slane %v1385_v29, 4  ;;  %v1417_v38 = vsel %vm374_vm2, %v1385_v29, %v1416_v60  ;;  %v1641_v25 = vsel %vm374_vm2, %v1609_v23, %v1640_v13  ;;  %v4326_v60 = vpop.f32.mrf.mxu3 }
 0x320   :  { %12029 = vst [vmem:[#allocation18_spill] sm:$0xff] %v9994_v52  ;;  %v4502_v34 = vadd.f32 %v4501_v21, %v4107_v42  ;;  %v1427_v12 = vsel %vm374_vm2, %v1426_v63, %v1377_v24  ;;  %v1653_v41 = vsel %vm374_vm2, %v1613_v35, %v1652_v2  ;;  %v10009_v14 = vadd.f32 %v4291_v59, %v9845_v58 }
 0x321   :  { %v6924_v28 = vunpack.i.l.bf16 %v9956_v0  ;;  %v6933_v43 = vpop.permute.xlu0 %6932  ;;  %v10013_v62 = vperm.slane %v1429_v18, %v7742_v57  ;;  %v1639_v10 = vsel %vm374_vm2, %v1638_v32, %v1597_v37  ;;  %v6925_v8 = vunpack.i.h.bf16 %v9956_v0  ;;  %v10018_v42 = vpop.permute.xlu2 %6962 }
 0x322   :  { %v11856_v23 = vunpack.i.l.bf16 %v9962_v45  ;;  %v10021_v24 = vperm.slane %v1417_v38, %v7742_v57  ;;  %v10024_v58 = vperm.slane %v1641_v25, %v7742_v57  ;;  %v1651_v35 = vsel %vm374_vm2, %v1650_v4, %v1601_v1  ;;  %v4536_v32 = vpop.f32.mrf.mxu2  ;;  %v10039_v1 = vpop.permute.xlu1 %6937 }
 0x323   :  { %v4755_v13 = vsel %vm4715_vm4, %v9994_v52, -inf  ;;  %v1415_v37 = vsel %vm374_vm2, %v1414_v22, %v1373_v53  ;;  %v10031_v0 = vperm.slane %v1427_v12, %v7742_v57  ;;  %v10034_v29 = vadd.f32 %v9692_v30, %v4502_v34 }
 0x324   :  { %4756 = vmax.xlane.f32.xlu2 %v4755_v13  ;;  %v6935_v2 = vunpack.i.h.bf16 %v6933_v43  ;;  %v10037_v63 = vperm.slane %v1639_v10, %v7742_v57  ;;  %v1404_v59 = vrot.slane %v6924_v28, 4  ;;  %v6934_v4 = vunpack.i.l.bf16 %v6933_v43 }
 0x325   :  { %12030 = vst [vmem:[#allocation38_spill] sm:$0xff] %v10031_v0  ;;  %v6965_v18 = vunpack.i.h.bf16 %v10018_v42  ;;  %v1628_v21 = vrot.slane %v6925_v8, 4  ;;  %v1492_v53 = vrot.slane %v11856_v23, 4  ;;  %v4779_v22 = vsel %vm4715_vm4, %v10034_v29, -inf }
 0x326   :  { %12031 = vst [vmem:[#allocation24_spill] sm:$0xff] %v10034_v29  ;;  %v1626_v38 = vrot.slane %v6935_v2, 4  ;;  %v4327_v34 = vadd.f32 %v4326_v60, %v9855_v5  ;;  %4780 = vmax.xlane.f32.xlu1 %v4779_v22  ;;  %v1402_v12 = vrot.slane %v6934_v4, 4  ;;  %v1405_v10 = vsel %vm374_vm2, %v6934_v4, %v1404_v59  ;;  %v4428_v60 = vpop.f32.mrf.mxu1 }
 0x327   :  { %v10050_v43 = vperm.slane %v1415_v37, %v7742_v57  ;;  %v10053_v13 = vperm.slane %v1651_v35, %v7742_v57  ;;  %v1629_v23 = vsel %vm374_vm2, %v6935_v2, %v1628_v21  ;;  %v10057_v33 = vsel %vm374_vm2, %v6965_v18, %v1492_v53 }
 0x328   :  { %v10062_v5 = vperm.slane %v1653_v41, %v7742_v57  ;;  %v1413_v59 = vperm.slane %v1405_v10, %v7692_v20  ;;  %v1403_v4 = vsel %vm374_vm2, %v1402_v12, %v6924_v28  ;;  %v1627_v2 = vsel %vm374_vm2, %v1626_v38, %v6925_v8  ;;  %v4638_v41 = vpop.f32.mrf.mxu0  ;;  %v4463_v38 = vpop.f32.mrf.mxu3 }
 0x329   :  { %v10070_v21 = vadd.f32 %v9692_v30, %v4327_v34  ;;  %v11857_v53 = vunpack.i.h.bf16 %v9962_v45  ;;  %v11858_v22 = vunpack.i.h.bf16 %v10039_v1  ;;  %v1637_v25 = vperm.slane %v1629_v23, %v7692_v20 }
 0x32a   :  { %v4429_v28 = vadd.f32 %v4428_v60, %v9872_v54  ;;  %v10081_v34 = vperm.slane %v1403_v4, %v7692_v20  ;;  %v1450_v12 = vrot.slane %v1413_v59, 4  ;;  %v10084_v26 = vperm.slane %v1627_v2, %v7692_v20  ;;  %v4673_v8 = vpop.f32.mrf.mxu2 }
 0x32b   :  { %12032 = vst [vmem:[#allocation41_spill] sm:$0xff] %v10070_v21  ;;  %v10087_v23 = vadd.f32 %v4536_v32, %v9977_v48  ;;  %v10090_v10 = vadd.f32 %v4638_v41, %v9887_v36  ;;  %v12033_v37 = vrot.slane %v9972_v46, 4  ;;  %v10098_v4 = vrot.slane %v11857_v53, 4  ;;  %v10102_v32 = vpop.permute.xlu1 %6957 }
 0x32c   :  { %v1704_v2 = vrot.slane %v11858_v22, 4  ;;  %v1674_v35 = vrot.slane %v1637_v25, 4  ;;  %v1490_v48 = vrot.slane %v6965_v18, 4  ;;  %v12034_v36 = vunpack.i.l.bf16 %v10039_v1 }
 0x32d   :  { %v1453_v54 = vsel %vm374_vm2, %v1413_v59, %v12033_v37  ;;  %v10109_v59 = vadd.f32 %v9536_v15, %v4429_v28  ;;  %v10112_v37 = vadd.f32 %v4463_v38, %v9883_v39  ;;  %v12037_v53 = vrot.slane %v9983_v7, 4 }
 0x32e   :  { %v10106_v41 = vrot.slane %v12034_v36, 4  ;;  %v12038_v22 = vrot.slane %v9969_v49, 4  ;;  %v1451_v29 = vsel %vm374_vm2, %v1450_v12, %v9972_v46  ;;  %v10124_v36 = vperm.slane %v1453_v54, %v7742_v57 }
 0x32f   :  { %12035 = vst [vmem:[#allocation23_spill] sm:$0xff] %v10109_v59  ;;  %v1677_v60 = vsel %vm374_vm2, %v1637_v25, %v12037_v53  ;;  %v12039_v28 = vrot.slane %v9980_v50, 4  ;;  %v10131_v38 = vadd.f32 %v4673_v8, %v9890_v9  ;;  %v12040_v25 = vunpack.i.l.bf16 %v10018_v42 }
 0x330   :  { %12036 = vst [vmem:[#allocation29_spill] sm:$0xff] %v10112_v37  ;;  %v1441_v18 = vsel %vm374_vm2, %v10081_v34, %v12038_v22  ;;  %v1662_v46 = vrot.slane %v10084_v26, 4  ;;  %v1675_v12 = vsel %vm374_vm2, %v1674_v35, %v9983_v7  ;;  %v10143_v54 = vperm.slane %v1677_v60, %v7742_v57  ;;  %v6968_v37 = vpop.permute.xlu2 %6967 }
 0x331   :  { %v1665_v39 = vsel %vm374_vm2, %v10084_v26, %v12039_v28  ;;  %v10135_v53 = vrot.slane %v12040_v25, 4  ;;  %v12041_v28 = vunpack.i.l.bf16 %v9962_v45  ;;  %v1438_v8 = vrot.slane %v10081_v34, 4 }
 0x332   :  { %v10150_v25 = vperm.slane %v1441_v18, %v7742_v57  ;;  %v10153_v22 = vperm.slane %v1451_v29, %v7742_v57  ;;  %v10156_v26 = vperm.slane %v1665_v39, %v7742_v57  ;;  %v12042_v35 = vrot.slane %v9813_v51, 4 }
 0x333   :  { %v1491_v9 = vsel %vm374_vm2, %v1490_v48, %v12041_v28  ;;  %v12043_v48 = vrot.slane %v9869_v61, 4  ;;  %v12044_v18 = vrot.slane %v9798_v47, 4  ;;  %v12045_v39 = vrot.slane %v10013_v62, 4  ;;  %v6948_v61 = vpop.permute.xlu0 %6947 }
 0x334   :  { %v4055_v60 = vsel %vm374_vm2, %v12042_v35, %v9828_v40 }
 0x335   :  { %v4079_v34 = vsel %vm374_vm2, %v12043_v48, %v9821_v55  ;;  %v4069_v29 = vsel %vm374_vm2, %v9831_v56, %v12044_v18  ;;  %v10175_v28 = vsel %vm374_vm2, %v10124_v36, %v12045_v39  ;;  %v4061_v51 = vperm.slane %v4055_v60, %v7742_v57 }
 0x336   :  { %v4085_v40 = vperm.slane %v4079_v34, %v7742_v57  ;;  %v4077_v35 = vperm.slane %v4069_v29, %v7742_v57  ;;  %v12046_v55 = vrot.slane %v9878_v31, 4  ;;  %v10186_v18 = vadd.f32 %v9536_v15, %v9918_v3 }
 0x337   :  { %v10190_v39 = vadd.f32 %v9692_v30, %v9987_v44  ;;  %v10194_v60 = vadd.f32 %v9536_v15, %v9991_v16  ;;  %v4104_v52 = vrot.slane %v4061_v51, 4  ;;  %v6950_v44 = vunpack.i.h.bf16 %v6948_v61 }
 0x338   :  { %v4093_v48 = vsel %vm374_vm2, %v9923_v17, %v12046_v55  ;;  %12047 = vst [vmem:[#allocation27_spill] sm:$0xff] %v10186_v18  ;;  %v4102_v34 = vrot.slane %v4085_v40, 4  ;;  %v4116_v7 = vrot.slane %v4077_v35, 4  ;;  %v4728_v55 = vsel %vm4715_vm4, %v10186_v18, -inf }
 0x339   :  { %12048 = vst [vmem:[#allocation44_spill] sm:$0xff] %v10190_v39  ;;  %v4101_v29 = vperm.slane %v4093_v48, %v7742_v57  ;;  %v4737_v3 = vsel %vm4715_vm4, %v10190_v39, -inf  ;;  %v4740_v59 = vsel %vm4715_vm4, %v10194_v60, -inf  ;;  %4729 = vmax.xlane.f32.xlu2 %v4728_v55  ;;  %v10207_v48 = vsel %vm374_vm2, %v4085_v40, %v4104_v52 }
 0x33a   :  { %12049 = vst [vmem:[#allocation28_spill] sm:$0xff] %v10194_v60  ;;  %v10204_v21 = vsel %vm374_vm2, %v4102_v34, %v4061_v51  ;;  %4738 = vmax.xlane.f32.xlu1 %v4737_v3  ;;  %v1439_v39 = vsel %vm374_vm2, %v1438_v8, %v9969_v49  ;;  %v1497_v18 = vperm.slane %v1491_v9, %v7692_v20  ;;  %v1702_v51 = vrot.slane %v6950_v44, 4 }
 0x33b   :  { %v4114_v16 = vrot.slane %v4101_v29, 4  ;;  %v10210_v0 = vsel %vm374_vm2, %v4101_v29, %v4116_v7  ;;  %v1501_v60 = vperm.slane %v10057_v33, %v7692_v20  ;;  %4741 = vmax.xlane.f32.xlu0 %v4740_v59  ;;  %v6949_v55 = vunpack.i.l.bf16 %v6948_v61 }
 0x33c   :  { %v1705_v3 = vsel %vm374_vm2, %v6950_v44, %v1704_v2  ;;  %v6970_v52 = vunpack.i.h.bf16 %v6968_v37  ;;  %v1663_v7 = vsel %vm374_vm2, %v1662_v46, %v9980_v50  ;;  %v10222_v40 = vperm.slane %v1675_v12, %v7742_v57 }
 0x33d   :  { %v4115_v34 = vsel %vm374_vm2, %v4114_v16, %v4077_v35  ;;  %v12050_v9 = vunpack.i.h.bf16 %v10039_v1  ;;  %v10229_v59 = vperm.slane %v1439_v39, %v7742_v57  ;;  %v12051_v8 = vunpack.i.h.bf16 %v10102_v32 }
 0x33e   :  { %v1478_v2 = vrot.slane %v6949_v55, 4  ;;  %v1481_v61 = vsel %vm374_vm2, %v6949_v55, %v10106_v41  ;;  %v1538_v50 = vrot.slane %v1501_v60, 4  ;;  %v1740_v12 = vrot.slane %v6970_v52, 4 }
 0x33f   :  { %v1703_v33 = vsel %vm374_vm2, %v1702_v51, %v12050_v9  ;;  %v1502_v35 = vrot.slane %v12051_v8, 4  ;;  %v1489_v46 = vperm.slane %v1481_v61, %v7692_v20  ;;  %v6969_v29 = vunpack.i.l.bf16 %v6968_v37 }
 0x340   :  { %v1526_v16 = vrot.slane %v1497_v18, 4  ;;  %v12052_v51 = vunpack.i.l.bf16 %v10039_v1  ;;  %v1739_v9 = vsel %vm374_vm2, %v10135_v53, %v6970_v52  ;;  %v12053_v37 = vrot.slane %v10021_v24, 4 }
 0x341   :  { %v10244_v49 = vsel %vm374_vm2, %v1538_v50, %v1489_v46  ;;  %v1540_v41 = vrot.slane %v1489_v46, 4  ;;  %v1503_v55 = vsel %vm374_vm2, %v1502_v35, %v6969_v29  ;;  %v1504_v1 = vrot.slane %v6969_v29, 4 }
 0x342   :  { %v1479_v39 = vsel %vm374_vm2, %v1478_v2, %v12052_v51  ;;  %v10251_v61 = vsel %vm374_vm2, %v10150_v25, %v12053_v37  ;;  %v1509_v2 = vperm.slane %v1503_v55, %v7692_v20  ;;  %v12054_v51 = vunpack.i.l.bf16 %v10018_v42 }
 0x343   :  { %v1485_v8 = vperm.slane %v1479_v39, %v7692_v20  ;;  %v10260_v35 = vsel %vm374_vm2, %v1501_v60, %v1540_v41  ;;  %v12055_v39 = vrot.slane %v10124_v36, 4  ;;  %v10269_v29 = vperm.slane %v1663_v7, %v7742_v57 }
 0x344   :  { %v1741_v53 = vsel %vm374_vm2, %v12054_v51, %v1740_v12  ;;  %v12057_v12 = vunpack.i.h.bf16 %v10102_v32  ;;  %v12058_v41 = vrot.slane %v9896_v19, 4  ;;  %v12059_v55 = vrot.slane %v10024_v58, 4 }
 0x345   :  { %v1527_v50 = vsel %vm374_vm2, %v1526_v16, %v1485_v8  ;;  %v1528_v46 = vrot.slane %v1485_v8, 4  ;;  %v10266_v37 = vsel %vm374_vm2, %v12055_v39, %v10013_v62  ;;  %v1552_v62 = vrot.slane %v1509_v2, 4 }
 0x346   :  { %v10272_v42 = vperm.slane %v1527_v50, %v7742_v57  ;;  %v1505_v16 = vsel %vm374_vm2, %v12057_v12, %v1504_v1  ;;  %v1551_v36 = vsel %vm374_vm2, %v12058_v41, %v1509_v2  ;;  %v10286_v7 = vsel %vm374_vm2, %v10156_v26, %v12059_v55  ;;  %v4641_v1 = vpop.f32.mrf.mxu0 }
 0x347   :  { %v1529_v8 = vsel %vm374_vm2, %v1497_v18, %v1528_v46  ;;  %v1513_v60 = vperm.slane %v1505_v16, %v7692_v20  ;;  %v1553_v46 = vsel %vm374_vm2, %v9896_v19, %v1552_v62  ;;  %v10296_v39 = vperm.slane %v1551_v36, %v7742_v57 }
 0x348   :  { %12056 = vst [vmem:[#allocation37_spill] sm:$0xff] %v10272_v42  ;;  %v10290_v50 = vperm.slane %v1529_v8, %v7742_v57  ;;  %v1576_v18 = vrot.slane %v10272_v42, 4  ;;  %v12062_v2 = vrot.slane %v9914_v11, 4  ;;  %v12064_v8 = vrot.slane %v10053_v13, 4 }
 0x349   :  { %12061 = vst [vmem:[#allocation32_spill] sm:$0xff] %v10296_v39  ;;  %v1564_v16 = vrot.slane %v1513_v60, 4  ;;  %v10312_v19 = vperm.slane %v1553_v46, %v7742_v57  ;;  %v12066_v62 = vrot.slane %v10062_v5, 4  ;;  %v12069_v44 = vunpack.i.l.bf16 %v10102_v32 }
 0x34a   :  { %12060 = vst [vmem:[#allocation25_spill] sm:$0xff] %v10290_v50  ;;  %v10301_v12 = vsel %vm374_vm2, %v12062_v2, %v1513_v60  ;;  %v10308_v55 = vsel %vm374_vm2, %v10222_v40, %v12064_v8  ;;  %v1580_v52 = vrot.slane %v10290_v50, 4  ;;  %v10327_v8 = vsel %vm374_vm2, %v10296_v39, %v1576_v18  ;;  %v12074_v39 = vld [vmem:[#allocation55_spill] sm:$0xff] }
 0x34b   :  { %12063 = vst [vmem:[#allocation46_spill] sm:$0xff] %v10301_v12  ;;  %v10319_v60 = vsel %vm374_vm2, %v10143_v54, %v12066_v62  ;;  %v10323_v2 = vsel %vm374_vm2, %v9914_v11, %v1564_v16  ;;  %v1728_v46 = vrot.slane %v12069_v44, 4  ;;  %v4642_v41 = vadd.f32 %v4641_v1, %v4115_v34  ;;  %v6953_v62 = vpop.permute.xlu0 %6952  ;;  %v12071_v16 = vld [vmem:[#allocation51_spill] sm:$0xff] }
 0x34c   :  { %12065 = vst [vmem:[#allocation35_spill] sm:$0xff] %v10312_v19  ;;  %v1709_v51 = vperm.slane %v1703_v33, %v7692_v20  ;;  %v10334_v36 = vsel %vm374_vm2, %v10312_v19, %v1580_v52  ;;  %v1713_v50 = vperm.slane %v1705_v3, %v7692_v20  ;;  %v1745_v11 = vperm.slane %v1739_v9, %v7692_v20 }
 0x34d   :  { %12067 = vst [vmem:[#allocation31_spill] sm:$0xff] %v10323_v2  ;;  %v12072_v42 = vrot.slane %v12071_v16, 4  ;;  %v12075_v44 = vrot.slane %v12074_v39, 4  ;;  %v1749_v33 = vperm.slane %v1741_v53, %v7692_v20  ;;  %v10351_v3 = vadd.f32 %v9692_v30, %v10087_v23 }
 0x34e   :  { %12068 = vst [vmem:[#allocation42_spill] sm:$0xff] %v10327_v8  ;;  %v12073_v8 = vld [vmem:[#allocation57_spill] sm:$0xff]  ;;  %v10355_v9 = vadd.f32 %v9536_v15, %v9997_v27  ;;  %v6954_v39 = vunpack.i.l.bf16 %v6953_v62  ;;  %v12077_v19 = vunpack.i.h.bf16 %v9962_v45 }
 0x34f   :  { %12070 = vst [vmem:[#allocation19_spill] sm:$0xff] %v10334_v36  ;;  %v3955_v18 = vsel %vm374_vm2, %v12072_v42, %v9663_v6  ;;  %v3979_v34 = vsel %vm374_vm2, %v12075_v44, %v12073_v8  ;;  %v10359_v6 = vadd.f32 %v9536_v15, %v10090_v10  ;;  %v6955_v42 = vunpack.i.h.bf16 %v6953_v62 }
 0x350   :  { %v3961_v52 = vperm.slane %v3955_v18, %v7742_v57  ;;  %v3985_v1 = vperm.slane %v3979_v34, %v7742_v57  ;;  %v4785_v53 = vsel %vm4715_vm4, %v10351_v3, -inf  ;;  %v12076_v18 = vrot.slane %v9831_v56, 4 }
 0x351   :  { %4786 = vmax.xlane.f32.xlu2 %v4785_v53  ;;  %v4746_v27 = vsel %vm4715_vm4, %v10355_v9, -inf  ;;  %v4800_v10 = vsel %vm4715_vm4, %v10359_v6, -inf  ;;  %v1714_v44 = vrot.slane %v6955_v42, 4  ;;  %v1717_v62 = vsel %vm374_vm2, %v6955_v42, %v10098_v4 }
 0x352   :  { %v3998_v8 = vrot.slane %v3985_v1, 4  ;;  %v4000_v16 = vrot.slane %v3961_v52, 4  ;;  %v4067_v23 = vsel %vm374_vm2, %v12076_v18, %v9798_v47  ;;  %4747 = vmax.xlane.f32.xlu1 %v4746_v27  ;;  %4801 = vmax.xlane.f32.xlu0 %v4800_v10  ;;  %v1725_v47 = vperm.slane %v1717_v62, %v7692_v20 }
 0x353   :  { %v1726_v56 = vrot.slane %v6954_v39, 4  ;;  %v1752_v53 = vrot.slane %v1709_v51, 4  ;;  %v1764_v18 = vrot.slane %v1713_v50, 4  ;;  %v1715_v2 = vsel %vm374_vm2, %v1714_v44, %v12077_v19 }
 0x354   :  { %v10374_v34 = vsel %vm374_vm2, %v3998_v8, %v3961_v52  ;;  %v10377_v36 = vsel %vm374_vm2, %v3985_v1, %v4000_v16  ;;  %v1729_v12 = vsel %vm374_vm2, %v6954_v39, %v1728_v46  ;;  %v1721_v4 = vperm.slane %v1715_v2, %v7692_v20 }
 0x355   :  { %v12078_v52 = vunpack.i.l.bf16 %v10102_v32  ;;  %v1737_v1 = vperm.slane %v1729_v12, %v7692_v20  ;;  %v1762_v8 = vrot.slane %v1725_v47, 4  ;;  %v1774_v16 = vrot.slane %v1745_v11, 4 }
 0x356   :  { %v1786_v27 = vrot.slane %v1749_v33, 4  ;;  %v1765_v62 = vsel %vm374_vm2, %v1725_v47, %v1764_v18  ;;  %v1750_v45 = vrot.slane %v1721_v4, 4  ;;  %v1753_v19 = vsel %vm374_vm2, %v1721_v4, %v1752_v53 }
 0x357   :  { %v1727_v42 = vsel %vm374_vm2, %v1726_v56, %v12078_v52  ;;  %v1763_v46 = vsel %vm374_vm2, %v1762_v8, %v1713_v50  ;;  %v1773_v2 = vperm.slane %v1765_v62, %v7742_v57  ;;  %v1761_v32 = vperm.slane %v1753_v19, %v7742_v57  ;;  %v4466_v52 = vpop.f32.mrf.mxu3 }
 0x358   :  { %v1733_v10 = vperm.slane %v1727_v42, %v7692_v20  ;;  %v10396_v39 = vperm.slane %v1763_v46, %v7742_v57  ;;  %v1686_v56 = vrot.slane %v10269_v29, 4  ;;  %v1751_v47 = vsel %vm374_vm2, %v1750_v45, %v1709_v51 }
 0x359   :  { %v1787_v18 = vsel %vm374_vm2, %v1786_v27, %v1737_v1  ;;  %v1788_v53 = vrot.slane %v1737_v1, 4  ;;  %v10403_v50 = vadd.f32 %v9692_v30, %v4642_v41  ;;  %v10406_v4 = vperm.slane %v1751_v47, %v7742_v57 }
 0x35a   :  { %12079 = vst [vmem:[#allocation40_spill] sm:$0xff] %v10396_v39  ;;  %v1775_v12 = vsel %vm374_vm2, %v1774_v16, %v1733_v10  ;;  %v1776_v44 = vrot.slane %v1733_v10, 4  ;;  %v1804_v8 = vrot.slane %v1761_v32, 4  ;;  %v10412_v62 = vperm.slane %v1787_v18, %v7742_v57 }
 0x35b   :  { %12080 = vst [vmem:[#allocation49_spill] sm:$0xff] %v10406_v4  ;;  %v1789_v10 = vsel %vm374_vm2, %v1749_v33, %v1788_v53  ;;  %v1808_v51 = vrot.slane %v10396_v39, 4  ;;  %v10416_v1 = vperm.slane %v1775_v12, %v7742_v57  ;;  %v1800_v27 = vrot.slane %v10406_v4, 4 }
 0x35c   :  { %v1777_v42 = vsel %vm374_vm2, %v1745_v11, %v1776_v44  ;;  %v1797_v41 = vperm.slane %v1789_v10, %v7742_v57  ;;  %v1812_v45 = vrot.slane %v1773_v2, 4  ;;  %v4073_v46 = vperm.slane %v4067_v23, %v7742_v57 }
 0x35d   :  { %v1785_v16 = vperm.slane %v1777_v42, %v7742_v57  ;;  %v10425_v33 = vsel %vm374_vm2, %v10412_v62, %v1808_v51  ;;  %v12082_v44 = vrot.slane %v10143_v54, 4  ;;  %v10436_v47 = vsel %vm374_vm2, %v10416_v1, %v1800_v27 }
 0x35e   :  { %12081 = vst [vmem:[#allocation47_spill] sm:$0xff] %v10425_v33  ;;  %v1810_v18 = vrot.slane %v1797_v41, 4  ;;  %v10439_v53 = vsel %vm374_vm2, %v1797_v41, %v1812_v45  ;;  %v1850_v42 = vrot.slane %v10175_v28, 4  ;;  %v1962_v23 = vrot.slane %v10319_v60, 4  ;;  %v4676_v45 = vpop.f32.mrf.mxu2  ;;  %v12096_v33 = vld [vmem:[#allocation41_spill] sm:$0xff] }
 0x35f   :  { %v1802_v19 = vrot.slane %v1785_v16, 4  ;;  %v10421_v11 = vsel %vm374_vm2, %v1785_v16, %v1804_v8  ;;  %v10432_v12 = vsel %vm374_vm2, %v12082_v44, %v10062_v5  ;;  %12083 = vst [vmem:[#allocation20_spill] sm:$0xff] %v10439_v53  ;;  %v1938_v8 = vrot.slane %v10286_v7, 4 }
 0x360   :  { %v4467_v5 = vadd.f32 %v4466_v52, %v10207_v48  ;;  %v10449_v54 = vsel %vm374_vm2, %v1810_v18, %v1773_v2  ;;  %v12086_v10 = vrot.slane %v9923_v17, 4  ;;  %v4803_v41 = vsel %vm4715_vm4, %v10403_v50, -inf }
 0x361   :  { %v10445_v16 = vsel %vm374_vm2, %v1802_v19, %v1761_v32  ;;  %12085 = vst [vmem:[#allocation33_spill] sm:$0xff] %v10449_v54  ;;  %v1950_v27 = vrot.slane %v10432_v12, 4  ;;  %4804 = vmax.xlane.f32.xlu2 %v4803_v41  ;;  %v10461_v48 = vadd.f32 %v9692_v30, %v10009_v14  ;;  %v4112_v2 = vrot.slane %v4073_v46, 4 }
 0x362   :  { %12084 = vst [vmem:[#allocation43_spill] sm:$0xff] %v10445_v16  ;;  %v4091_v51 = vsel %vm374_vm2, %v12086_v10, %v9878_v31  ;;  %v10465_v32 = vsel %vm374_vm2, %v1686_v56, %v10037_v63  ;;  %v12087_v31 = vrot.slane %v10037_v63, 4  ;;  %v12088_v52 = vrot.slane %v10156_v26, 4  ;;  %v4603_v10 = vpop.f32.mrf.mxu3 }
 0x363   :  { %v4097_v44 = vperm.slane %v4091_v51, %v7742_v57  ;;  %v12089_v14 = vrot.slane %v10222_v40, 4  ;;  %v4743_v63 = vsel %vm4715_vm4, %v10461_v48, -inf  ;;  %v10490_v26 = vadd.f32 %v9692_v30, %v4467_v5 }
 0x364   :  { %v10471_v17 = vsel %vm374_vm2, %v10269_v29, %v12087_v31  ;;  %v1691_v19 = vsel %vm374_vm2, %v12088_v52, %v10024_v58  ;;  %v10493_v58 = vadd.f32 %v4676_v45, %v10210_v0  ;;  %4744 = vmax.xlane.f32.xlu1 %v4743_v63  ;;  %v10506_v5 = vadd.f32 %v4603_v10, %v10377_v36 }
 0x365   :  { %v10481_v18 = vsel %vm374_vm2, %v12089_v14, %v10053_v13  ;;  %v4110_v56 = vrot.slane %v4097_v44, 4  ;;  %v10486_v51 = vsel %vm374_vm2, %v4097_v44, %v4112_v2  ;;  %v1926_v29 = vrot.slane %v1691_v19, 4 }
 0x366   :  { %v1939_v13 = vsel %vm374_vm2, %v1938_v8, %v10471_v17  ;;  %v1951_v31 = vsel %vm374_vm2, %v1950_v27, %v10481_v18  ;;  %v1928_v0 = vrot.slane %v10465_v32, 4  ;;  %v1940_v8 = vrot.slane %v10471_v17, 4 }
 0x367   :  { %v10498_v40 = vsel %vm374_vm2, %v4110_v56, %v4073_v46  ;;  %v1927_v44 = vsel %vm374_vm2, %v1926_v29, %v10465_v32  ;;  %v1945_v2 = vperm.slane %v1939_v13, %v7692_v20  ;;  %v1952_v46 = vrot.slane %v10481_v18, 4  ;;  %v12093_v13 = vld [vmem:[#allocation38_spill] sm:$0xff] }
 0x368   :  { %v1933_v45 = vperm.slane %v1927_v44, %v7692_v20  ;;  %v1963_v52 = vsel %vm374_vm2, %v1962_v23, %v10308_v55  ;;  %v10516_v56 = vadd.f32 %v9536_v15, %v10131_v38  ;;  %v1957_v27 = vperm.slane %v1951_v31, %v7692_v20 }
 0x369   :  { %v1974_v14 = vrot.slane %v1945_v2, 4  ;;  %v1969_v36 = vperm.slane %v1963_v52, %v7692_v20  ;;  %v12090_v32 = vrot.slane %v10229_v59, 4  ;;  %v12091_v17 = vrot.slane %v10050_v43, 4 }
 0x36a   :  { %v4806_v38 = vsel %vm4715_vm4, %v10516_v56, -inf  ;;  %v12092_v63 = vrot.slane %v10150_v25, 4  ;;  %v12094_v44 = vrot.slane %v10153_v22, 4  ;;  %v12095_v52 = vrot.slane %v12093_v13, 4 }
 0x36b   :  { %v10524_v10 = vsel %vm374_vm2, %v12090_v32, %v10050_v43  ;;  %v10530_v23 = vsel %vm374_vm2, %v10229_v59, %v12091_v17  ;;  %v1975_v18 = vsel %vm374_vm2, %v1974_v14, %v1933_v45  ;;  %v1998_v31 = vrot.slane %v1969_v36, 4  ;;  %4807 = vmax.xlane.f32.xlu0 %v4806_v38 }
 0x36c   :  { %v10539_v29 = vsel %vm374_vm2, %v12092_v63, %v10021_v24  ;;  %v10545_v43 = vsel %vm374_vm2, %v12094_v44, %v12093_v13  ;;  %v1981_v59 = vperm.slane %v1975_v18, %v7742_v57  ;;  %v10552_v14 = vsel %vm374_vm2, %v10153_v22, %v12095_v52 }
 0x36d   :  { %v1814_v25 = vrot.slane %v10539_v29, 4  ;;  %v1826_v32 = vrot.slane %v10251_v61, 4  ;;  %v1838_v63 = vrot.slane %v10266_v37, 4  ;;  %v1999_v18 = vsel %vm374_vm2, %v1998_v31, %v1957_v27 }
 0x36e   :  { %v1851_v22 = vsel %vm374_vm2, %v1850_v42, %v10552_v14  ;;  %v2005_v44 = vperm.slane %v1999_v18, %v7742_v57  ;;  %v2024_v42 = vrot.slane %v1981_v59, 4  ;;  %v1976_v39 = vrot.slane %v1933_v45, 4 }
 0x36f   :  { %v1815_v38 = vsel %vm374_vm2, %v1814_v25, %v10524_v10  ;;  %v1827_v24 = vsel %vm374_vm2, %v1826_v32, %v10530_v23  ;;  %v1839_v17 = vsel %vm374_vm2, %v1838_v63, %v10545_v43  ;;  %v1857_v13 = vperm.slane %v1851_v22, %v7692_v20 }
 0x370   :  { %v1821_v52 = vperm.slane %v1815_v38, %v7692_v20  ;;  %v1833_v31 = vperm.slane %v1827_v24, %v7692_v20  ;;  %v1845_v41 = vperm.slane %v1839_v17, %v7692_v20  ;;  %v2022_v4 = vrot.slane %v2005_v44, 4 }
 0x371   :  { %v2000_v18 = vrot.slane %v1957_v27, 4  ;;  %v1886_v38 = vrot.slane %v1857_v13, 4  ;;  %v4749_v32 = vsel %vm4715_vm4, %v12096_v33, -inf  ;;  %v1929_v53 = vsel %vm374_vm2, %v1691_v19, %v1928_v0 }
 0x372   :  { %v1862_v54 = vrot.slane %v1833_v31, 4  ;;  %v2023_v63 = vsel %vm374_vm2, %v2022_v4, %v1981_v59  ;;  %v2025_v24 = vsel %vm374_vm2, %v2005_v44, %v2024_v42  ;;  %v1977_v17 = vsel %vm374_vm2, %v1945_v2, %v1976_v39  ;;  %4750 = vmax.xlane.f32.xlu2 %v4749_v32 }
 0x373   :  { %v2001_v25 = vsel %vm374_vm2, %v1969_v36, %v2000_v18  ;;  %5088 = vmatpush.msrb.mxu1 %v2023_v63  ;;  %v1887_v27 = vsel %vm374_vm2, %v1886_v38, %v1845_v41  ;;  %5117 = vmatpush.msrb.mxu3 %v2025_v24  ;;  %v1985_v22 = vperm.slane %v1977_v17, %v7742_v57  ;;  %v1864_v16 = vrot.slane %v1821_v52, 4 }
 0x374   :  { %v1863_v45 = vsel %vm374_vm2, %v1862_v54, %v1821_v52  ;;  %v1893_v4 = vperm.slane %v1887_v27, %v7742_v57  ;;  %v2009_v0 = vperm.slane %v2001_v25, %v7742_v57  ;;  %v1937_v39 = vperm.slane %v1929_v53, %v7692_v20 }
 0x375   :  { %v1869_v19 = vperm.slane %v1863_v45, %v7742_v57  ;;  %v1941_v2 = vsel %vm374_vm2, %v10286_v7, %v1940_v8  ;;  %v1953_v54 = vsel %vm374_vm2, %v10432_v12, %v1952_v46  ;;  %v12097_v36 = vrot.slane %v10308_v55, 4  ;;  %v10602_v12 = vpop.f32.mrf.mxu1 }
 0x376   :  { %v1865_v44 = vsel %vm374_vm2, %v1833_v31, %v1864_v16  ;;  %v1910_v52 = vrot.slane %v1893_v4, 4  ;;  %v2026_v42 = vrot.slane %v2009_v0, 4  ;;  %v1949_v18 = vperm.slane %v1941_v2, %v7692_v20 }
 0x377   :  { %v1965_v59 = vsel %vm374_vm2, %v10319_v60, %v12097_v36  ;;  %v1961_v25 = vperm.slane %v1953_v54, %v7692_v20  ;;  %v1912_v38 = vrot.slane %v1869_v19, 4  ;;  %v1873_v7 = vperm.slane %v1865_v44, %v7742_v57 }
 0x378   :  { %v1973_v53 = vperm.slane %v1965_v59, %v7692_v20  ;;  %v1888_v8 = vrot.slane %v1845_v41, 4  ;;  %v1911_v55 = vsel %vm374_vm2, %v1910_v52, %v1869_v19  ;;  %v2027_v60 = vsel %vm374_vm2, %v2026_v42, %v1985_v22 }
 0x379   :  { %v1986_v46 = vrot.slane %v1949_v18, 4  ;;  %v2028_v16 = vrot.slane %v1985_v22, 4  ;;  %5089 = vmatpush.msrb.mxu1 %v1911_v55  ;;  %5146 = vmatpush.msrb.mxu0 %v2027_v60  ;;  %v1913_v32 = vsel %vm374_vm2, %v1893_v4, %v1912_v38  ;;  %v10610_v24 = vadd.f32 %v9692_v30, %v10493_v58 }
 0x37a   :  { %v2010_v31 = vrot.slane %v1973_v53, 4  ;;  %v1889_v63 = vsel %vm374_vm2, %v1857_v13, %v1888_v8  ;;  %5118 = vmatpush.msrb.mxu3 %v1913_v32  ;;  %v12098_v27 = vrot.slane %v10524_v10, 4  ;;  %v12101_v52 = vrot.slane %v10552_v14, 4  ;;  %v10639_v8 = vpop.xlane.xlu2 %4717 }
 0x37b   :  { %v1987_v41 = vsel %vm374_vm2, %v1986_v46, %v1937_v39  ;;  %v1897_v17 = vperm.slane %v1889_v63, %v7742_v57  ;;  %v2029_v45 = vsel %vm374_vm2, %v2009_v0, %v2028_v16  ;;  %v4809_v58 = vsel %vm4715_vm4, %v10610_v24, -inf }
 0x37c   :  { %v1817_v22 = vsel %vm374_vm2, %v10539_v29, %v12098_v27  ;;  %v1993_v19 = vperm.slane %v1987_v41, %v7742_v57  ;;  %v2011_v13 = vsel %vm374_vm2, %v2010_v31, %v1961_v25  ;;  %5175 = vmatpush.msrb.mxu2 %v2029_v45  ;;  %4810 = vmax.xlane.f32.xlu1 %v4809_v58  ;;  %v12099_v0 = vrot.slane %v10530_v23, 4 }
 0x37d   :  { %v1825_v4 = vperm.slane %v1817_v22, %v7692_v20  ;;  %v2017_v2 = vperm.slane %v2011_v13, %v7742_v57  ;;  %v1914_v54 = vrot.slane %v1897_v17, 4  ;;  %v12100_v29 = vrot.slane %v10545_v43, 4  ;;  %v4568_v27 = vpop.f32.mrf.mxu1 }
 0x37e   :  { %v1829_v10 = vsel %vm374_vm2, %v10251_v61, %v12099_v0  ;;  %v1853_v42 = vsel %vm374_vm2, %v10175_v28, %v12101_v52  ;;  %v2032_v38 = vrot.slane %v1993_v19, 4  ;;  %v1988_v55 = vrot.slane %v1937_v39, 4  ;;  %v12103_v0 = vld [vmem:[#allocation23_spill] sm:$0xff] }
 0x37f   :  { %v1841_v36 = vsel %vm374_vm2, %v10266_v37, %v12100_v29  ;;  %v1837_v59 = vperm.slane %v1829_v10, %v7692_v20  ;;  %v2030_v23 = vrot.slane %v2017_v2, 4  ;;  %v1915_v61 = vsel %vm374_vm2, %v1914_v54, %v1873_v7  ;;  %v12102_v54 = vld [vmem:[#allocation29_spill] sm:$0xff] }
 0x380   :  { %v1849_v44 = vperm.slane %v1841_v36, %v7692_v20  ;;  %v1861_v43 = vperm.slane %v1853_v42, %v7692_v20  ;;  %5147 = vmatpush.msrb.mxu0 %v1915_v61  ;;  %v2033_v60 = vsel %vm374_vm2, %v2017_v2, %v2032_v38  ;;  %v2012_v46 = vrot.slane %v1961_v25, 4  ;;  %v4724_v61 = vpop.xlane.xlu0 %4723 }
 0x381   :  { %v1874_v37 = vrot.slane %v1837_v59, 4  ;;  %v1916_v16 = vrot.slane %v1873_v7, 4  ;;  %v2031_v14 = vsel %vm374_vm2, %v2030_v23, %v1993_v19  ;;  %5233 = vmatpush.msra.mxu3 %v2033_v60  ;;  %v1989_v28 = vsel %vm374_vm2, %v1949_v18, %v1988_v55 }
 0x382   :  { %v1898_v31 = vrot.slane %v1861_v43, 4  ;;  %v1876_v32 = vrot.slane %v1825_v4, 4  ;;  %5204 = vmatpush.msra.mxu1 %v2031_v14  ;;  %v1997_v41 = vperm.slane %v1989_v28, %v7742_v57  ;;  %v2013_v39 = vsel %vm374_vm2, %v1973_v53, %v2012_v46  ;;  %v4721_v42 = vpop.xlane.xlu2 %4720 }
 0x383   :  { %v1875_v63 = vsel %vm374_vm2, %v1874_v37, %v1825_v4  ;;  %v1917_v45 = vsel %vm374_vm2, %v1897_v17, %v1916_v16  ;;  %v2021_v22 = vperm.slane %v2013_v39, %v7742_v57  ;;  %v1900_v58 = vrot.slane %v1849_v44, 4 }
 0x384   :  { %v1881_v25 = vperm.slane %v1875_v63, %v7742_v57  ;;  %v1899_v7 = vsel %vm374_vm2, %v1898_v31, %v1849_v44  ;;  %5176 = vmatpush.msrb.mxu2 %v1917_v45  ;;  %v1877_v18 = vsel %vm374_vm2, %v1837_v59, %v1876_v32  ;;  %v2036_v4 = vrot.slane %v1997_v41, 4  ;;  %v12105_v63 = vld [vmem:[#allocation58_spill] sm:$0xff] }
 0x385   :  { %v1905_v19 = vperm.slane %v1899_v7, %v7742_v57  ;;  %v1885_v13 = vperm.slane %v1877_v18, %v7742_v57  ;;  %v2034_v2 = vrot.slane %v2021_v22, 4  ;;  %v10658_v17 = vadd.f32 %v9536_v15, %v12102_v54  ;;  %v4571_v39 = vpop.f32.mrf.mxu1  ;;  %v12106_v7 = vld [vmem:[#allocation54_spill] sm:$0xff]  ;;  %v4754_v18 = vpop.xlane.xlu1 %4753 }
 0x386   :  { %v1920_v53 = vrot.slane %v1881_v25, 4  ;;  %v4764_v10 = vsel %vm4715_vm4, %v12103_v0, -inf  ;;  %v1901_v36 = vsel %vm374_vm2, %v1861_v43, %v1900_v58  ;;  %v2037_v59 = vsel %vm374_vm2, %v2021_v22, %v2036_v4  ;;  %v12107_v58 = vld [vmem:[#allocation39_spill] sm:$0xff] }
 0x387   :  { %v1918_v29 = vrot.slane %v1905_v19, 4  ;;  %v1924_v52 = vrot.slane %v1885_v13, 4  ;;  %4765 = vmax.xlane.f32.xlu2 %v4764_v10  ;;  %v2035_v44 = vsel %vm374_vm2, %v2034_v2, %v1997_v41  ;;  %v1909_v23 = vperm.slane %v1901_v36, %v7742_v57  ;;  %5291 = vmatpush.msra.mxu2 %v2037_v59 }
 0x388   :  { %v1921_v38 = vsel %vm374_vm2, %v1905_v19, %v1920_v53  ;;  %v4432_v55 = vadd.f32 %v10602_v12, %v10204_v21  ;;  %v4569_v37 = vadd.f32 %v4568_v27, %v10374_v34  ;;  %5262 = vmatpush.msra.mxu0 %v2035_v44  ;;  %v4770_v60 = vsel %vm4715_vm4, %v10658_v17, -inf  ;;  %v4606_v34 = vpop.f32.mrf.mxu3  ;;  %v12104_v12 = vld [vmem:[#allocation52_spill] sm:$0xff]  ;;  %v4727_v53 = vpop.xlane.xlu0 %4726 }
 0x389   :  { %v1919_v43 = vsel %vm374_vm2, %v1918_v29, %v1881_v25  ;;  %5234 = vmatpush.msra.mxu3 %v1921_v38  ;;  %v10675_v46 = vadd.f32 %v9536_v15, %v10506_v5  ;;  %v1922_v16 = vrot.slane %v1909_v23, 4  ;;  %4771 = vmax.xlane.f32.xlu0 %v4770_v60  ;;  %v1925_v14 = vsel %vm374_vm2, %v1909_v23, %v1924_v52  ;;  %v12108_v52 = vld [vmem:[#allocation34_spill] sm:$0xff]  ;;  %v12109_v23 = vld [vmem:[#allocation53_spill] sm:$0xff] }
 0x38a   :  { %5205 = vmatpush.msra.mxu1 %v1919_v43  ;;  %v4773_v21 = vsel %vm4715_vm4, %v10490_v26, -inf  ;;  %5292 = vmatpush.msra.mxu2 %v1925_v14  ;;  %v4814_v31 = vsub.f32 %v12104_v12, %v4724_v61  ;;  %v10683_v32 = vadd.f32 %v9692_v30, %v4432_v55  ;;  %v10686_v5 = vadd.f32 %v9536_v15, %v4569_v37 }
 0x38b   :  { %4774 = vmax.xlane.f32.xlu1 %v4773_v21  ;;  %v1923_v28 = vsel %vm374_vm2, %v1922_v16, %v1885_v13  ;;  %v4813_v41 = vsub.f32 %v12105_v63, %v4721_v42  ;;  %v4607_v45 = vadd.f32 %v4606_v34, %v10486_v51  ;;  %v4794_v27 = vsel %vm4715_vm4, %v10675_v46, -inf  ;;  %v4760_v13 = vpop.xlane.xlu2 %4759  ;;  %v12110_v21 = vld [vmem:[#allocation22_spill] sm:$0xff] }
 0x38c   :  { %5263 = vmatpush.msra.mxu0 %v1923_v28  ;;  %v4848_v25 = vmul.f32 1.442695, %v4814_v31  ;;  %v4812_v22 = vsub.f32 %v12106_v7, %v10639_v8  ;;  %v4826_v15 = vsub.f32 %v12107_v58, %v4760_v13  ;;  %v4572_v4 = vadd.f32 %v4571_v39, %v10498_v40  ;;  %v12111_v28 = vld [vmem:[#allocation56_spill] sm:$0xff] }
 0x38d   :  { %v4846_v19 = vmul.f32 1.442695, %v4813_v41  ;;  %v4767_v2 = vsel %vm4715_vm4, %v10683_v32, -inf  ;;  %v10699_v51 = vadd.f32 %v9692_v30, %v4607_v45  ;;  %v4788_v54 = vsel %vm4715_vm4, %v10686_v5, -inf  ;;  %v4736_v36 = vpop.xlane.xlu1 %4735 }
 0x38e   :  { %7004 = vpow2.f32 %v4848_v25  ;;  %v4844_v8 = vmul.f32 1.442695, %v4812_v22  ;;  %v4872_v10 = vmul.f32 1.442695, %v4826_v15  ;;  %v10704_v29 = vadd.f32 %v9692_v30, %v4572_v4  ;;  %v12112_v15 = vld [vmem:[#allocation26_spill] sm:$0xff] }
 0x38f   :  { %4795 = vmax.xlane.f32.xlu2 %v4794_v27  ;;  %7006 = vpow2.f32 %v4846_v19  ;;  %v4797_v40 = vsel %vm4715_vm4, %v10699_v51, -inf  ;;  %v4824_v42 = vsub.f32 %v12108_v52, %v4754_v18  ;;  %v4815_v61 = vsub.f32 %v12109_v23, %v4727_v53  ;;  %v12113_v52 = vld [vmem:[#allocation27_spill] sm:$0xff] }
 0x390   :  { %7008 = vpow2.f32 %v4844_v8  ;;  %v4791_v38 = vsel %vm4715_vm4, %v10704_v29, -inf  ;;  %v4763_v55 = vpop.xlane.xlu0 %4762  ;;  %v4818_v63 = vsub.f32 %v12111_v28, %v4736_v36 }
 0x391   :  { %4768 = vmax.xlane.f32.xlu0 %v4767_v2  ;;  %7010 = vpow2.f32 %v4872_v10  ;;  %v4868_v43 = vmul.f32 1.442695, %v4824_v42  ;;  %v4850_v14 = vmul.f32 1.442695, %v4815_v61  ;;  %v4827_v34 = vsub.f32 %v12110_v21, %v4763_v55  ;;  %v12115_v61 = vld [vmem:[#allocation36_spill] sm:$0xff] }
 0x392   :  { %v4856_v45 = vmul.f32 1.442695, %v4818_v63 }
 0x393   :  { %4789 = vmax.xlane.f32.xlu1 %v4788_v54  ;;  %7012 = vpow2.f32 %v4868_v43  ;;  %v4874_v39 = vmul.f32 1.442695, %v4827_v34 }
 0x394   :  { %v10708_v59 = vpop.eup %7004  ;;  %7014 = vpow2.f32 %v4850_v14 }
 0x395   :  { %v10711_v44 = vpop.eup %7006  ;;  %v4914_v60 = vsel %vm4715_vm4, %v10708_v59, 0.0  ;;  %v10730_v41 = vpop.xlane.xlu1 %4783  ;;  %7016 = vpow2.f32 %v4874_v39 }
 0x396   :  { %v4911_v30 = vsel %vm4715_vm4, %v10711_v44, 0.0  ;;  %v10718_v37 = vpop.eup %7008  ;;  %7018 = vpow2.f32 %v4856_v45  ;;  %v12117_v45 = vld [vmem:[#allocation28_spill] sm:$0xff] }
 0x397   :  { %4798 = vmax.xlane.f32.xlu2 %v4797_v40  ;;  %v10722_v16 = vpop.eup %7010  ;;  %v4908_v12 = vsel %vm4715_vm4, %v10718_v37, 0.0  ;;  %v4757_v18 = vpop.xlane.xlu2 %4756 }
 0x398   :  { %v4950_v31 = vsel %vm4715_vm4, %v10722_v16, 0.0  ;;  %v4778_v7 = vpop.xlane.xlu0 %4777 }
 0x399   :  { %4792 = vmax.xlane.f32.xlu0 %v4791_v38  ;;  %v10732_v27 = vpop.eup %7012  ;;  %v4832_v4 = vsub.f32 %v12112_v15, %v4778_v7  ;;  %v12114_v38 = vld [vmem:[#allocation44_spill] sm:$0xff] }
 0x39a   :  { %v10734_v25 = vpop.eup %7014  ;;  %v4944_v22 = vsel %vm4715_vm4, %v10732_v27, 0.0 }
 0x39b   :  { %4912 = vadd.xlane.f32.xlu1 %v4911_v30  ;;  %v4917_v13 = vsel %vm4715_vm4, %v10734_v25, 0.0  ;;  %v10742_v58 = vpop.eup %7016  ;;  %v4884_v54 = vmul.f32 1.442695, %v4832_v4 }
 0x39c   :  { %v10745_v2 = vpop.eup %7018  ;;  %v4953_v53 = vsel %vm4715_vm4, %v10742_v58, 0.0 }
 0x39d   :  { %v10738_v19 = vpop.xlane.xlu1 %4780  ;;  %v4926_v10 = vsel %vm4715_vm4, %v10745_v2, 0.0  ;;  %7020 = vpow2.f32 %v4884_v54 }
 0x39f   :  { %4915 = vadd.xlane.f32.xlu2 %v4914_v60 }
 0x3a0   :  { %v4733_v8 = vpop.xlane.xlu0 %4732 }
 0x3a1   :  { %4909 = vadd.xlane.f32.xlu0 %v4908_v12  ;;  %v4817_v30 = vsub.f32 %v12115_v61, %v4733_v8  ;;  %v12118_v8 = vld [vmem:[#allocation18_spill] sm:$0xff]  ;;  %v12119_v61 = vld [vmem:[#allocation59_spill] sm:$0xff] }
 0x3a3   :  { %4951 = vadd.xlane.f32.xlu1 %v4950_v31  ;;  %v4854_v60 = vmul.f32 1.442695, %v4817_v30  ;;  %v10754_v14 = vpop.eup %7020  ;;  %v4834_v30 = vsub.f32 %v12119_v61, %v10730_v41 }
 0x3a4   :  { %12116 = vst [vmem:[#allocation48_spill] sm:$0xff] %v10754_v14  ;;  %v4968_v31 = vsel %vm4715_vm4, %v10754_v14, 0.0 }
 0x3a9   :  { %4945 = vadd.xlane.f32.xlu0 %v4944_v22 }
 0x3ab   :  { %4918 = vadd.xlane.f32.xlu1 %v4917_v13 }
 0x3ac   :  { %v4730_v40 = vpop.xlane.xlu2 %4729 }
 0x3ad   :  { %v4739_v36 = vpop.xlane.xlu1 %4738  ;;  %v4816_v42 = vsub.f32 %v12113_v52, %v4730_v40 }
 0x3ae   :  { %v4819_v23 = vsub.f32 %v12114_v38, %v4739_v36  ;;  %v4742_v63 = vpop.xlane.xlu0 %4741 }
 0x3af   :  { %v4852_v55 = vmul.f32 1.442695, %v4816_v42  ;;  %v4820_v7 = vsub.f32 %v12117_v45, %v4742_v63 }
 0x3b0   :  { %v4858_v43 = vmul.f32 1.442695, %v4819_v23 }
 0x3b1   :  { %4954 = vadd.xlane.f32.xlu0 %v4953_v53  ;;  %7022 = vpow2.f32 %v4852_v55  ;;  %v4860_v13 = vmul.f32 1.442695, %v4820_v7  ;;  %v4888_v55 = vmul.f32 1.442695, %v4834_v30  ;;  %v1545_v30 = vperm.slane %v10244_v49, %v7742_v57 }
 0x3b2   :  { %7024 = vpow2.f32 %v4858_v43 }
 0x3b3   :  { %4927 = vadd.xlane.f32.xlu1 %v4926_v10  ;;  %7026 = vpow2.f32 %v4854_v60  ;;  %v4825_v10 = vsub.f32 %v12118_v8, %v4757_v18 }
 0x3b4   :  { %7028 = vpow2.f32 %v4860_v13 }
 0x3b5   :  { %v4870_v42 = vmul.f32 1.442695, %v4825_v10 }
 0x3b7   :  { %v10756_v21 = vpop.eup %7022 }
 0x3b8   :  { %v10758_v34 = vpop.eup %7024  ;;  %v4920_v12 = vsel %vm4715_vm4, %v10756_v21, 0.0 }
 0x3b9   :  { %4921 = vadd.xlane.f32.xlu2 %v4920_v12  ;;  %v4929_v28 = vsel %vm4715_vm4, %v10758_v34, 0.0  ;;  %v10766_v39 = vpop.eup %7026 }
 0x3ba   :  { %4930 = vadd.xlane.f32.xlu0 %v4929_v28  ;;  %v4923_v22 = vsel %vm4715_vm4, %v10766_v39, 0.0  ;;  %v10774_v36 = vpop.eup %7028 }
 0x3bb   :  { %4969 = vadd.xlane.f32.xlu1 %v4968_v31 }
 0x3c1   :  { %4924 = vadd.xlane.f32.xlu2 %v4923_v22 }
 0x3c4   :  { %v4787_v54 = vpop.xlane.xlu2 %4786 }
 0x3c5   :  { %v4748_v15 = vpop.xlane.xlu1 %4747  ;;  %v4835_v40 = vsub.f32 %v10351_v3, %v4787_v54  ;;  %v4802_v7 = vpop.xlane.xlu0 %4801 }
 0x3c6   :  { %v4822_v4 = vsub.f32 %v10355_v9, %v4748_v15  ;;  %v4932_v9 = vsel %vm4715_vm4, %v10774_v36, 0.0 }
 0x3c7   :  { %v4890_v23 = vmul.f32 1.442695, %v4835_v40  ;;  %v4840_v40 = vsub.f32 %v10359_v6, %v4802_v7  ;;  %v12126_v7 = vld [vmem:[#allocation32_spill] sm:$0xff] }
 0x3c8   :  { %v4864_v53 = vmul.f32 1.442695, %v4822_v4  ;;  %v1574_v49 = vrot.slane %v12126_v7, 4  ;;  %v12133_v7 = vld [vmem:[#allocation20_spill] sm:$0xff] }
 0x3c9   :  { %4933 = vadd.xlane.f32.xlu2 %v4932_v9  ;;  %v4900_v9 = vmul.f32 1.442695, %v4840_v40 }
 0x3ca   :  { %7030 = vpow2.f32 %v4864_v53  ;;  %v12122_v53 = vld [vmem:[#allocation24_spill] sm:$0xff] }
 0x3cb   :  { %7032 = vpow2.f32 %v4870_v42  ;;  %v4833_v54 = vsub.f32 %v12122_v53, %v10738_v19  ;;  %v1549_v19 = vperm.slane %v10260_v35, %v7742_v57  ;;  %v12127_v35 = vld [vmem:[#allocation35_spill] sm:$0xff] }
 0x3cc   :  { %7034 = vpow2.f32 %v4890_v23 }
 0x3cd   :  { %v4886_v23 = vmul.f32 1.442695, %v4833_v54 }
 0x3d0   :  { %v10776_v52 = vpop.eup %7030 }
 0x3d1   :  { %v4938_v38 = vsel %vm4715_vm4, %v10776_v52, 0.0  ;;  %v10785_v12 = vpop.eup %7032 }
 0x3d2   :  { %4939 = vadd.xlane.f32.xlu0 %v4938_v38  ;;  %v10787_v31 = vpop.eup %7034  ;;  %v4947_v28 = vsel %vm4715_vm4, %v10785_v12, 0.0 }
 0x3d3   :  { %12120 = vst [vmem:[#allocation30_spill] sm:$0xff] %v10787_v31  ;;  %v4977_v41 = vsel %vm4715_vm4, %v10787_v31, 0.0 }
 0x3d4   :  { %v4805_v43 = vpop.xlane.xlu2 %4804  ;;  %4978 = vadd.xlane.f32.xlu2 %v4977_v41 }
 0x3d7   :  { %v4745_v3 = vpop.xlane.xlu1 %4744 }
 0x3d8   :  { %v4821_v18 = vsub.f32 %v10461_v48, %v4745_v3  ;;  %v12124_v3 = vld [vmem:[#allocation46_spill] sm:$0xff] }
 0x3d9   :  { %v1569_v6 = vperm.slane %v12124_v3, %v7742_v57 }
 0x3da   :  { %v4862_v60 = vmul.f32 1.442695, %v4821_v18  ;;  %4948 = vadd.xlane.f32.xlu0 %v4947_v28 }
 0x3dc   :  { %7036 = vpow2.f32 %v4862_v60 }
 0x3dd   :  { %7038 = vpow2.f32 %v4888_v55  ;;  %v12125_v55 = vld [vmem:[#allocation31_spill] sm:$0xff] }
 0x3de   :  { %v4808_v8 = vpop.xlane.xlu0 %4807  ;;  %v1573_v60 = vperm.slane %v12125_v55, %v7742_v57 }
 0x3e0   :  { %v1586_v54 = vrot.slane %v1573_v60, 4 }
 0x3e2   :  { %v10793_v63 = vpop.eup %7036 }
 0x3e3   :  { %v4935_v48 = vsel %vm4715_vm4, %v10793_v63, 0.0  ;;  %v10797_v45 = vpop.eup %7038 }
 0x3e4   :  { %12121 = vst [vmem:[#allocation21_spill] sm:$0xff] %v10797_v45  ;;  %4936 = vadd.xlane.f32.xlu1 %v4935_v48  ;;  %v4974_v4 = vsel %vm4715_vm4, %v10797_v45, 0.0  ;;  %v1588_v48 = vrot.slane %v1549_v19, 4 }
 0x3e5   :  { %v4751_v22 = vpop.xlane.xlu2 %4750  ;;  %4975 = vadd.xlane.f32.xlu0 %v4974_v4  ;;  %v12128_v4 = vld [vmem:[#allocation19_spill] sm:$0xff] }
 0x3e6   :  { %v4823_v13 = vsub.f32 %v12096_v33, %v4751_v22  ;;  %v4842_v33 = vsub.f32 %v10516_v56, %v4808_v8  ;;  %v4841_v56 = vsub.f32 %v10403_v50, %v4805_v43  ;;  %v2050_v53 = vrot.slane %v12128_v4, 4  ;;  %v12129_v8 = vld [vmem:[#allocation42_spill] sm:$0xff] }
 0x3e8   :  { %v4866_v15 = vmul.f32 1.442695, %v4823_v13  ;;  %v4904_v18 = vmul.f32 1.442695, %v4842_v33  ;;  %v1578_v13 = vrot.slane %v12127_v35, 4  ;;  %v1806_v33 = vrot.slane %v10412_v62, 4 }
 0x3e9   :  { %v12134_v62 = vld [vmem:[#allocation47_spill] sm:$0xff] }
 0x3ea   :  { %7040 = vpow2.f32 %v4866_v15  ;;  %v1582_v15 = vrot.slane %v1569_v6, 4 }
 0x3eb   :  { %7042 = vpow2.f32 %v4886_v23 }
 0x3ec   :  { %7044 = vpow2.f32 %v4900_v9 }
 0x3ed   :  { %7046 = vpow2.f32 %v4904_v18 }
 0x3ef   :  { %v4811_v42 = vpop.xlane.xlu1 %4810 }
 0x3f0   :  { %v10804_v10 = vpop.eup %7040  ;;  %v4843_v61 = vsub.f32 %v10610_v24, %v4811_v42  ;;  %v1584_v24 = vrot.slane %v1545_v30, 4  ;;  %v4902_v42 = vmul.f32 1.442695, %v4841_v56  ;;  %v12132_v56 = vld [vmem:[#allocation43_spill] sm:$0xff] }
 0x3f1   :  { %12123 = vst [vmem:[#allocation45_spill] sm:$0xff] %v10804_v10  ;;  %v4941_v38 = vsel %vm4715_vm4, %v10804_v10, 0.0  ;;  %v10828_v9 = vpop.eup %7042 }
 0x3f2   :  { %4942 = vadd.xlane.f32.xlu1 %v4941_v38  ;;  %v4906_v28 = vmul.f32 1.442695, %v4843_v61  ;;  %12130 = vst [vmem:[#allocation50_spill] sm:$0xff] %v10828_v9  ;;  %v2162_v61 = vrot.slane %v10421_v11, 4  ;;  %v10833_v55 = vpop.eup %7044  ;;  %v10841_v38 = vsel %vm374_vm2, %v1569_v6, %v1584_v24  ;;  %v12138_v6 = vld [vmem:[#allocation25_spill] sm:$0xff] }
 0x3f3   :  { %12131 = vst [vmem:[#allocation60_spill] sm:$0xff] %v10833_v55  ;;  %v1579_v24 = vsel %vm374_vm2, %v1578_v13, %v12138_v6  ;;  %v10875_v13 = vsel %vm374_vm2, %v1586_v54, %v1549_v19 }
 0x3f4   :  { %7048 = vpow2.f32 %v4906_v28  ;;  %v2062_v6 = vrot.slane %v10875_v13, 4 }
 0x3fa   :  { %v4766_v41 = vpop.xlane.xlu2 %4765 }
 0x3fb   :  { %v4828_v22 = vsub.f32 %v12103_v0, %v4766_v41  ;;  %v2150_v41 = vrot.slane %v12132_v56, 4 }
 0x3fc   :  { %v4772_v50 = vpop.xlane.xlu0 %4771 }
 0x3fd   :  { %v4876_v43 = vmul.f32 1.442695, %v4828_v22  ;;  %v4830_v23 = vsub.f32 %v10658_v17, %v4772_v50  ;;  %v12135_v50 = vld [vmem:[#allocation37_spill] sm:$0xff]  ;;  %v10848_v22 = vsel %vm4715_vm4, %v10828_v9, 0.0 }
 0x3fe   :  { %v4775_v0 = vpop.xlane.xlu1 %4774  ;;  %v1575_v40 = vsel %vm374_vm2, %v1574_v49, %v12135_v50  ;;  %v10853_v49 = vsel %vm4715_vm4, %v10833_v55, 0.0  ;;  %v2038_v50 = vrot.slane %v1579_v24, 4 }
 0x3ff   :  { %7050 = vpow2.f32 %v4876_v43  ;;  %v4831_v18 = vsub.f32 %v10490_v26, %v4775_v0  ;;  %v4880_v35 = vmul.f32 1.442695, %v4830_v23  ;;  %v10843_v43 = vpop.eup %7046  ;;  %v12137_v26 = vld [vmem:[#allocation33_spill] sm:$0xff]  ;;  %v2040_v28 = vrot.slane %v1575_v40, 4 }
 0x400   :  { %7052 = vpow2.f32 %v4902_v42  ;;  %12136 = vst [vmem:[#allocation51_spill] sm:$0xff] %v10843_v43  ;;  %v2174_v0 = vrot.slane %v12137_v26, 4  ;;  %v10857_v23 = vpop.eup %7048  ;;  %v10872_v9 = vsel %vm4715_vm4, %v10843_v43, 0.0  ;;  %v12144_v43 = vld [vmem:[#allocation49_spill] sm:$0xff] }
 0x401   :  { %v4882_v17 = vmul.f32 1.442695, %v4831_v18  ;;  %7054 = vpow2.f32 %v4880_v35  ;;  %12139 = vst [vmem:[#allocation57_spill] sm:$0xff] %v10857_v23  ;;  %v10860_v18 = vsel %vm374_vm2, %v1582_v15, %v1545_v30  ;;  %v10863_v35 = vsel %vm374_vm2, %v1573_v60, %v1588_v48 }
 0x402   :  { %v4796_v3 = vpop.xlane.xlu2 %4795  ;;  %v2074_v30 = vrot.slane %v10863_v35, 4  ;;  %v10888_v19 = vsel %vm4715_vm4, %v10857_v23, 0.0  ;;  %v12143_v23 = vld [vmem:[#allocation40_spill] sm:$0xff] }
 0x403   :  { %7056 = vpow2.f32 %v4882_v17  ;;  %v4838_v42 = vsub.f32 %v10675_v46, %v4796_v3  ;;  %v10866_v17 = vsel %vm374_vm2, %v1579_v24, %v2040_v28  ;;  %v2039_v28 = vsel %vm374_vm2, %v2038_v50, %v1575_v40 }
 0x404   :  { %v4769_v3 = vpop.xlane.xlu0 %4768  ;;  %v2051_v40 = vsel %vm374_vm2, %v2050_v53, %v12129_v8  ;;  %v2063_v50 = vsel %vm374_vm2, %v2062_v6, %v10860_v18 }
 0x405   :  { %v10868_v46 = vpop.eup %7050  ;;  %v4896_v55 = vmul.f32 1.442695, %v4838_v42  ;;  %v4829_v60 = vsub.f32 %v10683_v32, %v4769_v3  ;;  %v2075_v32 = vsel %vm374_vm2, %v2074_v30, %v10841_v38  ;;  %v10905_v30 = vsel %vm374_vm2, %v1806_v33, %v12143_v23 }
 0x406   :  { %12140 = vst [vmem:[#allocation55_spill] sm:$0xff] %v10868_v46  ;;  %v4790_v48 = vpop.xlane.xlu1 %4789  ;;  %v4956_v15 = vsel %vm4715_vm4, %v10868_v46, 0.0  ;;  %v10883_v42 = vpop.eup %7052 }
 0x407   :  { %7058 = vpow2.f32 %v4896_v55  ;;  %v4836_v24 = vsub.f32 %v10686_v5, %v4790_v48  ;;  %4957 = vadd.xlane.f32.xlu2 %v4956_v15  ;;  %v10892_v54 = vpop.eup %7054  ;;  %v4878_v3 = vmul.f32 1.442695, %v4829_v60  ;;  %v2045_v60 = vperm.slane %v2039_v28, %v7692_v20 }
 0x408   :  { %12141 = vst [vmem:[#allocation38_spill] sm:$0xff] %v10892_v54  ;;  %v4962_v15 = vsel %vm4715_vm4, %v10892_v54, 0.0  ;;  %v12145_v55 = vrot.slane %v10416_v1, 4  ;;  %v2163_v54 = vsel %vm374_vm2, %v2162_v61, %v10436_v47  ;;  %v2057_v28 = vperm.slane %v2051_v40, %v7692_v20 }
 0x409   :  { %v10899_v5 = vpop.eup %7056  ;;  %v4892_v48 = vmul.f32 1.442695, %v4836_v24  ;;  %7060 = vpow2.f32 %v4878_v3  ;;  %4963 = vadd.xlane.f32.xlu1 %v4962_v15  ;;  %v10923_v3 = vperm.slane %v2075_v32, %v7692_v20  ;;  %v10937_v40 = vperm.slane %v2063_v50, %v7692_v20 }
 0x40a   :  { %12142 = vst [vmem:[#allocation41_spill] sm:$0xff] %v10899_v5  ;;  %v4965_v53 = vsel %vm4715_vm4, %v10899_v5, 0.0  ;;  %v4799_v6 = vpop.xlane.xlu2 %4798  ;;  %v10914_v24 = vsel %vm374_vm2, %v12145_v55, %v12144_v43  ;;  %v2169_v43 = vperm.slane %v2163_v54, %v7692_v20  ;;  %v2175_v55 = vsel %vm374_vm2, %v2174_v0, %v10905_v30 }
 0x40b   :  { %4966 = vadd.xlane.f32.xlu0 %v4965_v53  ;;  %v4839_v33 = vsub.f32 %v10699_v51, %v4799_v6  ;;  %v2151_v23 = vsel %vm374_vm2, %v2150_v41, %v10914_v24  ;;  %7062 = vpow2.f32 %v4892_v48  ;;  %v2181_v53 = vperm.slane %v2175_v55, %v7692_v20 }
 0x40c   :  { %v2157_v1 = vperm.slane %v2151_v23, %v7692_v20  ;;  %v4793_v15 = vpop.xlane.xlu0 %4792  ;;  %v12147_v41 = vrot.slane %v12133_v7, 4  ;;  %v2198_v6 = vrot.slane %v2169_v43, 4  ;;  %v2110_v55 = vrot.slane %v10923_v3, 4 }
 0x40d   :  { %v10929_v61 = vpop.eup %7058  ;;  %v4898_v51 = vmul.f32 1.442695, %v4839_v33  ;;  %v4837_v48 = vsub.f32 %v10704_v29, %v4793_v15  ;;  %v2086_v33 = vrot.slane %v2057_v28, 4  ;;  %v2088_v5 = vrot.slane %v2045_v60, 4 }
 0x40e   :  { %12146 = vst [vmem:[#allocation29_spill] sm:$0xff] %v10929_v61  ;;  %v2187_v32 = vsel %vm374_vm2, %v12147_v41, %v12134_v62  ;;  %v4986_v54 = vsel %vm4715_vm4, %v10929_v61, 0.0  ;;  %v4913_v23 = vpop.xlane.xlu1 %4912  ;;  %v2199_v50 = vsel %vm374_vm2, %v2198_v6, %v2157_v1  ;;  %v2224_v10 = vrot.slane %v2181_v53, 4 }
 0x40f   :  { %v2193_v0 = vperm.slane %v2187_v32, %v7692_v20  ;;  %7064 = vpow2.f32 %v4898_v51  ;;  %4987 = vadd.xlane.f32.xlu2 %v4986_v54  ;;  %v10944_v46 = vpop.eup %7060  ;;  %v4894_v41 = vmul.f32 1.442695, %v4837_v48  ;;  %v2205_v15 = vperm.slane %v2199_v50, %v7742_v57 }
 0x410   :  { %12148 = vst [vmem:[#allocation23_spill] sm:$0xff] %v10944_v46  ;;  %7066 = vrcp.f32 %v4913_v23  ;;  %v4959_v29 = vsel %vm4715_vm4, %v10944_v46, 0.0  ;;  %v2087_v32 = vsel %vm374_vm2, %v2086_v33, %v2045_v60  ;;  %v2111_v51 = vsel %vm374_vm2, %v2110_v55, %v10937_v40 }
 0x411   :  { %v2222_v31 = vrot.slane %v2193_v0, 4  ;;  %v10953_v54 = vpop.eup %7062  ;;  %7068 = vpow2.f32 %v4894_v41  ;;  %4960 = vadd.xlane.f32.xlu1 %v4959_v29  ;;  %v2152_v48 = vrot.slane %v10914_v24, 4  ;;  %v2093_v23 = vperm.slane %v2087_v32, %v7742_v57 }
 0x412   :  { %v4916_v61 = vpop.xlane.xlu2 %4915  ;;  %v2248_v60 = vrot.slane %v2205_v15, 4  ;;  %v2117_v33 = vperm.slane %v2111_v51, %v7742_v57  ;;  %v2200_v46 = vrot.slane %v2157_v1, 4  ;;  %v2089_v41 = vsel %vm374_vm2, %v2057_v28, %v2088_v5 }
 0x413   :  { %v2223_v6 = vsel %vm374_vm2, %v2222_v31, %v2181_v53  ;;  %4972 = vadd.xlane.f32.xlu0 %v10848_v22  ;;  %7070 = vrcp.f32 %v4916_v61  ;;  %v2136_v55 = vrot.slane %v2093_v23, 4  ;;  %v2097_v22 = vperm.slane %v2089_v41, %v7742_v57 }
 0x414   :  { %v2229_v50 = vperm.slane %v2223_v6, %v7742_v57  ;;  %v4910_v31 = vpop.xlane.xlu0 %4909  ;;  %v2134_v32 = vrot.slane %v2117_v33, 4  ;;  %v2064_v6 = vrot.slane %v10860_v18, 4  ;;  %v2201_v1 = vsel %vm374_vm2, %v2169_v43, %v2200_v46 }
 0x415   :  { %v10962_v29 = vpop.eup %7064  ;;  %v2137_v45 = vsel %vm374_vm2, %v2117_v33, %v2136_v55  ;;  %7072 = vrcp.f32 %v4910_v31  ;;  %v4980_v5 = vsel %vm4715_vm4, %v10953_v54, 0.0  ;;  %v2176_v28 = vrot.slane %v10905_v30, 4 }
 0x416   :  { %v2249_v24 = vsel %vm374_vm2, %v2229_v50, %v2248_v60  ;;  %v2246_v14 = vrot.slane %v2229_v50, 4  ;;  %v7067_v61 = vpop.eup %7066  ;;  %v10968_v51 = vpop.xlane.xlu1 %4951  ;;  %v2135_v50 = vsel %vm374_vm2, %v2134_v32, %v2093_v23  ;;  %v4989_v18 = vsel %vm4715_vm4, %v10962_v29, 0.0 }
 0x417   :  { %4993 = vadd.xlane.f32.xlu2 %v10853_v49  ;;  %v10977_v60 = vpop.eup %7068  ;;  %v2209_v33 = vperm.slane %v2201_v1, %v7742_v57  ;;  %v2225_v46 = vsel %vm374_vm2, %v2193_v0, %v2224_v10  ;;  %v2112_v49 = vrot.slane %v10937_v40, 4  ;;  %v2140_v41 = vrot.slane %v2097_v22, 4 }
 0x418   :  { %v2247_v53 = vsel %vm374_vm2, %v2246_v14, %v2205_v15  ;;  %v2233_v55 = vperm.slane %v2225_v46, %v7742_v57  ;;  %v2153_v14 = vsel %vm374_vm2, %v12132_v56, %v2152_v48  ;;  %v12149_v30 = vrot.slane %v10436_v47, 4 }
 0x419   :  { %v7071_v43 = vpop.eup %7070  ;;  %4999 = vadd.xlane.f32.xlu1 %v10872_v9  ;;  %v10994_v10 = vmul.f32 %v7067_v61, %v10711_v44  ;;  %v2252_v40 = vrot.slane %v2209_v33, 4  ;;  %v2113_v0 = vsel %vm374_vm2, %v10923_v3, %v2112_v49  ;;  %v2161_v44 = vperm.slane %v2153_v14, %v7692_v20 }
 0x41a   :  { %v2165_v15 = vsel %vm374_vm2, %v10421_v11, %v12149_v30  ;;  %v5038_v23 = vmul.f32 %v7071_v43, %v10708_v59  ;;  %v2250_v31 = vrot.slane %v2233_v55, 4  ;;  %v2121_v56 = vperm.slane %v2113_v0, %v7742_v57 }
 0x41b   :  { %4981 = vadd.xlane.f32.xlu0 %v4980_v5  ;;  %v2173_v47 = vperm.slane %v2165_v15, %v7692_v20  ;;  %v2177_v11 = vsel %vm374_vm2, %v12137_v26, %v2176_v28  ;;  %v7073_v48 = vpop.eup %7072  ;;  %v11004_v59 = vsel %vm374_vm2, %v2233_v55, %v2252_v40  ;;  %v12150_v3 = vrot.slane %v12134_v62, 4 }
 0x41c   :  { %6759 = vmatmul.msk.f32.vlgmr.msrb.gmra.mxu3 %vm4715_vm4, %v5038_v23  ;;  %v2185_v9 = vperm.slane %v2177_v11, %v7692_v20  ;;  %v5036_v61 = vmul.f32 %v7073_v48, %v10718_v37  ;;  %v11014_v26 = vsel %vm374_vm2, %v2250_v31, %v2209_v33  ;;  %v2138_v1 = vrot.slane %v2121_v56, 4 }
 0x41d   :  { %v2189_v32 = vsel %vm374_vm2, %v12133_v7, %v12150_v3  ;;  %5349 = vmatpush.msrb.mxu3 %v2249_v24  ;;  %v11017_v5 = vsel %vm374_vm2, %v2121_v56, %v2140_v41  ;;  %v4983_v28 = vsel %vm4715_vm4, %v10977_v60, 0.0  ;;  %v2210_v62 = vrot.slane %v2173_v47, 4 }
 0x41e   :  { %v4919_v46 = vpop.xlane.xlu1 %4918  ;;  %v2197_v49 = vperm.slane %v2189_v32, %v7692_v20  ;;  %v2049_v7 = vperm.slane %v10866_v17, %v7692_v20  ;;  %v11025_v37 = vsel %vm374_vm2, %v2138_v1, %v2097_v22  ;;  %v12151_v24 = vrot.slane %v12129_v8, 4  ;;  %6757 = vmatmul.msk.f32.vlgmr.msrb.gmra.mxu1 %vm4715_vm4, %v5036_v61 }
 0x41f   :  { %4984 = vadd.xlane.f32.xlu2 %v4983_v28  ;;  %5350 = vmatpush.msrb.mxu3 %v2137_v45  ;;  %7074 = vrcp.f32 %v4919_v46  ;;  %v2065_v43 = vsel %vm374_vm2, %v10875_v13, %v2064_v6  ;;  %v2211_v55 = vsel %vm374_vm2, %v2210_v62, %v2161_v44  ;;  %v12152_v8 = vrot.slane %v10841_v38, 4 }
 0x420   :  { %v2053_v33 = vsel %vm374_vm2, %v12128_v4, %v12151_v24  ;;  %v2234_v41 = vrot.slane %v2197_v49, 4  ;;  %v2073_v45 = vperm.slane %v2065_v43, %v7692_v20  ;;  %5320 = vmatpush.msrb.mxu1 %v2247_v53  ;;  %v2217_v22 = vperm.slane %v2211_v55, %v7742_v57 }
 0x421   :  { %v2061_v17 = vperm.slane %v2053_v33, %v7692_v20  ;;  %v2077_v4 = vsel %vm374_vm2, %v10863_v35, %v12152_v8  ;;  %v2212_v14 = vrot.slane %v2161_v44, 4  ;;  %v2236_v30 = vrot.slane %v2185_v9, 4  ;;  %4990 = vadd.xlane.f32.xlu1 %v4989_v18  ;;  %v4946_v35 = vpop.xlane.xlu0 %4945 }
 0x422   :  { %v2235_v13 = vsel %vm374_vm2, %v2234_v41, %v2185_v9  ;;  %v2085_v6 = vperm.slane %v2077_v4, %v7692_v20  ;;  %v2100_v23 = vrot.slane %v2049_v7, 4  ;;  %5321 = vmatpush.msrb.mxu1 %v2135_v50  ;;  %v2256_v40 = vrot.slane %v2217_v22, 4 }
 0x423   :  { %v2098_v15 = vrot.slane %v2061_v17, 4  ;;  %5002 = vadd.xlane.f32.xlu0 %v10888_v19  ;;  %v2241_v53 = vperm.slane %v2235_v13, %v7742_v57  ;;  %v2213_v38 = vsel %vm374_vm2, %v2173_v47, %v2212_v14  ;;  %v2237_v0 = vsel %vm374_vm2, %v2197_v49, %v2236_v30 }
 0x424   :  { %v2122_v18 = vrot.slane %v2085_v6, 4  ;;  %v2221_v56 = vperm.slane %v2213_v38, %v7742_v57  ;;  %v2245_v11 = vperm.slane %v2237_v0, %v7742_v57  ;;  %v2124_v62 = vrot.slane %v2073_v45, 4 }
 0x425   :  { %v2099_v31 = vsel %vm374_vm2, %v2098_v15, %v2049_v7  ;;  %v7075_v48 = vpop.eup %7074  ;;  %v11052_v44 = vsel %vm374_vm2, %v2241_v53, %v2256_v40  ;;  %v2254_v50 = vrot.slane %v2241_v53, 4  ;;  %v4995_v7 = vsel %vm4715_vm4, %v10883_v42, 0.0 }
 0x426   :  { %v2105_v19 = vperm.slane %v2099_v31, %v7742_v57  ;;  %v4928_v9 = vpop.xlane.xlu1 %4927  ;;  %v5039_v47 = vmul.f32 %v7075_v48, %v10734_v25  ;;  %v2123_v3 = vsel %vm374_vm2, %v2122_v18, %v2073_v45  ;;  %v2260_v32 = vrot.slane %v2221_v56, 4  ;;  %6758 = vmatmul.msk.f32.gmra.mxu1 %vm4715_vm4, %v10994_v10 }
 0x427   :  { %7076 = vrcp.f32 %v4928_v9  ;;  %v2129_v61 = vperm.slane %v2123_v3, %v7742_v57  ;;  %v11059_v28 = vsel %vm374_vm2, %v2254_v50, %v2217_v22  ;;  %v2258_v49 = vrot.slane %v2245_v11, 4 }
 0x428   :  { %v2144_v1 = vrot.slane %v2105_v19, 4  ;;  %6760 = vmatmul.msk.f32.gmra.mxu3 %vm4715_vm4, %v5039_v47  ;;  %v2261_v46 = vsel %vm374_vm2, %v2245_v11, %v2260_v32  ;;  %v2101_v25 = vsel %vm374_vm2, %v2061_v17, %v2100_v23  ;;  %v2125_v10 = vsel %vm374_vm2, %v2085_v6, %v2124_v62 }
 0x429   :  { %v2142_v33 = vrot.slane %v2129_v61, 4  ;;  %v2109_v43 = vperm.slane %v2101_v25, %v7742_v57  ;;  %4996 = vadd.xlane.f32.xlu1 %v4995_v7  ;;  %v2259_v55 = vsel %vm374_vm2, %v2258_v49, %v2221_v56  ;;  %v2133_v22 = vperm.slane %v2125_v10, %v7742_v57  ;;  %v4955_v17 = vpop.xlane.xlu0 %4954  ;;  %v12156_v25 = vld [vmem:[#allocation30_spill] sm:$0xff] }
 0x42a   :  { %v2145_v24 = vsel %vm374_vm2, %v2129_v61, %v2144_v1  ;;  %v12153_v61 = vld [vmem:[#allocation21_spill] sm:$0xff] }
 0x42b   :  { %v2143_v41 = vsel %vm374_vm2, %v2142_v33, %v2105_v19  ;;  %v2148_v8 = vrot.slane %v2109_v43, 4  ;;  %v2146_v4 = vrot.slane %v2133_v22, 4 }
 0x42c   :  { %v4922_v15 = vpop.xlane.xlu2 %4921 }
 0x42d   :  { %v7077_v45 = vpop.eup %7076  ;;  %v2149_v14 = vsel %vm374_vm2, %v2133_v22, %v2148_v8  ;;  %v2147_v13 = vsel %vm374_vm2, %v2146_v4, %v2109_v43  ;;  %7078 = vrcp.f32 %v4922_v15  ;;  %v12158_v8 = vld [vmem:[#allocation38_spill] sm:$0xff] }
 0x42e   :  { %v5042_v30 = vmul.f32 %v7077_v45, %v10745_v2 }
 0x430   :  { %6763 = vmatmul.msk.f32.vlgmr.msrb.gmra.mxu2 %vm4715_vm4, %v5042_v30 }
 0x431   :  { %5407 = vmatpush.msrb.mxu2 %v11004_v59  ;;  %v4931_v6 = vpop.xlane.xlu0 %4930 }
 0x432   :  { %7080 = vrcp.f32 %v4931_v6 }
 0x433   :  { %5408 = vmatpush.msrb.mxu2 %v11017_v5  ;;  %v7079_v23 = vpop.eup %7078  ;;  %7082 = vrcp.f32 %v10968_v51 }
 0x434   :  { %v5040_v40 = vmul.f32 %v7079_v23, %v10756_v21  ;;  %v4925_v38 = vpop.xlane.xlu2 %4924  ;;  %v12159_v23 = vld [vmem:[#allocation23_spill] sm:$0xff] }
 0x435   :  { %7084 = vrcp.f32 %v4925_v38 }
 0x436   :  { %6761 = vmatmul.msk.f32.vlgmr.msrb.gmra.mxu0 %vm4715_vm4, %v5040_v40  ;;  %7086 = vrcp.f32 %v4946_v35  ;;  %v4970_v35 = vpop.xlane.xlu1 %4969  ;;  %v12160_v40 = vld [vmem:[#allocation41_spill] sm:$0xff] }
 0x437   :  { %5378 = vmatpush.msrb.mxu0 %v11014_v26 }
 0x438   :  { %v7081_v53 = vpop.eup %7080 }
 0x439   :  { %v5043_v2 = vmul.f32 %v7081_v53, %v10758_v34  ;;  %5379 = vmatpush.msrb.mxu0 %v11025_v37  ;;  %v7083_v59 = vpop.eup %7082 }
 0x43a   :  { %v5050_v51 = vmul.f32 %v7083_v59, %v10722_v16  ;;  %v12161_v59 = vld [vmem:[#allocation50_spill] sm:$0xff] }
 0x43b   :  { %6764 = vmatmul.msk.f32.gmra.mxu2 %vm4715_vm4, %v5043_v2  ;;  %v7085_v5 = vpop.eup %7084 }
 0x43c   :  { %v5041_v0 = vmul.f32 %v7085_v5, %v10766_v39  ;;  %v7087_v21 = vpop.eup %7086  ;;  %v4934_v26 = vpop.xlane.xlu2 %4933 }
 0x43d   :  { %v5048_v31 = vmul.f32 %v7087_v21, %v10732_v27 }
 0x43e   :  { %6762 = vmatmul.msk.f32.gmra.mxu0 %vm4715_vm4, %v5041_v0 }
 0x443   :  { %6771 = vmatmul.msk.f32.vlgmr.msra.gmra.mxu2 %vm4715_vm4, %v5050_v51 }
 0x444   :  { %5523 = vmatpush.msra.mxu2 %v2261_v46 }
 0x445   :  { %v4940_v34 = vpop.xlane.xlu0 %4939 }
 0x446   :  { %5524 = vmatpush.msra.mxu2 %v2149_v14  ;;  %7088 = vrcp.f32 %v4940_v34  ;;  %6769 = vmatmul.msk.f32.vlgmr.msra.gmra.mxu0 %vm4715_vm4, %v5048_v31  ;;  %v12162_v31 = vld [vmem:[#allocation29_spill] sm:$0xff] }
 0x447   :  { %7090 = vrcp.f32 %v4934_v26  ;;  %5494 = vmatpush.msra.mxu0 %v2259_v55  ;;  %v4979_v32 = vpop.xlane.xlu2 %4978  ;;  %v12157_v55 = vld [vmem:[#allocation55_spill] sm:$0xff] }
 0x448   :  { %7092 = vrcp.f32 %v4955_v17 }
 0x449   :  { %5495 = vmatpush.msra.mxu0 %v2147_v13 }
 0x44c   :  { %v7089_v37 = vpop.eup %7088 }
 0x44d   :  { %v7091_v39 = vpop.eup %7090  ;;  %v5046_v16 = vmul.f32 %v7089_v37, %v10776_v52  ;;  %v4949_v27 = vpop.xlane.xlu0 %4948 }
 0x44e   :  { %v5044_v18 = vmul.f32 %v7091_v39, %v10774_v36  ;;  %7094 = vrcp.f32 %v4949_v27  ;;  %v7093_v52 = vpop.eup %7092  ;;  %v12163_v39 = vld [vmem:[#allocation51_spill] sm:$0xff] }
 0x44f   :  { %6767 = vmatmul.msk.f32.vlgmr.msra.gmra.mxu3 %vm4715_vm4, %v5046_v16  ;;  %v5051_v19 = vmul.f32 %v7093_v52, %v10742_v58  ;;  %v12154_v58 = vld [vmem:[#allocation48_spill] sm:$0xff] }
 0x450   :  { %5465 = vmatpush.msra.mxu3 %v11052_v44  ;;  %6765 = vmatmul.msk.f32.vlgmr.msra.gmra.mxu1 %vm4715_vm4, %v5044_v18  ;;  %v12164_v18 = vld [vmem:[#allocation60_spill] sm:$0xff] }
 0x451   :  { %5436 = vmatpush.msra.mxu1 %v11059_v28  ;;  %6772 = vmatmul.msk.f32.gmra.mxu2 %vm4715_vm4, %v5051_v19 }
 0x452   :  { %5466 = vmatpush.msra.mxu3 %v2145_v24 }
 0x453   :  { %5437 = vmatpush.msra.mxu1 %v2143_v41 }
 0x454   :  { %v7095_v48 = vpop.eup %7094 }
 0x455   :  { %v5049_v50 = vmul.f32 %v7095_v48, %v10785_v12 }
 0x457   :  { %v4937_v56 = vpop.xlane.xlu1 %4936  ;;  %6770 = vmatmul.msk.f32.gmra.mxu0 %vm4715_vm4, %v5049_v50  ;;  %v12165_v50 = vld [vmem:[#allocation57_spill] sm:$0xff] }
 0x458   :  { %7096 = vrcp.f32 %v4937_v56  ;;  %v4976_v11 = vpop.xlane.xlu0 %4975 }
 0x459   :  { %7098 = vrcp.f32 %v4976_v11 }
 0x45a   :  { %7100 = vrcp.f32 %v4970_v35 }
 0x45e   :  { %v7097_v36 = vpop.eup %7096 }
 0x45f   :  { %v5045_v44 = vmul.f32 %v7097_v36, %v10793_v63  ;;  %v7099_v9 = vpop.eup %7098  ;;  %v12155_v63 = vld [vmem:[#allocation45_spill] sm:$0xff] }
 0x460   :  { %v7101_v3 = vpop.eup %7100  ;;  %v5058_v1 = vmul.f32 %v7099_v9, %v12153_v61 }
 0x461   :  { %6766 = vmatmul.msk.f32.gmra.mxu1 %vm4715_vm4, %v5045_v44  ;;  %v5056_v28 = vmul.f32 %v7101_v3, %v12154_v58 }
 0x462   :  { %6779 = vmatmul.msk.f32.vlgmr.msrb.gmra.mxu2 %vm4715_vm4, %v5058_v1 }
 0x463   :  { %6777 = vmatmul.msk.f32.vlgmr.msrb.gmra.mxu0 %vm4715_vm4, %v5056_v28 }
 0x465   :  { %v4943_v47 = vpop.xlane.xlu1 %4942 }
 0x466   :  { %7102 = vrcp.f32 %v4943_v47 }
 0x467   :  { %7104 = vrcp.f32 %v4979_v32 }
 0x46c   :  { %v7103_v46 = vpop.eup %7102 }
 0x46d   :  { %v5047_v49 = vmul.f32 %v7103_v46, %v12155_v63  ;;  %v7105_v12 = vpop.eup %7104 }
 0x46e   :  { %v5059_v62 = vmul.f32 %v7105_v12, %v12156_v25 }
 0x46f   :  { %6768 = vmatmul.msk.f32.gmra.mxu3 %vm4715_vm4, %v5047_v49 }
 0x470   :  { %6780 = vmatmul.msk.f32.gmra.mxu2 %vm4715_vm4, %v5059_v62 }
 0x47a   :  { %v4958_v7 = vpop.xlane.xlu2 %4957 }
 0x47b   :  { %7106 = vrcp.f32 %v4958_v7 }
 0x47c   :  { %v4964_v24 = vpop.xlane.xlu1 %4963 }
 0x47d   :  { %7108 = vrcp.f32 %v4964_v24 }
 0x47e   :  { %v4967_v33 = vpop.xlane.xlu0 %4966 }
 0x47f   :  { %7110 = vrcp.f32 %v4967_v33 }
 0x481   :  { %v7107_v43 = vpop.eup %7106 }
 0x482   :  { %v5052_v10 = vmul.f32 %v7107_v43, %v12157_v55  ;;  %v4988_v41 = vpop.xlane.xlu2 %4987 }
 0x483   :  { %v7109_v22 = vpop.eup %7108 }
 0x484   :  { %6773 = vmatmul.msk.f32.vlgmr.msrb.gmra.mxu1 %vm4715_vm4, %v5052_v10  ;;  %v5054_v17 = vmul.f32 %v7109_v22, %v12158_v8  ;;  %v4961_v45 = vpop.xlane.xlu1 %4960 }
 0x485   :  { %7112 = vrcp.f32 %v4961_v45  ;;  %v7111_v14 = vpop.eup %7110 }
 0x486   :  { %v4973_v4 = vpop.xlane.xlu0 %4972  ;;  %6775 = vmatmul.msk.f32.vlgmr.msrb.gmra.mxu3 %vm4715_vm4, %v5054_v17  ;;  %v5055_v38 = vmul.f32 %v7111_v14, %v12160_v40 }
 0x487   :  { %7114 = vrcp.f32 %v4973_v4 }
 0x488   :  { %7116 = vrcp.f32 %v4988_v41 }
 0x48a   :  { %v4994_v30 = vpop.xlane.xlu2 %4993 }
 0x48b   :  { %v7113_v13 = vpop.eup %7112  ;;  %7118 = vrcp.f32 %v4994_v30 }
 0x48c   :  { %v5000_v6 = vpop.xlane.xlu1 %4999  ;;  %v5053_v53 = vmul.f32 %v7113_v13, %v12159_v23 }
 0x48d   :  { %v7115_v15 = vpop.eup %7114  ;;  %7120 = vrcp.f32 %v5000_v6 }
 0x48e   :  { %v4982_v2 = vpop.xlane.xlu0 %4981  ;;  %v5057_v5 = vmul.f32 %v7115_v15, %v12161_v59  ;;  %6774 = vmatmul.msk.f32.gmra.mxu1 %vm4715_vm4, %v5053_v53  ;;  %6776 = vmatmul.msk.f32.gmra.mxu3 %vm4715_vm4, %v5055_v38  ;;  %v7117_v0 = vpop.eup %7116 }
 0x48f   :  { %7122 = vrcp.f32 %v4982_v2  ;;  %v5062_v37 = vmul.f32 %v7117_v0, %v12162_v31 }
 0x490   :  { %6778 = vmatmul.msk.f32.gmra.mxu0 %vm4715_vm4, %v5057_v5 }
 0x491   :  { %v7119_v21 = vpop.eup %7118 }
 0x492   :  { %v4985_v51 = vpop.xlane.xlu2 %4984  ;;  %v5064_v27 = vmul.f32 %v7119_v21, %v12164_v18 }
 0x493   :  { %v7121_v34 = vpop.eup %7120  ;;  %7124 = vrcp.f32 %v4985_v51 }
 0x494   :  { %v5066_v16 = vmul.f32 %v7121_v34, %v12163_v39  ;;  %v4991_v35 = vpop.xlane.xlu1 %4990 }
 0x495   :  { %v7123_v26 = vpop.eup %7122  ;;  %7126 = vrcp.f32 %v4991_v35 }
 0x496   :  { %v5060_v56 = vmul.f32 %v7123_v26, %v10953_v54  ;;  %v5003_v11 = vpop.xlane.xlu0 %5002  ;;  %6783 = vmatmul.msk.f32.vlgmr.msra.gmra.mxu3 %vm4715_vm4, %v5062_v37  ;;  %6787 = vmatmul.msk.f32.vlgmr.msra.gmra.mxu2 %vm4715_vm4, %v5066_v16 }
 0x497   :  { %7128 = vrcp.f32 %v5003_v11 }
 0x498   :  { %6781 = vmatmul.msk.f32.vlgmr.msra.gmra.mxu1 %vm4715_vm4, %v5060_v56  ;;  %6785 = vmatmul.msk.f32.vlgmr.msra.gmra.mxu0 %vm4715_vm4, %v5064_v27 }
 0x499   :  { %v7125_v52 = vpop.eup %7124 }
 0x49a   :  { %v5061_v54 = vmul.f32 %v7125_v52, %v10977_v60 }
 0x49b   :  { %v7127_v48 = vpop.eup %7126  ;;  %v5091_v1 = vpop.f32.mrf.mxu1 }
 0x49c   :  { %v4997_v19 = vpop.xlane.xlu1 %4996  ;;  %v5063_v44 = vmul.f32 %v7127_v48, %v10962_v29  ;;  %v5534_v55 = vrot.slane %v5091_v1, 4 }
 0x49d   :  { %v7129_v36 = vpop.eup %7128  ;;  %7130 = vrcp.f32 %v4997_v19 }
 0x49e   :  { %v5067_v9 = vmul.f32 %v7129_v36, %v12165_v50  ;;  %6784 = vmatmul.msk.f32.gmra.mxu3 %vm4715_vm4, %v5063_v44 }
 0x49f   :  { %v5120_v29 = vpop.f32.mrf.mxu3 }
 0x4a0   :  { %6782 = vmatmul.msk.f32.gmra.mxu1 %vm4715_vm4, %v5061_v54  ;;  %6788 = vmatmul.msk.f32.gmra.mxu2 %vm4715_vm4, %v5067_v9  ;;  %v5546_v49 = vrot.slane %v5120_v29, 4 }
 0x4a3   :  { %v7131_v47 = vpop.eup %7130  ;;  %v5094_v58 = vpop.f32.mrf.mxu1 }
 0x4a4   :  { %v5065_v3 = vmul.f32 %v7131_v47, %v10883_v42  ;;  %v5758_v31 = vrot.slane %v5094_v58, 4 }
 0x4a6   :  { %6786 = vmatmul.msk.f32.gmra.mxu0 %vm4715_vm4, %v5065_v3 }
 0x4ab   :  { %v5123_v46 = vpop.f32.mrf.mxu3 }
 0x4ac   :  { %v5770_v23 = vrot.slane %v5123_v46, 4 }
 0x4b3   :  { %v5149_v32 = vpop.f32.mrf.mxu0  ;;  %v5178_v61 = vpop.f32.mrf.mxu2 }
 0x4b4   :  { %v5544_v7 = vrot.slane %v5178_v61, 4  ;;  %v5547_v24 = vsel %vm374_vm2, %v5178_v61, %v5546_v49  ;;  %v5532_v10 = vrot.slane %v5149_v32, 4  ;;  %v5535_v17 = vsel %vm374_vm2, %v5149_v32, %v5534_v55 }
 0x4b5   :  { %v5555_v41 = vperm.slane %v5547_v24, %v7692_v20  ;;  %v5543_v53 = vperm.slane %v5535_v17, %v7692_v20 }
 0x4b6   :  { %v5545_v45 = vsel %vm374_vm2, %v5544_v7, %v5120_v29  ;;  %v5533_v13 = vsel %vm374_vm2, %v5532_v10, %v5091_v1 }
 0x4b7   :  { %v5551_v40 = vperm.slane %v5545_v45, %v7692_v20  ;;  %v5592_v38 = vrot.slane %v5555_v41, 4  ;;  %v5539_v0 = vperm.slane %v5533_v13, %v7692_v20  ;;  %v5594_v37 = vrot.slane %v5543_v53, 4 }
 0x4b9   :  { %v5580_v39 = vrot.slane %v5551_v40, 4  ;;  %v5593_v16 = vsel %vm374_vm2, %v5592_v38, %v5543_v53  ;;  %v5582_v11 = vrot.slane %v5539_v0, 4  ;;  %v5595_v3 = vsel %vm374_vm2, %v5555_v41, %v5594_v37 }
 0x4ba   :  { %v5599_v19 = vperm.slane %v5593_v16, %v7742_v57 }
 0x4bb   :  { %v5152_v28 = vpop.f32.mrf.mxu0  ;;  %v5581_v9 = vsel %vm374_vm2, %v5580_v39, %v5539_v0  ;;  %v5583_v47 = vsel %vm374_vm2, %v5551_v40, %v5582_v11 }
 0x4bc   :  { %v5756_v51 = vrot.slane %v5152_v28, 4  ;;  %v5759_v48 = vsel %vm374_vm2, %v5152_v28, %v5758_v31  ;;  %v5587_v49 = vperm.slane %v5581_v9, %v7742_v57  ;;  %v5638_v7 = vrot.slane %v5599_v19, 4 }
 0x4bd   :  { %v5767_v1 = vperm.slane %v5759_v48, %v7692_v20 }
 0x4be   :  { %v5181_v60 = vpop.f32.mrf.mxu2  ;;  %v5757_v52 = vsel %vm374_vm2, %v5756_v51, %v5094_v58 }
 0x4bf   :  { %v5768_v15 = vrot.slane %v5181_v60, 4  ;;  %v5771_v21 = vsel %vm374_vm2, %v5181_v60, %v5770_v23  ;;  %v5763_v61 = vperm.slane %v5757_v52, %v7692_v20 }
 0x4c0   :  { %v5779_v35 = vperm.slane %v5771_v21, %v7692_v20 }
 0x4c1   :  { %v5769_v34 = vsel %vm374_vm2, %v5768_v15, %v5123_v46 }
 0x4c2   :  { %v5775_v36 = vperm.slane %v5769_v34, %v7692_v20  ;;  %v5816_v29 = vrot.slane %v5779_v35, 4 }
 0x4c3   :  { %v5265_v12 = vpop.f32.mrf.mxu0 }
 0x4c4   :  { %v5556_v42 = vrot.slane %v5265_v12, 4  ;;  %v5804_v28 = vrot.slane %v5775_v36, 4  ;;  %v5817_v55 = vsel %vm374_vm2, %v5816_v29, %v5767_v1 }
 0x4c5   :  { %v11191_v38 = vperm.slane %v5817_v55, %v7742_v57 }
 0x4c6   :  { %v5294_v25 = vpop.f32.mrf.mxu2 }
 0x4c7   :  { %v5568_v43 = vrot.slane %v5294_v25, 4 }
 0x4cd   :  { %v5207_v63 = vpop.f32.mrf.mxu1 }
 0x4ce   :  { %v5558_v62 = vrot.slane %v5207_v63, 4  ;;  %v5557_v4 = vsel %vm374_vm2, %v5556_v42, %v5207_v63  ;;  %v5806_v42 = vrot.slane %v5763_v61, 4 }
 0x4cf   :  { %v5563_v2 = vperm.slane %v5557_v4, %v7692_v20  ;;  %v5630_v4 = vrot.slane %v5587_v49, 4 }
 0x4d0   :  { %v5559_v8 = vsel %vm374_vm2, %v5265_v12, %v5558_v62  ;;  %v5591_v12 = vperm.slane %v5583_v47, %v7742_v57  ;;  %v5807_v15 = vsel %vm374_vm2, %v5775_v36, %v5806_v42 }
 0x4d1   :  { %v5567_v6 = vperm.slane %v5559_v8, %v7692_v20  ;;  %v5606_v18 = vrot.slane %v5563_v2, 4  ;;  %v5815_v34 = vperm.slane %v5807_v15, %v7742_v57 }
 0x4d2   :  { %v5236_v33 = vpop.f32.mrf.mxu3 }
 0x4d3   :  { %v5570_v22 = vrot.slane %v5236_v33, 4  ;;  %v5569_v14 = vsel %vm374_vm2, %v5568_v43, %v5236_v33  ;;  %v5618_v26 = vrot.slane %v5567_v6, 4  ;;  %v5818_v43 = vrot.slane %v5767_v1, 4 }
 0x4d4   :  { %v5575_v59 = vperm.slane %v5569_v14, %v7692_v20  ;;  %v5268_v50 = vpop.f32.mrf.mxu0  ;;  %v5297_v41 = vpop.f32.mrf.mxu2  ;;  %v5634_v14 = vrot.slane %v5591_v12, 4 }
 0x4d5   :  { %v5571_v30 = vsel %vm374_vm2, %v5294_v25, %v5570_v22  ;;  %v5780_v63 = vrot.slane %v5268_v50, 4  ;;  %v5603_v25 = vperm.slane %v5595_v3, %v7742_v57  ;;  %v5805_v22 = vsel %vm374_vm2, %v5804_v28, %v5763_v61 }
 0x4d6   :  { %v5579_v5 = vperm.slane %v5571_v30, %v7692_v20  ;;  %v5604_v27 = vrot.slane %v5575_v59, 4  ;;  %v5607_v44 = vsel %vm374_vm2, %v5575_v59, %v5606_v18  ;;  %v5819_v13 = vsel %vm374_vm2, %v5779_v35, %v5818_v43 }
 0x4d7   :  { %v5615_v60 = vperm.slane %v5607_v44, %v7742_v57  ;;  %v5642_v30 = vrot.slane %v5603_v25, 4  ;;  %v5792_v53 = vrot.slane %v5297_v41, 4  ;;  %v11188_v40 = vperm.slane %v5805_v22, %v7742_v57 }
 0x4d8   :  { %v5619_v56 = vsel %vm374_vm2, %v5579_v5, %v5618_v26  ;;  %v5616_v54 = vrot.slane %v5579_v5, 4  ;;  %v5605_v58 = vsel %vm374_vm2, %v5604_v27, %v5563_v2  ;;  %v11196_v5 = vperm.slane %v5819_v13, %v7742_v57 }
 0x4d9   :  { %v5627_v32 = vperm.slane %v5619_v56, %v7742_v57  ;;  %v5611_v24 = vperm.slane %v5605_v58, %v7742_v57  ;;  %v5632_v17 = vrot.slane %v5615_v60, 4  ;;  %v11202_v51 = vsel %vm374_vm2, %v5615_v60, %v5634_v14 }
 0x4da   :  { %v5617_v62 = vsel %vm374_vm2, %v5616_v54, %v5567_v6  ;;  %v5992_v48 = vrot.slane %v11202_v51, 4  ;;  %v5862_v61 = vrot.slane %v11191_v38, 4 }
 0x4db   :  { %v5640_v33 = vrot.slane %v5627_v32, 4  ;;  %v5623_v8 = vperm.slane %v5617_v62, %v7742_v57  ;;  %v5628_v6 = vrot.slane %v5611_v24, 4  ;;  %v11199_v0 = vsel %vm374_vm2, %v5632_v17, %v5591_v12 }
 0x4dc   :  { %v5643_v31 = vsel %vm374_vm2, %v5627_v32, %v5642_v30  ;;  %v5980_v52 = vrot.slane %v11199_v0, 4  ;;  %v5854_v62 = vrot.slane %v11188_v40, 4 }
 0x4dd   :  { %v11185_v23 = vsel %vm374_vm2, %v5640_v33, %v5603_v25  ;;  %v5636_v21 = vrot.slane %v5623_v8, 4  ;;  %v5639_v26 = vsel %vm374_vm2, %v5623_v8, %v5638_v7  ;;  %v11211_v27 = vsel %vm374_vm2, %v5628_v6, %v5587_v49 }
 0x4de   :  { %v5210_v46 = vpop.f32.mrf.mxu1  ;;  %v6004_v37 = vrot.slane %v11185_v23, 4  ;;  %v6016_v44 = vrot.slane %v5643_v31, 4  ;;  %v5981_v32 = vsel %vm374_vm2, %v5980_v52, %v11211_v27  ;;  %v6018_v58 = vrot.slane %v5639_v26, 4 }
 0x4df   :  { %v5782_v10 = vrot.slane %v5210_v46, 4  ;;  %v5781_v45 = vsel %vm374_vm2, %v5780_v63, %v5210_v46  ;;  %v11217_v36 = vsel %vm374_vm2, %v5636_v21, %v5599_v19  ;;  %v5987_v29 = vperm.slane %v5981_v32, %v7692_v20 }
 0x4e0   :  { %v5787_v59 = vperm.slane %v5781_v45, %v7692_v20  ;;  %v6005_v46 = vsel %vm374_vm2, %v6004_v37, %v11217_v36  ;;  %v5858_v63 = vrot.slane %v5815_v34, 4  ;;  %v6017_v25 = vsel %vm374_vm2, %v6016_v44, %v5639_v26  ;;  %v11239_v33 = vpop.f32.mrf.mxu0 }
 0x4e1   :  { %v5783_v2 = vsel %vm374_vm2, %v5268_v50, %v5782_v10  ;;  %v11221_v50 = vsel %vm374_vm2, %v5611_v24, %v5630_v4  ;;  %v5866_v7 = vrot.slane %v11196_v5, 4  ;;  %v6030_v43 = vrot.slane %v5987_v29, 4 }
 0x4e2   :  { %v5791_v16 = vperm.slane %v5783_v2, %v7692_v20  ;;  %v5830_v56 = vrot.slane %v5787_v59, 4  ;;  %v5993_v60 = vsel %vm374_vm2, %v5992_v48, %v11221_v50  ;;  %v6011_v22 = vperm.slane %v6005_v46, %v7692_v20 }
 0x4e3   :  { %v6006_v8 = vrot.slane %v11217_v36, 4  ;;  %v6019_v17 = vsel %vm374_vm2, %v5643_v31, %v6018_v58  ;;  %v6023_v4 = vperm.slane %v6017_v25, %v7692_v20  ;;  %v5644_v30 = vrot.slane %v11239_v33, 4 }
 0x4e4   :  { %v5842_v1 = vrot.slane %v5791_v16, 4  ;;  %v5994_v2 = vrot.slane %v11221_v50, 4  ;;  %v6054_v31 = vrot.slane %v6011_v22, 4  ;;  %v5982_v32 = vrot.slane %v11211_v27, 4 }
 0x4e5   :  { %v11241_v42 = vpop.f32.mrf.mxu2  ;;  %v6027_v25 = vperm.slane %v6019_v17, %v7692_v20 }
 0x4e6   :  { %v5656_v13 = vrot.slane %v11241_v42, 4  ;;  %v5995_v58 = vsel %vm374_vm2, %v11202_v51, %v5994_v2  ;;  %v6007_v51 = vsel %vm374_vm2, %v11185_v23, %v6006_v8 }
 0x4e7   :  { %v6003_v27 = vperm.slane %v5995_v58, %v7692_v20  ;;  %v6064_v17 = vrot.slane %v6027_v25, 4 }
 0x4f2   :  { %v5239_v39 = vpop.f32.mrf.mxu3 }
 0x4f3   :  { %v5793_v35 = vsel %vm374_vm2, %v5792_v53, %v5239_v39  ;;  %v5794_v18 = vrot.slane %v5239_v39, 4 }
 0x4f4   :  { %v5799_v11 = vperm.slane %v5793_v35, %v7692_v20 }
 0x4f5   :  { %v5795_v54 = vsel %vm374_vm2, %v5297_v41, %v5794_v18  ;;  %v5999_v41 = vperm.slane %v5993_v60, %v7692_v20  ;;  %v6052_v18 = vrot.slane %v6023_v4, 4 }
 0x4f6   :  { %v5803_v9 = vperm.slane %v5795_v54, %v7692_v20  ;;  %v5828_v47 = vrot.slane %v5799_v11, 4  ;;  %v5831_v3 = vsel %vm374_vm2, %v5799_v11, %v5830_v56  ;;  %v6055_v11 = vsel %vm374_vm2, %v6023_v4, %v6054_v31 }
 0x4f7   :  { %v5839_v19 = vperm.slane %v5831_v3, %v7742_v57  ;;  %v6031_v15 = vsel %vm374_vm2, %v5999_v41, %v6030_v43  ;;  %v6028_v37 = vrot.slane %v5999_v41, 4  ;;  %v6063_v44 = vperm.slane %v6055_v11, %v7742_v57 }
 0x4f8   :  { %v5829_v28 = vsel %vm374_vm2, %v5828_v47, %v5787_v59  ;;  %v5840_v49 = vrot.slane %v5803_v9, 4  ;;  %v5843_v12 = vsel %vm374_vm2, %v5803_v9, %v5842_v1  ;;  %v6039_v59 = vperm.slane %v6031_v15, %v7742_v57 }
 0x4f9   :  { %v5856_v24 = vrot.slane %v5839_v19, 4  ;;  %v5835_v55 = vperm.slane %v5829_v28, %v7742_v57  ;;  %v11245_v10 = vsel %vm374_vm2, %v5839_v19, %v5858_v63  ;;  %v5851_v45 = vperm.slane %v5843_v12, %v7742_v57 }
 0x4fa   :  { %v5841_v14 = vsel %vm374_vm2, %v5840_v49, %v5791_v16  ;;  %v6104_v53 = vrot.slane %v11245_v10, 4  ;;  %v6029_v52 = vsel %vm374_vm2, %v6028_v37, %v5987_v29  ;;  %v6082_v48 = vrot.slane %v6039_v59, 4 }
 0x4fb   :  { %v11258_v6 = vsel %vm374_vm2, %v5856_v24, %v5815_v34  ;;  %v5852_v21 = vrot.slane %v5835_v55, 4  ;;  %v11264_v26 = vsel %vm374_vm2, %v5835_v55, %v5854_v62  ;;  %v11267_v39 = vperm.slane %v5841_v14, %v7742_v57  ;;  %v5413_v14 = vpop.f32.mrf.mxu2 }
 0x4fc   :  { %v5864_v16 = vrot.slane %v5851_v45, 4  ;;  %v11270_v35 = vsel %vm374_vm2, %v5851_v45, %v5866_v7  ;;  %v6092_v56 = vrot.slane %v11258_v6, 4  ;;  %v6106_v36 = vrot.slane %v11264_v26, 4 }
 0x4fd   :  { %v11278_v54 = vperm.slane %v6029_v52, %v7742_v57  ;;  %v6053_v50 = vsel %vm374_vm2, %v6052_v18, %v6011_v22  ;;  %v11283_v9 = vsel %vm374_vm2, %v5852_v21, %v11188_v40  ;;  %v6080_v1 = vrot.slane %v6063_v44, 4 }
 0x4fe   :  { %v11286_v3 = vperm.slane %v6053_v50, %v7742_v57  ;;  %v6083_v29 = vsel %vm374_vm2, %v6063_v44, %v6082_v48  ;;  %v5860_v28 = vrot.slane %v11267_v39, 4  ;;  %v5983_v40 = vsel %vm374_vm2, %v11199_v0, %v5982_v32 }
 0x4ff   :  { %v6078_v19 = vrot.slane %v11278_v54, 4  ;;  %6446 = vrot.lane.b32.xlu2 %v6083_v29, %s7315_s17  ;;  %v6081_v46 = vsel %vm374_vm2, %v6080_v1, %v6039_v59  ;;  %v5991_v49 = vperm.slane %v5983_v40, %v7692_v20  ;;  %v6128_v12 = vrot.slane %v11270_v35, 4 }
 0x500   :  { %6438 = vrot.lane.b32.xlu1 %v6081_v46, %s7292_s19  ;;  %v6015_v0 = vperm.slane %v6007_v51, %v7692_v20  ;;  %v6040_v62 = vrot.slane %v6003_v27, 4  ;;  %v11312_v7 = vsel %vm374_vm2, %v5864_v16, %v11196_v5  ;;  %v6107_v24 = vsel %vm374_vm2, %v11245_v10, %v6106_v36 }
 0x501   :  { %v5323_v34 = vpop.f32.mrf.mxu1  ;;  %v6079_v63 = vsel %vm374_vm2, %v11286_v3, %v6078_v19  ;;  %v6094_v45 = vrot.slane %v11283_v9, 4  ;;  %v6042_v15 = vrot.slane %v5991_v49, 4  ;;  %v6116_v31 = vrot.slane %v11312_v7, 4 }
 0x502   :  { %v5646_v47 = vrot.slane %v5323_v34, 4  ;;  %v5645_v60 = vsel %vm374_vm2, %v5644_v30, %v5323_v34  ;;  %6430 = vrot.lane.b32.xlu0 %v6079_v63, %s7289_s13  ;;  %v6041_v8 = vsel %vm374_vm2, %v6040_v62, %v5991_v49  ;;  %v6065_v21 = vsel %vm374_vm2, %v6064_v17, %v6015_v0 }
 0x503   :  { %v5651_v43 = vperm.slane %v5645_v60, %v7692_v20  ;;  %v6047_v30 = vperm.slane %v6041_v8, %v7742_v57  ;;  %v5880_v11 = vrot.slane %v5413_v14, 4  ;;  %v6071_v52 = vperm.slane %v6065_v21, %v7742_v57 }
 0x504   :  { %v5647_v23 = vsel %vm374_vm2, %v11239_v33, %v5646_v47  ;;  %v11325_v33 = vperm.slane %v6107_v24, %v7692_v20  ;;  %v6066_v32 = vrot.slane %v6015_v0, 4  ;;  %v11339_v1 = vsel %vm374_vm2, %v5860_v28, %v11191_v38 }
 0x505   :  { %v5655_v2 = vperm.slane %v5647_v23, %v7692_v20  ;;  %v5694_v37 = vrot.slane %v5651_v43, 4  ;;  %v6086_v48 = vrot.slane %v6047_v30, 4  ;;  %v11345_v19 = vsel %vm374_vm2, %v11267_v39, %v5862_v61 }
 0x506   :  { %v6084_v60 = vrot.slane %v6071_v52, 4 }
 0x507   :  { %v5706_v47 = vrot.slane %v5655_v2, 4  ;;  %v6087_v40 = vsel %vm374_vm2, %v6071_v52, %v6086_v48 }
 0x508   :  { %v6085_v51 = vsel %vm374_vm2, %v6084_v60, %v6047_v30 }
 0x509   :  { %v5352_v55 = vpop.f32.mrf.mxu3  ;;  %6454 = vrot.lane.b32.xlu1 %v6085_v51, %s7286_s23 }
 0x50a   :  { %v5657_v41 = vsel %vm374_vm2, %v5656_v13, %v5352_v55  ;;  %v5658_v22 = vrot.slane %v5352_v55, 4  ;;  %6462 = vrot.lane.b32.xlu0 %v6087_v40, %s7316_s1 }
 0x50b   :  { %v5663_v5 = vperm.slane %v5657_v41, %v7692_v20  ;;  %v5326_v4 = vpop.f32.mrf.mxu1 }
 0x50c   :  { %v5659_v13 = vsel %vm374_vm2, %v11241_v42, %v5658_v22  ;;  %v5870_v16 = vrot.slane %v5326_v4, 4  ;;  %v6043_v42 = vsel %vm374_vm2, %v6003_v27, %v6042_v15  ;;  %v6093_v27 = vsel %vm374_vm2, %v6092_v56, %v11283_v9 }
 0x50d   :  { %v5384_v59 = vpop.f32.mrf.mxu0  ;;  %v5692_v18 = vrot.slane %v5663_v5, 4  ;;  %v5667_v36 = vperm.slane %v5659_v13, %v7692_v20  ;;  %v5695_v44 = vsel %vm374_vm2, %v5663_v5, %v5694_v37  ;;  %v6051_v61 = vperm.slane %v6043_v42, %v7742_v57 }
 0x50e   :  { %v5868_v34 = vrot.slane %v5384_v59, 4  ;;  %v5871_v29 = vsel %vm374_vm2, %v5384_v59, %v5870_v16  ;;  %v11355_v46 = vperm.slane %v5695_v44, %v7742_v57 }
 0x50f   :  { %v5693_v28 = vsel %vm374_vm2, %v5692_v18, %v5651_v43  ;;  %v5704_v39 = vrot.slane %v5667_v36, 4  ;;  %v5707_v56 = vsel %vm374_vm2, %v5667_v36, %v5706_v47  ;;  %v5879_v0 = vperm.slane %v5871_v29, %v7692_v20 }
 0x510   :  { %v5869_v50 = vsel %vm374_vm2, %v5868_v34, %v5326_v4  ;;  %v6067_v43 = vsel %vm374_vm2, %v6027_v25, %v6066_v32  ;;  %v11370_v17 = vperm.slane %v5693_v28, %v7742_v57  ;;  %v5746_v21 = vrot.slane %v11355_v46, 4 }
 0x511   :  { %v5355_v58 = vpop.f32.mrf.mxu3  ;;  %v5875_v38 = vperm.slane %v5869_v50, %v7692_v20  ;;  %v6075_v8 = vperm.slane %v6067_v43, %v7742_v57  ;;  %v5705_v15 = vsel %vm374_vm2, %v5704_v39, %v5655_v2  ;;  %v6090_v16 = vrot.slane %v6051_v61, 4 }
 0x512   :  { %v5881_v63 = vsel %vm374_vm2, %v5880_v11, %v5355_v58  ;;  %v5882_v49 = vrot.slane %v5355_v58, 4  ;;  %v5930_v34 = vrot.slane %v5879_v0, 4  ;;  %v11384_v36 = vperm.slane %v5705_v15, %v7742_v57 }
 0x513   :  { %v5887_v62 = vperm.slane %v5881_v63, %v7692_v20  ;;  %v5918_v5 = vrot.slane %v5875_v38, 4  ;;  %v6088_v25 = vrot.slane %v6075_v8, 4  ;;  %v5742_v47 = vrot.slane %v11370_v17, 4 }
 0x514   :  { %v5883_v55 = vsel %vm374_vm2, %v5413_v14, %v5882_v49  ;;  %v11377_v14 = vperm.slane %v5707_v56, %v7742_v57  ;;  %v6099_v58 = vperm.slane %v6093_v27, %v7692_v20  ;;  %v6105_v27 = vsel %vm374_vm2, %v6104_v53, %v11264_v26 }
 0x515   :  { %v5439_v24 = vpop.f32.mrf.mxu1  ;;  %v5497_v23 = vpop.f32.mrf.mxu0  ;;  %v5891_v4 = vperm.slane %v5883_v55, %v7692_v20  ;;  %v5916_v30 = vrot.slane %v5887_v62, 4  ;;  %v5919_v37 = vsel %vm374_vm2, %v5887_v62, %v5918_v5  ;;  %v6089_v50 = vsel %vm374_vm2, %v6088_v25, %v6051_v61 }
 0x516   :  { %v5670_v41 = vrot.slane %v5439_v24, 4  ;;  %v5668_v22 = vrot.slane %v5497_v23, 4  ;;  %v11390_v32 = vperm.slane %v5919_v37, %v7742_v57  ;;  %6470 = vrot.lane.b32.xlu2 %v6089_v50, %s7317_s8  ;;  %v6117_v56 = vsel %vm374_vm2, %v6116_v31, %v11339_v1 }
 0x517   :  { %v5917_v18 = vsel %vm374_vm2, %v5916_v30, %v5875_v38  ;;  %v5928_v11 = vrot.slane %v5891_v4, 4  ;;  %v5931_v29 = vsel %vm374_vm2, %v5891_v4, %v5930_v34  ;;  %v6091_v38 = vsel %vm374_vm2, %v6075_v8, %v6090_v16 }
 0x518   :  { %v5669_v13 = vsel %vm374_vm2, %v5668_v22, %v5439_v24  ;;  %v5671_v59 = vsel %vm374_vm2, %v5497_v23, %v5670_v41  ;;  %v11396_v60 = vperm.slane %v5917_v18, %v7742_v57  ;;  %6478 = vrot.lane.b32.xlu1 %v6091_v38, %s7318_s20  ;;  %v6123_v53 = vperm.slane %v6117_v56, %v7692_v20 }
 0x519   :  { %v5679_v52 = vperm.slane %v5671_v59, %v7692_v20  ;;  %v5468_v2 = vpop.f32.mrf.mxu3  ;;  %v5526_v48 = vpop.f32.mrf.mxu2  ;;  %v5675_v44 = vperm.slane %v5669_v13, %v7692_v20  ;;  %v5929_v61 = vsel %vm374_vm2, %v5928_v11, %v5879_v0  ;;  %v6129_v0 = vsel %vm374_vm2, %v6128_v12, %v11345_v19 }
 0x51a   :  { %v5682_v42 = vrot.slane %v5468_v2, 4  ;;  %v5680_v40 = vrot.slane %v5526_v48, 4  ;;  %v11420_v26 = vperm.slane %v5929_v61, %v7742_v57  ;;  %v11423_v23 = vperm.slane %v5931_v29, %v7742_v57 }
 0x51b   :  { %v5730_v39 = vrot.slane %v5679_v52, 4  ;;  %v5718_v49 = vrot.slane %v5675_v44, 4  ;;  %v6111_v43 = vperm.slane %v6105_v27, %v7692_v20  ;;  %v6166_v22 = vrot.slane %v6123_v53, 4 }
 0x51c   :  { %v5683_v28 = vsel %vm374_vm2, %v5526_v48, %v5682_v42  ;;  %v5681_v51 = vsel %vm374_vm2, %v5680_v40, %v5468_v2  ;;  %v5754_v8 = vrot.slane %v11377_v14, 4  ;;  %v6135_v30 = vperm.slane %v6129_v0, %v7692_v20 }
 0x51d   :  { %v5691_v63 = vperm.slane %v5683_v28, %v7692_v20  ;;  %v5687_v62 = vperm.slane %v5681_v51, %v7692_v20  ;;  %v5442_v4 = vpop.f32.mrf.mxu1  ;;  %v6142_v15 = vrot.slane %v6099_v58, 4  ;;  %v5750_v13 = vrot.slane %v11384_v36, 4 }
 0x51e   :  { %v5970_v59 = vrot.slane %v11390_v32, 4  ;;  %v5966_v16 = vrot.slane %v11396_v60, 4  ;;  %v5978_v34 = vrot.slane %v11423_v23, 4  ;;  %v6167_v18 = vsel %vm374_vm2, %v6135_v30, %v6166_v22 }
 0x51f   :  { %v5728_v24 = vrot.slane %v5691_v63, 4  ;;  %v5731_v10 = vsel %vm374_vm2, %v5691_v63, %v5730_v39  ;;  %v5716_v55 = vrot.slane %v5687_v62, 4  ;;  %v5719_v12 = vsel %vm374_vm2, %v5687_v62, %v5718_v49 }
 0x520   :  { %v5739_v31 = vperm.slane %v5731_v10, %v7742_v57  ;;  %v5727_v5 = vperm.slane %v5719_v12, %v7742_v57  ;;  %v6140_v11 = vrot.slane %v6111_v43, 4  ;;  %v5894_v48 = vrot.slane %v5442_v4, 4 }
 0x521   :  { %v5729_v41 = vsel %vm374_vm2, %v5728_v24, %v5679_v52  ;;  %v5717_v25 = vsel %vm374_vm2, %v5716_v55, %v5675_v44  ;;  %v5974_v52 = vrot.slane %v11420_v26, 4  ;;  %v6130_v50 = vrot.slane %v11345_v19, 4  ;;  %v5471_v42 = vpop.f32.mrf.mxu3 }
 0x522   :  { %v5735_v37 = vperm.slane %v5729_v41, %v7742_v57  ;;  %v5752_v2 = vrot.slane %v5739_v31, 4  ;;  %v11442_v40 = vperm.slane %v5717_v25, %v7742_v57  ;;  %v5744_v44 = vrot.slane %v5727_v5, 4 }
 0x523   :  { %v5529_v29 = vpop.f32.mrf.mxu2  ;;  %v11445_v28 = vsel %vm374_vm2, %v5739_v31, %v5754_v8  ;;  %v6143_v38 = vsel %vm374_vm2, %v6111_v43, %v6142_v15  ;;  %v5500_v61 = vpop.f32.mrf.mxu0  ;;  %v11451_v39 = vsel %vm374_vm2, %v5727_v5, %v5746_v21  ;;  %v11457_v27 = vperm.slane %v6167_v18, %v7742_v57 }
 0x524   :  { %v5748_v63 = vrot.slane %v5735_v37, 4  ;;  %v11454_v19 = vsel %vm374_vm2, %v5735_v37, %v5750_v13  ;;  %v6141_v49 = vsel %vm374_vm2, %v6140_v11, %v6099_v58  ;;  %v6164_v51 = vrot.slane %v6135_v30, 4 }
 0x525   :  { %v5906_v56 = vrot.slane %v5471_v42, 4  ;;  %v5904_v0 = vrot.slane %v5529_v29, 4  ;;  %v11461_v62 = vperm.slane %v6143_v38, %v7742_v57  ;;  %v6192_v24 = vrot.slane %v11457_v27, 4 }
 0x526   :  { %v11465_v21 = vperm.slane %v6141_v49, %v7742_v57  ;;  %v5892_v10 = vrot.slane %v5500_v61, 4  ;;  %v6165_v31 = vsel %vm374_vm2, %v6164_v51, %v6123_v53  ;;  %v5895_v58 = vsel %vm374_vm2, %v5500_v61, %v5894_v48 }
 0x527   :  { %v5905_v43 = vsel %vm374_vm2, %v5904_v0, %v5471_v42  ;;  %v5907_v55 = vsel %vm374_vm2, %v5529_v29, %v5906_v56  ;;  %v6193_v12 = vsel %vm374_vm2, %v6192_v24, %v11461_v62  ;;  %v11474_v41 = vperm.slane %v6165_v31, %v7742_v57 }
 0x528   :  { %v6190_v22 = vrot.slane %v11465_v21, 4  ;;  %v5911_v8 = vperm.slane %v5905_v43, %v7692_v20  ;;  %v11480_v5 = vsel %vm374_vm2, %v5752_v2, %v11377_v14  ;;  %6440 = vrot.lane.b32.xlu0 %v6193_v12, %s7292_s19  ;;  %v5915_v53 = vperm.slane %v5907_v55, %v7692_v20 }
 0x529   :  { %v5893_v30 = vsel %vm374_vm2, %v5892_v10, %v5442_v4  ;;  %v5903_v15 = vperm.slane %v5895_v58, %v7692_v20  ;;  %v11488_v13 = vsel %vm374_vm2, %v5744_v44, %v11355_v46  ;;  %v11495_v14 = vsel %vm374_vm2, %v5748_v63, %v11384_v36 }
 0x52a   :  { %v6191_v25 = vsel %vm374_vm2, %v11474_v41, %v6190_v22  ;;  %v5940_v37 = vrot.slane %v5911_v8, 4  ;;  %v5899_v18 = vperm.slane %v5893_v30, %v7692_v20  ;;  %v5952_v11 = vrot.slane %v5915_v53, 4 }
 0x52b   :  { %6432 = vrot.lane.b32.xlu2 %v6191_v25, %s7289_s13  ;;  %v5954_v4 = vrot.slane %v5903_v15, 4  ;;  %v6118_v2 = vrot.slane %v11339_v1, 4  ;;  %v6242_v48 = vrot.slane %v11454_v19, 4  ;;  %v6095_v29 = vsel %vm374_vm2, %v11258_v6, %v6094_v45  ;;  %s7320_s13 = smov 36  }
 0x52c   :  { %v5941_v46 = vsel %vm374_vm2, %v5940_v37, %v5899_v18  ;;  %v5942_v42 = vrot.slane %v5899_v18, 4  ;;  %v5953_v36 = vsel %vm374_vm2, %v5952_v11, %v5903_v15  ;;  %v6131_v1 = vsel %vm374_vm2, %v11270_v35, %v6130_v50 }
 0x52d   :  { %v11506_v44 = vperm.slane %v5941_v46, %v7742_v57  ;;  %v5955_v38 = vsel %vm374_vm2, %v5915_v53, %v5954_v4  ;;  %v11514_v63 = vperm.slane %v5953_v36, %v7742_v57  ;;  %v6119_v6 = vsel %vm374_vm2, %v11312_v7, %v6118_v2 }
 0x52e   :  { %v5943_v61 = vsel %vm374_vm2, %v5911_v8, %v5942_v42  ;;  %v5963_v9 = vperm.slane %v5955_v38, %v7742_v57  ;;  %v6240_v45 = vrot.slane %v11445_v28, 4  ;;  %v6103_v51 = vperm.slane %v6095_v29, %v7692_v20 }
 0x52f   :  { %v11521_v49 = vperm.slane %v5943_v61, %v7742_v57  ;;  %v6152_v56 = vrot.slane %v11325_v33, 4  ;;  %v5740_v35 = vrot.slane %v11442_v40, 4  ;;  %v6216_v50 = vrot.slane %v11451_v39, 4 }
 0x530   :  { %v6228_v0 = vrot.slane %v11480_v5, 4  ;;  %v6139_v24 = vperm.slane %v6131_v1, %v7692_v20  ;;  %v6204_v10 = vrot.slane %v11488_v13, 4  ;;  %v6230_v7 = vrot.slane %v11495_v14, 4 }
 0x531   :  { %v11534_v31 = vsel %vm374_vm2, %v5963_v9, %v5978_v34  ;;  %v6127_v43 = vperm.slane %v6119_v6, %v7692_v20  ;;  %v11539_v55 = vsel %vm374_vm2, %v11445_v28, %v6242_v48  ;;  %v5964_v58 = vrot.slane %v11506_v44, 4 }
 0x532   :  { %v5972_v12 = vrot.slane %v11514_v63, 4  ;;  %v11547_v22 = vsel %vm374_vm2, %v11514_v63, %v5974_v52  ;;  %v5968_v8 = vrot.slane %v11521_v49, 4  ;;  %v11554_v34 = vsel %vm374_vm2, %v11521_v49, %v5970_v59 }
 0x533   :  { %v5976_v28 = vrot.slane %v5963_v9, 4  ;;  %v6153_v53 = vsel %vm374_vm2, %v6152_v56, %v6103_v51  ;;  %v6352_v30 = vrot.slane %v11534_v31, 4  ;;  %v6176_v25 = vrot.slane %v6139_v24, 4 }
 0x534   :  { %v6159_v15 = vperm.slane %v6153_v53, %v7742_v57  ;;  %v6194_v37 = vrot.slane %v11461_v62, 4  ;;  %v6154_v52 = vrot.slane %v6103_v51, 4  ;;  %v6178_v18 = vrot.slane %v6127_v43, 4 }
 0x535   :  { %v5741_v11 = vsel %vm374_vm2, %v5740_v35, %v11370_v17  ;;  %v5743_v59 = vsel %vm374_vm2, %v11442_v40, %v5742_v47  ;;  %v6177_v4 = vsel %vm374_vm2, %v6176_v25, %v6127_v43  ;;  %v11572_v62 = vsel %vm374_vm2, %v5976_v28, %v11423_v23 }
 0x536   :  { %v6198_v2 = vrot.slane %v6159_v15, 4  ;;  %v6195_v48 = vsel %vm374_vm2, %v11457_v27, %v6194_v37  ;;  %v6205_v46 = vsel %vm374_vm2, %v6204_v10, %v5741_v11  ;;  %v6183_v42 = vperm.slane %v6177_v4, %v7742_v57 }
 0x537   :  { %6448 = vrot.lane.b32.xlu0 %v6195_v48, %s7315_s17  ;;  %v6155_v17 = vsel %vm374_vm2, %v11325_v33, %v6154_v52  ;;  %v6179_v47 = vsel %vm374_vm2, %v6139_v24, %v6178_v18  ;;  %v6206_v29 = vrot.slane %v5741_v11, 4  ;;  %v6211_v27 = vperm.slane %v6205_v46, %v7692_v20 }
 0x538   :  { %v6187_v40 = vperm.slane %v6179_v47, %v7742_v57  ;;  %v6217_v36 = vsel %vm374_vm2, %v6216_v50, %v5743_v59  ;;  %v6199_v38 = vsel %vm374_vm2, %v6183_v42, %v6198_v2  ;;  %v6196_v23 = vrot.slane %v6183_v42, 4 }
 0x539   :  { %v6163_v1 = vperm.slane %v6155_v17, %v7742_v57  ;;  %v6223_v61 = vperm.slane %v6217_v36, %v7692_v20  ;;  %6464 = vrot.lane.b32.xlu1 %v6199_v38, %s7316_s1  ;;  %v6218_v33 = vrot.slane %v5743_v59, 4  ;;  %v6229_v6 = vsel %vm374_vm2, %v6228_v0, %v11495_v14 }
 0x53a   :  { %v6200_v9 = vrot.slane %v6187_v40, 4  ;;  %v6241_v51 = vsel %vm374_vm2, %v6240_v45, %v11454_v19  ;;  %v6197_v56 = vsel %vm374_vm2, %v6196_v23, %v6159_v15  ;;  %v6235_v35 = vperm.slane %v6229_v6, %v7692_v20 }
 0x53b   :  { %v6247_v50 = vperm.slane %v6241_v51, %v7692_v20  ;;  %v6254_v24 = vrot.slane %v6211_v27, 4  ;;  %v6328_v10 = vrot.slane %v11554_v34, 4  ;;  %v6340_v43 = vrot.slane %v11572_v62, 4  ;;  %6456 = vrot.lane.b32.xlu2 %v6197_v56, %s7286_s23  ;;  %s7319_s23 = smov 40  }
 0x53c   :  { %v6252_v28 = vrot.slane %v6223_v61, 4  ;;  %v6207_v0 = vsel %vm374_vm2, %v11488_v13, %v6206_v29  ;;  %v6353_v19 = vsel %vm374_vm2, %v6352_v30, %v11547_v22  ;;  %v6202_v45 = vrot.slane %v6163_v1, 4 }
 0x53d   :  { %v6278_v53 = vrot.slane %v6235_v35, 4  ;;  %v6276_v15 = vrot.slane %v6247_v50, 4  ;;  %v6201_v25 = vsel %vm374_vm2, %v6200_v9, %v6163_v1  ;;  %v6255_v37 = vsel %vm374_vm2, %v6223_v61, %v6254_v24 }
 0x53e   :  { %v11603_v52 = vperm.slane %v6207_v0, %v7692_v20  ;;  %v6219_v18 = vsel %vm374_vm2, %v11451_v39, %v6218_v33  ;;  %v6253_v11 = vsel %vm374_vm2, %v6252_v28, %v6211_v27  ;;  %v6231_v39 = vsel %vm374_vm2, %v11480_v5, %v6230_v7 }
 0x53f   :  { %6472 = vrot.lane.b32.xlu0 %v6201_v25, %s7317_s8  ;;  %v6279_v13 = vsel %vm374_vm2, %v6247_v50, %v6278_v53  ;;  %v6277_v30 = vsel %vm374_vm2, %v6276_v15, %v6235_v35  ;;  %v11612_v59 = vperm.slane %v6219_v18, %v7692_v20  ;;  %v6251_v48 = vperm.slane %v11539_v55, %v7692_v20 }
 0x540   :  { %v6287_v4 = vperm.slane %v6279_v13, %v7742_v57  ;;  %v6283_v2 = vperm.slane %v6277_v30, %v7742_v57  ;;  %v11623_v46 = vperm.slane %v6353_v19, %v7692_v20  ;;  %v6203_v42 = vsel %vm374_vm2, %v6187_v40, %v6202_v45 }
 0x541   :  { %v6263_v17 = vperm.slane %v6255_v37, %v7742_v57  ;;  %v6264_v47 = vrot.slane %v11612_v59, 4  ;;  %v6259_v27 = vperm.slane %v6253_v11, %v7742_v57  ;;  %v11633_v5 = vsel %vm374_vm2, %v5968_v8, %v11390_v32 }
 0x542   :  { %v6304_v29 = vrot.slane %v6287_v4, 4  ;;  %v6300_v36 = vrot.slane %v6283_v2, 4  ;;  %v6239_v14 = vperm.slane %v6231_v39, %v7692_v20  ;;  %v6288_v55 = vrot.slane %v6251_v48, 4 }
 0x543   :  { %v6265_v7 = vsel %vm374_vm2, %v6264_v47, %v11603_v52  ;;  %v6316_v40 = vrot.slane %v11633_v5, 4  ;;  %v11643_v38 = vsel %vm374_vm2, %v11506_v44, %v5966_v16  ;;  %6480 = vrot.lane.b32.xlu2 %v6203_v42, %s7318_s20  ;;  %v5973_v8 = vsel %vm374_vm2, %v5972_v12, %v11420_v26 }
 0x544   :  { %v6305_v49 = vsel %vm374_vm2, %v6304_v29, %v6263_v17  ;;  %v6271_v32 = vperm.slane %v6265_v7, %v7742_v57  ;;  %v5965_v16 = vsel %vm374_vm2, %v5964_v58, %v11396_v60  ;;  %v6329_v23 = vsel %vm374_vm2, %v6328_v10, %v11643_v38 }
 0x545   :  { %6502 = vrot.lane.b32.xlu1 %v6305_v49, %s7319_s23  ;;  %v6301_v1 = vsel %vm374_vm2, %v6300_v36, %v6259_v27  ;;  %v6317_v61 = vsel %vm374_vm2, %v6316_v40, %v5965_v16  ;;  %v6335_v9 = vperm.slane %v6329_v23, %v7692_v20  ;;  %v6341_v63 = vsel %vm374_vm2, %v6340_v43, %v5973_v8 }
 0x546   :  { %v6302_v26 = vrot.slane %v6259_v27, 4  ;;  %v6289_v12 = vsel %vm374_vm2, %v6288_v55, %v6239_v14  ;;  %v6347_v44 = vperm.slane %v6341_v63, %v7692_v20  ;;  %v6388_v60 = vrot.slane %v11623_v46, 4 }
 0x547   :  { %6486 = vrot.lane.b32.xlu0 %v6301_v1, %s7313_s10  ;;  %v6310_v58 = vrot.slane %v6271_v32, 4  ;;  %v6290_v33 = vrot.slane %v6239_v14, 4  ;;  %v6323_v6 = vperm.slane %v6317_v61, %v7692_v20  ;;  %v6364_v51 = vrot.slane %v6335_v9, 4 }
 0x548   :  { %v6389_v56 = vsel %vm374_vm2, %v6388_v60, %v6347_v44  ;;  %v6295_v35 = vperm.slane %v6289_v12, %v7742_v57  ;;  %v6306_v50 = vrot.slane %v6263_v17, 4  ;;  %v6303_v24 = vsel %vm374_vm2, %v6283_v2, %v6302_v26 }
 0x549   :  { %v6266_v10 = vrot.slane %v11603_v52, 4  ;;  %v6291_v43 = vsel %vm374_vm2, %v6251_v48, %v6290_v33  ;;  %v6342_v28 = vrot.slane %v5973_v8, 4  ;;  %v6354_v0 = vrot.slane %v11547_v22, 4 }
 0x54a   :  { %v6311_v19 = vsel %vm374_vm2, %v6295_v35, %v6310_v58  ;;  %v6395_v45 = vperm.slane %v6389_v56, %v7742_v57  ;;  %v6365_v53 = vsel %vm374_vm2, %v6364_v51, %v6323_v6  ;;  %v6366_v15 = vrot.slane %v6323_v6, 4 }
 0x54b   :  { %6494 = vrot.lane.b32.xlu2 %v6303_v24, %s7320_s13  ;;  %v6307_v25 = vsel %vm374_vm2, %v6287_v4, %v6306_v50  ;;  %v6299_v37 = vperm.slane %v6291_v43, %v7742_v57  ;;  %v6188_v52 = vrot.slane %v11474_v41, 4  ;;  %v6308_v22 = vrot.slane %v6295_v35, 4 }
 0x54c   :  { %v6318_v18 = vrot.slane %v5965_v16, 4  ;;  %v6267_v13 = vsel %vm374_vm2, %v11612_v59, %v6266_v10  ;;  %v6371_v11 = vperm.slane %v6365_v53, %v7742_v57  ;;  %v6412_v30 = vrot.slane %v6395_v45, 4 }
 0x54d   :  { %6526 = vrot.lane.b32.xlu1 %v6311_v19, %s7321_s2  ;;  %v6343_v2 = vsel %vm374_vm2, %v11572_v62, %v6342_v28  ;;  %v6355_v4 = vsel %vm374_vm2, %v11534_v31, %v6354_v0  ;;  %v6330_v39 = vrot.slane %v11643_v38, 4  ;;  %v6367_v41 = vsel %vm374_vm2, %v6335_v9, %v6366_v15  ;;  %v12166_v28 = vld [vmem:[#allocation16_spill] sm:$0xff]  ;;  %v12168_v19 = vld [vmem:[#allocation17_spill] sm:$0xff] }
 0x54e   :  { %v6351_v48 = vperm.slane %v6343_v2, %v7692_v20  ;;  %v6312_v42 = vrot.slane %v6299_v37, 4  ;;  %v6309_v17 = vsel %vm374_vm2, %v6308_v22, %v6271_v32  ;;  %v6275_v59 = vperm.slane %v6267_v13, %v7742_v57 }
 0x54f   :  { %6510 = vrot.lane.b32.xlu0 %v6307_v25, %s7322_s21  ;;  %v6390_v47 = vrot.slane %v6347_v44, 4  ;;  %v6363_v29 = vperm.slane %v6355_v4, %v7692_v20  ;;  %v6413_v62 = vsel %vm374_vm2, %v6412_v30, %v6371_v11  ;;  %v6375_v31 = vperm.slane %v6367_v41, %v7742_v57 }
 0x550   :  { %v6319_v27 = vsel %vm374_vm2, %v11633_v5, %v6318_v18  ;;  %v11703_v36 = vsel %vm374_vm2, %v6188_v52, %v11465_v21  ;;  %v6331_v14 = vsel %vm374_vm2, %v11554_v34, %v6330_v39  ;;  %v6402_v7 = vrot.slane %v6351_v48, 4 }
 0x551   :  { %v6313_v55 = vsel %vm374_vm2, %v6312_v42, %v6275_v59  ;;  %v6314_v40 = vrot.slane %v6275_v59, 4  ;;  %v6391_v38 = vsel %vm374_vm2, %v11623_v46, %v6390_v47  ;;  %v6327_v5 = vperm.slane %v6319_v27, %v7692_v20 }
 0x552   :  { %v6400_v49 = vrot.slane %v6363_v29, 4  ;;  %v6418_v21 = vrot.slane %v6375_v31, 4  ;;  %v6339_v32 = vperm.slane %v6331_v14, %v7692_v20  ;;  %v6403_v8 = vsel %vm374_vm2, %v6363_v29, %v6402_v7 }
 0x553   :  { %6518 = vrot.lane.b32.xlu2 %v6309_v17, %s7314_s7  ;;  %v6399_v34 = vperm.slane %v6391_v38, %v7742_v57  ;;  %v6414_v16 = vrot.slane %v6371_v11, 4  ;;  %v6315_v23 = vsel %vm374_vm2, %v6299_v37, %v6314_v40  ;;  %v6378_v1 = vrot.slane %v6327_v5, 4 }
 0x554   :  { %v6401_v61 = vsel %vm374_vm2, %v6400_v49, %v6351_v48  ;;  %v6411_v9 = vperm.slane %v6403_v8, %v7742_v57  ;;  %v6376_v63 = vrot.slane %v6339_v32, 4  ;;  %v12167_v0 = vmax.f32 %v12166_v28, 0.0 }
 0x555   :  { %6488 = vrot.lane.b32.xlu1 %v6413_v62, %s7313_s10  ;;  %v6419_v46 = vsel %vm374_vm2, %v6399_v34, %v6418_v21  ;;  %v6415_v20 = vsel %vm374_vm2, %v6395_v45, %v6414_v16  ;;  %v6407_v26 = vperm.slane %v6401_v61, %v7742_v57  ;;  %v6416_v12 = vrot.slane %v6399_v34, 4 }
 0x556   :  { %v6379_v44 = vsel %vm374_vm2, %v6339_v32, %v6378_v1  ;;  %v6424_v60 = vrot.slane %v6411_v9, 4  ;;  %v6377_v58 = vsel %vm374_vm2, %v6376_v63, %v6327_v5  ;;  %v12169_v45 = vmax.f32 %v12168_v19, 0.0 }
 0x557   :  { %6534 = vrot.lane.b32.xlu0 %v6313_v55, %s7323_s0  ;;  %v6387_v33 = vperm.slane %v6379_v44, %v7742_v57  ;;  %v6420_v6 = vrot.slane %v6407_v26, 4  ;;  %v6417_v51 = vsel %vm374_vm2, %v6416_v12, %v6375_v31  ;;  %v6383_v56 = vperm.slane %v6377_v58, %v7742_v57 }
 0x558   :  { %v6076_v42 = vrot.slane %v11286_v3, 4 }
 0x559   :  { %v6425_v35 = vsel %vm374_vm2, %v6424_v60, %v6387_v33  ;;  %v6421_v50 = vsel %vm374_vm2, %v6420_v6, %v6383_v56  ;;  %v6422_v24 = vrot.slane %v6383_v56, 4  ;;  %v6426_v10 = vrot.slane %v6387_v33, 4  ;;  %v6447_v53 = vpop.permute.xlu2 %6446 }
 0x55a   :  { %v6077_v47 = vsel %vm374_vm2, %v6076_v42, %v11278_v54 }
 0x55b   :  { %6542 = vrot.lane.b32.xlu2 %v6315_v23, %s7324_s22  ;;  %v6423_v43 = vsel %vm374_vm2, %v6407_v26, %v6422_v24  ;;  %v6427_v57 = vsel %vm374_vm2, %v6411_v9, %v6426_v10  ;;  %vm6587_vm2 = vcmask 490496  }
 0x55d   :  { %6512 = vrot.lane.b32.xlu1 %v6419_v46, %s7322_s21 }
 0x55f   :  { %6496 = vrot.lane.b32.xlu0 %v6415_v20, %s7320_s13 }
 0x563   :  { %6504 = vrot.lane.b32.xlu2 %v6417_v51, %s7319_s23 }
 0x565   :  { %6536 = vrot.lane.b32.xlu1 %v6425_v35, %s7323_s0 }
 0x567   :  { %6520 = vrot.lane.b32.xlu0 %v6421_v50, %s7314_s7 }
 0x56b   :  { %6528 = vrot.lane.b32.xlu2 %v6423_v43, %s7321_s2 }
 0x56d   :  { %6592 = vrot.lane.b32.xlu1 %v12167_v0, %s7288_s12 }
 0x56f   :  { %6544 = vrot.lane.b32.xlu0 %v6427_v57, %s7324_s22 }
 0x570   :  { %v6471_v15 = vpop.permute.xlu2 %6470 }
 0x572   :  { %v6439_v37 = vpop.permute.xlu1 %6438 }
 0x573   :  { %6594 = vrot.lane.b32.xlu2 %v12169_v45, %s7288_s12  ;;  %s7325_s12 = smov [#allocation11]  }
 0x574   :  { %v6431_v25 = vpop.permute.xlu0 %6430  ;;  %s6606_s6 = sshll.u32 %s7325_s12, 4  ;;  %s6607_s6 = int_to_ptr.vmem [resolvable:$true] %s6606_s6 }
 0x575   :  { %v6548_v29 = vsel %vm4118_vm3, %v6077_v47, %v6431_v25 }
 0x576   :  { %v6551_v31 = vsel %vm6550_vm5, %v6548_v29, %v6439_v37 }
 0x577   :  { %v6554_v14 = vsel %vm6553_vm6, %v6551_v31, %v6447_v53 }
 0x57b   :  { %v6455_v18 = vpop.permute.xlu1 %6454 }
 0x57c   :  { %v6463_v22 = vpop.permute.xlu0 %6462  ;;  %v6556_v55 = vsel %vm4715_vm4, %v6554_v14, %v6455_v18 }
 0x57d   :  { %v6559_v40 = vsel %vm6558_vm7, %v6556_v55, %v6463_v22 }
 0x57e   :  { %v6562_v49 = vsel %vm6561_vm8, %v6559_v40, %v6471_v15 }
 0x585   :  { %v6433_v52 = vpop.permute.xlu2 %6432 }
 0x586   :  { %v6549_v3 = vsel %vm4118_vm3, %v11703_v36, %v6433_v52 }
 0x58a   :  { %v6479_v30 = vpop.permute.xlu1 %6478 }
 0x58b   :  { %v6565_v32 = vsel %vm6564_vm9, %v6562_v49, %v6479_v30 }
 0x595   :  { %v6457_v13 = vpop.permute.xlu2 %6456 }
 0x59a   :  { %v6441_v11 = vpop.permute.xlu0 %6440 }
 0x59b   :  { %v6552_v38 = vsel %vm6550_vm5, %v6549_v3, %v6441_v11 }
 0x59d   :  { %v6481_v2 = vpop.permute.xlu2 %6480 }
 0x5a5   :  { %v6495_v48 = vpop.permute.xlu2 %6494 }
 0x5a9   :  { %v6449_v4 = vpop.permute.xlu0 %6448 }
 0x5aa   :  { %v6555_v21 = vsel %vm6553_vm6, %v6552_v38, %v6449_v4 }
 0x5ab   :  { %v6465_v39 = vpop.permute.xlu1 %6464  ;;  %v6557_v16 = vsel %vm4715_vm4, %v6555_v21, %v6457_v13 }
 0x5ac   :  { %v6560_v36 = vsel %vm6558_vm7, %v6557_v16, %v6465_v39 }
 0x5ad   :  { %v6519_v62 = vpop.permute.xlu2 %6518 }
 0x5b1   :  { %v6473_v41 = vpop.permute.xlu0 %6472 }
 0x5b2   :  { %v6563_v1 = vsel %vm6561_vm8, %v6560_v36, %v6473_v41 }
 0x5b3   :  { %v6566_v26 = vsel %vm6564_vm9, %v6563_v1, %v6481_v2 }
 0x5b5   :  { %v6543_v54 = vpop.permute.xlu2 %6542 }
 0x5b7   :  { %v6503_v17 = vpop.permute.xlu1 %6502 }
 0x5b9   :  { %v6487_v59 = vpop.permute.xlu0 %6486 }
 0x5ba   :  { %v6567_v34 = vsel %vm146_vm0, %v6565_v32, %v6487_v59 }
 0x5bb   :  { %v6570_v23 = vsel %vm6569_vm10, %v6567_v34, %v6495_v48 }
 0x5bc   :  { %v6573_v9 = vsel %vm6572_vm11, %v6570_v23, %v6503_v17 }
 0x5bd   :  { %v6505_v46 = vpop.permute.xlu2 %6504 }
 0x5bf   :  { %v6527_v27 = vpop.permute.xlu1 %6526 }
 0x5c1   :  { %v6511_v7 = vpop.permute.xlu0 %6510 }
 0x5c2   :  { %v6576_v63 = vsel %vm6575_vm12, %v6573_v9, %v6511_v7 }
 0x5c3   :  { %v6579_v44 = vsel %vm6578_vm13, %v6576_v63, %v6519_v62 }
 0x5c4   :  { %v6582_v58 = vsel %vm6581_vm14, %v6579_v44, %v6527_v27 }
 0x5c5   :  { %v6529_v35 = vpop.permute.xlu2 %6528 }
 0x5c7   :  { %v6489_v5 = vpop.permute.xlu1 %6488 }
 0x5c8   :  { %v6568_v12 = vsel %vm146_vm0, %v6566_v26, %v6489_v5 }
 0x5c9   :  { %v6535_v8 = vpop.permute.xlu0 %6534 }
 0x5ca   :  { %v6585_v51 = vsel %vm6584_vm15, %v6582_v58, %v6535_v8 }
 0x5cb   :  { %v6588_v24 = vsel %vm6587_vm2, %v6585_v51, %v6543_v54 }
 0x5cc   :  { %v6590_v43 = vmax.f32 %v6588_v24, 0.0 }
 0x5cd   :  { %v6595_v25 = vpop.permute.xlu2 %6594 }
 0x5cf   :  { %v6513_v61 = vpop.permute.xlu1 %6512 }
 0x5d1   :  { %v6497_v20 = vpop.permute.xlu0 %6496 }
 0x5d2   :  { %v6571_v60 = vsel %vm6569_vm10, %v6568_v12, %v6497_v20 }
 0x5d3   :  { %v6574_v33 = vsel %vm6572_vm11, %v6571_v60, %v6505_v46 }
 0x5d4   :  { %v6577_v50 = vsel %vm6575_vm12, %v6574_v33, %v6513_v61 }
 0x5d7   :  { %v6537_v6 = vpop.permute.xlu1 %6536 }
 0x5d9   :  { %v6521_v56 = vpop.permute.xlu0 %6520 }
 0x5da   :  { %v6580_v10 = vsel %vm6578_vm13, %v6577_v50, %v6521_v56 }
 0x5db   :  { %v6583_v28 = vsel %vm6581_vm14, %v6580_v10, %v6529_v35 }
 0x5dc   :  { %v6586_v45 = vsel %vm6584_vm15, %v6583_v28, %v6537_v6 }
 0x5df   :  { %v6593_v0 = vpop.permute.xlu1 %6592 }
 0x5e0   :  { %v6598_v57 = vsel %vm229_vm1, %v6590_v43, %v6593_v0 }
 0x5e1   :  { %6600 = vst [vmem:[#allocation11] sm:$0xff] %v6598_v57  ;;  %v6545_v19 = vpop.permute.xlu0 %6544 }
 0x5e2   :  { %v6589_v53 = vsel %vm6587_vm2, %v6586_v45, %v6545_v19 }
 0x5e3   :  { %v6591_v15 = vmax.f32 %v6589_v53, 0.0 }
 0x5e5   :  { %v6599_v37 = vsel %vm229_vm1, %v6591_v15, %v6595_v25 }
 0x5e6   :  { %6601 = vst [vmem:[#allocation11 + $0x8] sm:$0xff] %v6599_v37 }
 0x5e7   :  { %6614 = dma.vmem_to_hbm [thread:$0]  %s6607_s6, 256, %s6609_s25, [#allocation4], %s7291_s18, %s7291_s18, %s7292_s19  }
 0x5e8   :  { %7282 = dma.done.wait [#allocation4], 256  }
 0x5e9   :  { %7283 = vsyncadd [#allocation4], 4294967040 }
 0x5ea   :  { %6619 = vsyncpa [#allocation3], 1 }
 0x5eb   :  { %6620 = vsyncpa [#allocation6], 1 }
 0x5ec   :  { %6621 = vsyncpa [#allocation9], 1 }
 0x5ed   :  { %6622 = vsyncpa [#allocation4], 1 }

</bundles_post_ra>
